<compile_context>
chip_gen: v7x
topology: tpu7x:2x2x1
jax: 0.10.0
libtpu: 0.0.40
codegen_flags: <defaults>
</compile_context>

<pallas_src>
import functools

import jax
import jax.numpy as jnp
from jax import lax
from jax.experimental import pallas as pl
from jax.experimental.pallas import tpu as pltpu

PAD_ID = 0
EDOC_ID = 1
NLL_EPS = 1e-14
VMEM_LIMIT = 48 * 1024 * 1024  # explicit VMEM budget (safe on v7x's 64 MiB)


# ----------------------------------------------------------------------------
# In-kernel helpers
# ----------------------------------------------------------------------------
def _lstm_cell(gates, c):
    """gates: [R, 4H] (i,f,g,o torch ordering), c: [R, H] f32."""
    H = c.shape[-1]
    i = jax.nn.sigmoid(gates[:, 0:H])
    f = jax.nn.sigmoid(gates[:, H:2 * H])
    g = jnp.tanh(gates[:, 2 * H:3 * H])
    o = jax.nn.sigmoid(gates[:, 3 * H:4 * H])
    c_new = f * c + i * g
    h_new = o * jnp.tanh(c_new)
    return h_new, c_new


def _greedy(logits):
    """torch.max-style argmax (lowest index on ties) -> (idx [R,1], onehot [R,V])."""
    V = logits.shape[-1]
    m = jnp.max(logits, axis=-1, keepdims=True)
    iota = lax.broadcasted_iota(jnp.int32, logits.shape, 1)
    cand = jnp.where(logits >= m, iota, V)
    idx = jnp.min(cand, axis=-1, keepdims=True)
    onehot = (iota == idx).astype(jnp.float32)
    return idx, onehot


def _nll_step(probs, tgt):
    """NLL of probs [R,V] at int targets tgt [R,1]; PAD_ID ignored.

    Returns ((1,1) sum of -log(p[tgt]+eps), (1,1) count of non-PAD targets)."""
    iota = lax.broadcasted_iota(jnp.int32, probs.shape, 1)
    onehot = (iota == tgt).astype(jnp.float32)
    picked = jnp.sum(probs * onehot, axis=-1, keepdims=True)       # [R, 1]
    valid = (tgt != PAD_ID).astype(jnp.float32)                    # [R, 1]
    nll = (-jnp.sum(jnp.log(picked + NLL_EPS) * valid)).reshape(1, 1)
    cnt = jnp.sum(valid).reshape(1, 1)
    return nll, cnt


# ----------------------------------------------------------------------------
# Kernel A: LSTM encoder over int token ids (docs_enc).
#   - ids arrive via scalar prefetch (SMEM); the input contribution is a W_ih
#     row gather, not a one-hot matmul.
#   - grid is over row blocks, marked "parallel" (v7x dual core).
# ----------------------------------------------------------------------------
def lstm_encoder_ids_kernel(ids_sm, wih_ref, whh_ref, b_ref, h_ref, c_ref):
    T = ids_sm.shape[0]
    RB, H = h_ref.shape
    row0 = pl.program_id(0) * RB

    def step(t, carry):
        h, c = carry
        # Embedding(+input weights) row gather: W_ih[token] for each row.
        rows = [wih_ref[pl.ds(ids_sm[t, row0 + r], 1), :] for r in range(RB)]
        x = jnp.concatenate(rows, axis=0)                          # [RB, 4H] f32
        gates = (x
                 + jnp.dot(h.astype(jnp.bfloat16), whh_ref[...],
                           preferred_element_type=jnp.float32)
                 + b_ref[...])
        return _lstm_cell(gates, c)

    h0 = jnp.zeros((RB, H), jnp.float32)
    c0 = jnp.zeros((RB, H), jnp.float32)
    h, c = lax.fori_loop(0, T, step, (h0, c0))
    h_ref[...] = h
    c_ref[...] = c


def run_docs_encoder(ids_tm, wih, whh, b, *, row_block=None):
    """ids_tm: [T, R] int32 (time-major). Returns (h, c) each [R, H] f32."""
    T, R = ids_tm.shape
    V, H4 = wih.shape
    H = H4 // 4
    rb = R if row_block is None else row_block
    assert R % rb == 0
    return pl.pallas_call(
        lstm_encoder_ids_kernel,
        out_shape=(jax.ShapeDtypeStruct((R, H), jnp.float32),
                   jax.ShapeDtypeStruct((R, H), jnp.float32)),
        grid_spec=pltpu.PrefetchScalarGridSpec(
            num_scalar_prefetch=1,
            grid=(R // rb,),
            in_specs=[pl.BlockSpec((V, H4), lambda i, ids: (0, 0)),
                      pl.BlockSpec((H, H4), lambda i, ids: (0, 0)),
                      pl.BlockSpec((1, H4), lambda i, ids: (0, 0))],
            out_specs=(pl.BlockSpec((rb, H), lambda i, ids: (i, 0)),
                       pl.BlockSpec((rb, H), lambda i, ids: (i, 0)))),
        compiler_params=pltpu.CompilerParams(
            dimension_semantics=("parallel",),
            vmem_limit_bytes=VMEM_LIMIT),
    )(ids_tm, wih, whh, b)


# ----------------------------------------------------------------------------
# Kernel B: docs_autodec — free-running greedy LSTM decode with the autoencoder
#           NLL fused into the loop (probs never leave VMEM).
# ----------------------------------------------------------------------------
def autodec_kernel(h0_ref, c0_ref, x0_ref, tgt_ref, wih_ref, whh_ref, b_ref,
                   wout_ref, bout_ref, nll_ref):
    T = tgt_ref.shape[0]
    R, H = h0_ref.shape
    H4 = x0_ref.shape[1]

    def step(t, carry):
        h, c, xg, nll, cnt = carry
        gates = (xg
                 + jnp.dot(h.astype(jnp.bfloat16), whh_ref[...],
                           preferred_element_type=jnp.float32)
                 + b_ref[...])
        h, c = _lstm_cell(gates, c)
        logits = (jnp.dot(h.astype(jnp.bfloat16), wout_ref[...],
                          preferred_element_type=jnp.float32) + bout_ref[...])
        z = logits - jnp.max(logits, axis=-1, keepdims=True)       # tau = 1
        e = jnp.exp(z)
        probs = e * pl.reciprocal(jnp.sum(e, axis=-1, keepdims=True), approx=True)
        d_nll, d_cnt = _nll_step(probs, tgt_ref[t])
        # Greedy feedback of the sampled token.
        # TODO(synk): an int-index W_ih row gather would avoid this [R,V]x[V,4H]
        # matmul, but needs a vector->scalar index extraction Mosaic does not
        # expose cleanly; keep a bf16 one-hot matmul on the MXU instead.
        _, onehot = _greedy(logits)
        xg_next = jnp.dot(onehot.astype(jnp.bfloat16), wih_ref[...],
                          preferred_element_type=jnp.float32)
        return h, c, xg_next, nll + d_nll, cnt + d_cnt

    xg0 = jnp.broadcast_to(x0_ref[...], (R, H4))
    acc0 = jnp.zeros((1, 1), jnp.float32)
    _, _, _, nll, cnt = lax.fori_loop(
        0, T, step, (h0_ref[...], c0_ref[...], xg0, acc0, acc0))
    nll_ref[...] = jnp.concatenate([nll, cnt], axis=1)             # (1, 2)


def run_autodec(h0, c0, x0, tgt, wih, whh, b, wout, bout):
    # TODO(synk): for large B*n_docs, row-block this grid like run_docs_encoder
    # ("parallel" row axis) for v7x dual-core; single invocation is fine here.
    return pl.pallas_call(
        autodec_kernel,
        out_shape=jax.ShapeDtypeStruct((1, 2), jnp.float32),
        compiler_params=pltpu.CompilerParams(vmem_limit_bytes=VMEM_LIMIT),
    )(h0, c0, x0, tgt, wih, whh, b, wout, bout)


# ----------------------------------------------------------------------------
# Kernel C: summ_dec + gold-summary NLL + summ_enc, fully fused.
#   The soft summary probs feed the summ_enc recurrence in-register; only the
#   greedy ids, the final summ_enc states and the NLL partials hit HBM.
# ----------------------------------------------------------------------------
def summ_dec_enc_kernel(h0_ref, c0_ref, x0_ref, gold_ref,
                        wih_d_ref, whh_d_ref, b_d_ref, wout_ref, bout_ref,
                        wih_e_ref, whh_e_ref, b_e_ref,
                        ids_ref, hse_ref, cse_ref, nll_ref, *, tau):
    T = gold_ref.shape[0]
    B, H = h0_ref.shape
    H4 = x0_ref.shape[1]
    inv_tau = 1.0 / tau

    def step(t, carry):
        h, c, xg, he, ce, nll, cnt = carry
        # ---- summ_dec LSTM step ---------------------------------------------
        gates = (xg
                 + jnp.dot(h.astype(jnp.bfloat16), whh_d_ref[...],
                           preferred_element_type=jnp.float32)
                 + b_d_ref[...])
        h, c = _lstm_cell(gates, c)
        logits = (jnp.dot(h.astype(jnp.bfloat16), wout_ref[...],
                          preferred_element_type=jnp.float32) + bout_ref[...])
        # TODO(synk): gumbel noise (softmax_method='gumbel') not implemented.
        z = logits * inv_tau
        z = z - jnp.max(z, axis=-1, keepdims=True)
        e = jnp.exp(z)
        probs = e * pl.reciprocal(jnp.sum(e, axis=-1, keepdims=True), approx=True)
        # ---- fused gold_summ_loss (NLL over non-PAD gold tokens) -------------
        d_nll, d_cnt = _nll_step(probs, gold_ref[t])
        # ---- greedy sample: emit id, feed hard one-hot back -------------------
        idx, onehot = _greedy(logits)
        ids_ref[t] = idx                                            # [B, 1] int32
        xg_next = jnp.dot(onehot.astype(jnp.bfloat16), wih_d_ref[...],
                          preferred_element_type=jnp.float32)
        # ---- fused summ_enc step over the soft probs --------------------------
        gates_e = (jnp.dot(probs.astype(jnp.bfloat16), wih_e_ref[...],
                           preferred_element_type=jnp.float32)
                   + jnp.dot(he.astype(jnp.bfloat16), whh_e_ref[...],
                             preferred_element_type=jnp.float32)
                   + b_e_ref[...])
        he, ce = _lstm_cell(gates_e, ce)
        return h, c, xg_next, he, ce, nll + d_nll, cnt + d_cnt

    xg0 = jnp.broadcast_to(x0_ref[...], (B, H4))
    zs = jnp.zeros((B, H), jnp.float32)
    acc0 = jnp.zeros((1, 1), jnp.float32)
    _, _, _, he, ce, nll, cnt = lax.fori_loop(
        0, T, step, (h0_ref[...], c0_ref[...], xg0, zs, zs, acc0, acc0))
    hse_ref[...] = he
    cse_ref[...] = ce
    nll_ref[...] = jnp.concatenate([nll, cnt], axis=1)              # (1, 2)


def run_summ_dec_enc(h0, c0, x0, gold_tm, wih_d, whh_d, b_d, wout, bout,
                     wih_e, whh_e, b_e, *, seq_len, tau):
    B, H = h0.shape
    # TODO(synk): at production vocab sizes, tile wout over V (online softmax)
    # so no single [H, V] block exceeds the v7x 64 MiB VMEM budget.
    return pl.pallas_call(
        functools.partial(summ_dec_enc_kernel, tau=tau),
        out_shape=(jax.ShapeDtypeStruct((seq_len, B, 1), jnp.int32),
                   jax.ShapeDtypeStruct((B, H), jnp.float32),
                   jax.ShapeDtypeStruct((B, H), jnp.float32),
                   jax.ShapeDtypeStruct((1, 2), jnp.float32)),
        compiler_params=pltpu.CompilerParams(vmem_limit_bytes=VMEM_LIMIT),
    )(h0, c0, x0, gold_tm, wih_d, whh_d, b_d, wout, bout, wih_e, whh_e, b_e)


# ----------------------------------------------------------------------------
# Parameters (deterministic, synthetic) and forward
# ----------------------------------------------------------------------------
def init_params(key, vocab, hidden):
    """Embedding folded into W_ih.  W_hh / W_out / summ_enc W_ih are bf16 for
    the MXU; docs_enc W_ih stays f32 (it is only row-gathered, never matmul'd);
    biases stay f32."""
    def enc(k, wih_dtype):
        k1, k2, k3 = jax.random.split(k, 3)
        return dict(
            wih=(0.1 * jax.random.normal(k1, (vocab, 4 * hidden), jnp.float32)
                 ).astype(wih_dtype),
            whh=(0.1 * jax.random.normal(k2, (hidden, 4 * hidden), jnp.float32)
                 ).astype(jnp.bfloat16),
            b=0.1 * jax.random.normal(k3, (1, 4 * hidden), jnp.float32),
        )

    def dec(k):
        k1, k2 = jax.random.split(k, 2)
        p = enc(k1, jnp.bfloat16)
        k3, k4 = jax.random.split(k2, 2)
        p["wout"] = (0.1 * jax.random.normal(k3, (hidden, vocab), jnp.float32)
                     ).astype(jnp.bfloat16)
        p["bout"] = 0.1 * jax.random.normal(k4, (1, vocab), jnp.float32)
        return p

    ks = jax.random.split(key, 4)
    return dict(docs_enc=enc(ks[0], jnp.float32),
                summ_enc=enc(ks[1], jnp.bfloat16),
                docs_autodec=dec(ks[2]),
                summ_dec=dec(ks[3]))


def summarization_forward(params, docs_ids, gold_summaries_ids, *, tau, summ_len):
    B, n_docs, T_doc = docs_ids.shape
    pe = params["docs_enc"]
    vocab, H4 = pe["wih"].shape
    H = H4 // 4
    R = B * n_docs
    stats = {}

    # ---- docs_enc: token ids straight into the kernel ------------------------
    ids_tm = docs_ids.reshape(R, T_doc).astype(jnp.int32).T         # [T, R]
    docs_enc_h, docs_enc_c = run_docs_encoder(ids_tm, pe["wih"], pe["whh"], pe["b"])

    # ---- docs_autodec + fused autoenc NLL (hp.autoenc_docs) -------------------
    pd = params["docs_autodec"]
    x0_docs = pd["wih"][EDOC_ID].astype(jnp.float32)[None, :]       # [1, 4H]
    tgt_docs = ids_tm[:, :, None]                                   # [T, R, 1]
    auto_nll = run_autodec(docs_enc_h, docs_enc_c, x0_docs, tgt_docs,
                           pd["wih"], pd["whh"], pd["b"], pd["wout"], pd["bout"])
    stats["autoenc_loss"] = 100.0 * auto_nll[0, 0] / jnp.maximum(auto_nll[0, 1], 1.0)

    # ---- combine_encs == 'mean' (tiny; plain JAX, XLA fuses it) ---------------
    h_comb = docs_enc_h.reshape(B, n_docs, H).mean(axis=1)          # [B, H]
    c_comb = docs_enc_c.reshape(B, n_docs, H).mean(axis=1)

    # ---- summ_dec + gold_summ_loss + summ_enc, fused --------------------------
    ps = params["summ_dec"]
    pse = params["summ_enc"]
    x0_summ = ps["wih"][EDOC_ID].astype(jnp.float32)[None, :]
    gold_tm = gold_summaries_ids[:, :summ_len].astype(jnp.int32).T[:, :, None]
    summ_ids_tm, summ_enc_h, summ_enc_c, gold_nll = run_summ_dec_enc(
        h_comb, c_comb, x0_summ, gold_tm,
        ps["wih"], ps["whh"], ps["b"], ps["wout"], ps["bout"],
        pse["wih"], pse["whh"], pse["b"], seq_len=summ_len, tau=tau)
    stats["gold_summ_loss"] = gold_nll[0, 0] / jnp.maximum(gold_nll[0, 1], 1.0)
    summ_ids = summ_ids_tm[:, :, 0].T                               # [B, summ_len]

    # ---- sum_cycle 'enc' cosine loss (cos over flattened per-batch concat,
    #      exactly as the torch code's .view(batch, -1); tiny -> plain JAX) ----
    a_h = jnp.tile(summ_enc_h, (1, n_docs))
    a_c = jnp.tile(summ_enc_c, (1, n_docs))
    b_h = docs_enc_h.reshape(B, n_docs * H)
    b_c = docs_enc_c.reshape(B, n_docs * H)

    def cos(a, b):
        num = jnp.sum(a * b, axis=-1)
        na = jnp.maximum(jnp.sqrt(jnp.sum(a * a, axis=-1)), 1e-8)
        nb = jnp.maximum(jnp.sqrt(jnp.sum(b * b, axis=-1)), 1e-8)
        return num / (na * nb)

    cos_wgt = 1.0
    stats["cycle_loss"] = cos_wgt * (-jnp.mean(cos(a_h, b_h)) - jnp.mean(cos(a_c, b_c)))
    return stats, summ_ids


# ----------------------------------------------------------------------------
if __name__ == "__main__":
    # Lane-aligned sizes (multiples of 128) keep gate slabs / h / c tiles dense.
    VOCAB = 256
    HIDDEN = 128
    BATCH = 2
    N_DOCS = 4
    DOC_LEN = 8
    SUMM_LEN = 8
    TAU = 0.9

    key = jax.random.PRNGKey(0)
    k_param, k_docs, k_gold = jax.random.split(key, 3)

    params = init_params(k_param, VOCAB, HIDDEN)
    docs_ids = jax.random.randint(k_docs, (BATCH, N_DOCS, DOC_LEN), 2, VOCAB,
                                  dtype=jnp.int32)
    gold_summaries_ids = jax.random.randint(k_gold, (BATCH, SUMM_LEN), 2, VOCAB,
                                            dtype=jnp.int32)

    fwd = jax.jit(lambda p, d, g: summarization_forward(
        p, d, g, tau=TAU, summ_len=SUMM_LEN))
    stats, summ_ids = fwd(params, docs_ids, gold_summaries_ids)

    jax.block_until_ready((stats, summ_ids))
    print("KERNEL_OK")
</pallas_src>

<mosaic_0001>
module attributes {stable_mosaic.version = 11 : i64} {
  func.func @lstm_encoder_ids_kernel(%arg0: i32, %arg1: memref<8x8xi32, #tpu.memory_space<smem>>, %arg2: memref<256x512xf32, #tpu.memory_space<vmem>>, %arg3: memref<128x512xbf16, #tpu.memory_space<vmem>>, %arg4: memref<1x512xf32, #tpu.memory_space<vmem>>, %arg5: memref<8x128xf32, #tpu.memory_space<vmem>>, %arg6: memref<8x128xf32, #tpu.memory_space<vmem>>) attributes {dimension_semantics = [#tpu.dimension_semantics<parallel>], iteration_bounds = array<i64: 1>, scalar_prefetch = 1 : i64, scratch_operands = 0 : i64, tpu.core_type = #tpu.core_type<tc>, window_params = [{pipeline_mode = #tpu.pipeline_mode<synchronous>, transform_indices = @transform_0, window_bounds = array<i64: 256, 512>}, {pipeline_mode = #tpu.pipeline_mode<synchronous>, transform_indices = @transform_1, window_bounds = array<i64: 128, 512>}, {pipeline_mode = #tpu.pipeline_mode<synchronous>, transform_indices = @transform_2, window_bounds = array<i64: 1, 512>}, {transform_indices = @transform_3, window_bounds = array<i64: 8, 128>}, {transform_indices = @transform_4, window_bounds = array<i64: 8, 128>}]} {
    %c8_i32 = arith.constant 8 : i32
    %0 = arith.muli %arg0, %c8_i32 : i32
    %cst = arith.constant 0.000000e+00 : f32
    %1 = vector.broadcast %cst : f32 to vector<8x128xf32>
    %cst_0 = arith.constant 0.000000e+00 : f32
    %2 = vector.broadcast %cst_0 : f32 to vector<8x128xf32>
    %c0_i32 = arith.constant 0 : i32
    %c8_i32_1 = arith.constant 8 : i32
    %3 = arith.addi %c0_i32, %c8_i32_1 : i32
    %c1_i32 = arith.constant 1 : i32
    %4:2 = scf.for %arg7 = %c0_i32 to %3 step %c1_i32 iter_args(%arg8 = %1, %arg9 = %2) -> (vector<8x128xf32>, vector<8x128xf32>)  : i32 {
      %c0_i32_6 = arith.constant 0 : i32
      %7 = arith.addi %0, %c0_i32_6 : i32
      %8 = arith.index_cast %arg7 : i32 to index
      %9 = arith.index_cast %7 : i32 to index
      %10 = memref.load %arg1[%8, %9] : memref<8x8xi32, #tpu.memory_space<smem>>
      %11 = arith.index_cast %10 : i32 to index
      %c0_7 = arith.constant 0 : index
      %12 = vector.load %arg2[%11, %c0_7] : memref<256x512xf32, #tpu.memory_space<vmem>>, vector<1x512xf32>
      %c1_i32_8 = arith.constant 1 : i32
      %13 = arith.addi %0, %c1_i32_8 : i32
      %14 = arith.index_cast %arg7 : i32 to index
      %15 = arith.index_cast %13 : i32 to index
      %16 = memref.load %arg1[%14, %15] : memref<8x8xi32, #tpu.memory_space<smem>>
      %17 = arith.index_cast %16 : i32 to index
      %c0_9 = arith.constant 0 : index
      %18 = vector.load %arg2[%17, %c0_9] : memref<256x512xf32, #tpu.memory_space<vmem>>, vector<1x512xf32>
      %c2_i32 = arith.constant 2 : i32
      %19 = arith.addi %0, %c2_i32 : i32
      %20 = arith.index_cast %arg7 : i32 to index
      %21 = arith.index_cast %19 : i32 to index
      %22 = memref.load %arg1[%20, %21] : memref<8x8xi32, #tpu.memory_space<smem>>
      %23 = arith.index_cast %22 : i32 to index
      %c0_10 = arith.constant 0 : index
      %24 = vector.load %arg2[%23, %c0_10] : memref<256x512xf32, #tpu.memory_space<vmem>>, vector<1x512xf32>
      %c3_i32 = arith.constant 3 : i32
      %25 = arith.addi %0, %c3_i32 : i32
      %26 = arith.index_cast %arg7 : i32 to index
      %27 = arith.index_cast %25 : i32 to index
      %28 = memref.load %arg1[%26, %27] : memref<8x8xi32, #tpu.memory_space<smem>>
      %29 = arith.index_cast %28 : i32 to index
      %c0_11 = arith.constant 0 : index
      %30 = vector.load %arg2[%29, %c0_11] : memref<256x512xf32, #tpu.memory_space<vmem>>, vector<1x512xf32>
      %c4_i32 = arith.constant 4 : i32
      %31 = arith.addi %0, %c4_i32 : i32
      %32 = arith.index_cast %arg7 : i32 to index
      %33 = arith.index_cast %31 : i32 to index
      %34 = memref.load %arg1[%32, %33] : memref<8x8xi32, #tpu.memory_space<smem>>
      %35 = arith.index_cast %34 : i32 to index
      %c0_12 = arith.constant 0 : index
      %36 = vector.load %arg2[%35, %c0_12] : memref<256x512xf32, #tpu.memory_space<vmem>>, vector<1x512xf32>
      %c5_i32 = arith.constant 5 : i32
      %37 = arith.addi %0, %c5_i32 : i32
      %38 = arith.index_cast %arg7 : i32 to index
      %39 = arith.index_cast %37 : i32 to index
      %40 = memref.load %arg1[%38, %39] : memref<8x8xi32, #tpu.memory_space<smem>>
      %41 = arith.index_cast %40 : i32 to index
      %c0_13 = arith.constant 0 : index
      %42 = vector.load %arg2[%41, %c0_13] : memref<256x512xf32, #tpu.memory_space<vmem>>, vector<1x512xf32>
      %c6_i32 = arith.constant 6 : i32
      %43 = arith.addi %0, %c6_i32 : i32
      %44 = arith.index_cast %arg7 : i32 to index
      %45 = arith.index_cast %43 : i32 to index
      %46 = memref.load %arg1[%44, %45] : memref<8x8xi32, #tpu.memory_space<smem>>
      %47 = arith.index_cast %46 : i32 to index
      %c0_14 = arith.constant 0 : index
      %48 = vector.load %arg2[%47, %c0_14] : memref<256x512xf32, #tpu.memory_space<vmem>>, vector<1x512xf32>
      %c7_i32 = arith.constant 7 : i32
      %49 = arith.addi %0, %c7_i32 : i32
      %50 = arith.index_cast %arg7 : i32 to index
      %51 = arith.index_cast %49 : i32 to index
      %52 = memref.load %arg1[%50, %51] : memref<8x8xi32, #tpu.memory_space<smem>>
      %53 = arith.index_cast %52 : i32 to index
      %c0_15 = arith.constant 0 : index
      %54 = vector.load %arg2[%53, %c0_15] : memref<256x512xf32, #tpu.memory_space<vmem>>, vector<1x512xf32>
      %55 = tpu.concatenate %12, %18, %24, %30, %36, %42, %48, %54 in 0 : vector<1x512xf32>, vector<1x512xf32>, vector<1x512xf32>, vector<1x512xf32>, vector<1x512xf32>, vector<1x512xf32>, vector<1x512xf32>, vector<1x512xf32> -> vector<8x512xf32>
      %56 = arith.truncf %arg8 : vector<8x128xf32> to vector<8x128xbf16>
      %c0_16 = arith.constant 0 : index
      %c0_17 = arith.constant 0 : index
      %57 = vector.load %arg3[%c0_16, %c0_17] : memref<128x512xbf16, #tpu.memory_space<vmem>>, vector<128x512xbf16>
      %cst_18 = arith.constant dense<0.000000e+00> : vector<8x512xf32>
      %58 = tpu.matmul %56, %57, %cst_18 {dimension_numbers = #tpu.dot_dimension_numbers<[1], [0], [0], [1], [0, 0, 1, 1], [], []>} : vector<8x128xbf16>, vector<128x512xbf16>, vector<8x512xf32> -> vector<8x512xf32>
      %59 = arith.addf %55, %58 : vector<8x512xf32>
      %c0_19 = arith.constant 0 : index
      %c0_20 = arith.constant 0 : index
      %60 = vector.load %arg4[%c0_19, %c0_20] : memref<1x512xf32, #tpu.memory_space<vmem>>, vector<1x512xf32>
      %61 = vector.broadcast %60 : vector<1x512xf32> to vector<8x512xf32>
      %62 = arith.addf %59, %61 : vector<8x512xf32>
      %63 = vector.extract_strided_slice %62 {offsets = [0, 0], sizes = [8, 128], strides = [1, 1]} : vector<8x512xf32> to vector<8x128xf32>
      %64 = arith.negf %63 : vector<8x128xf32>
      %65 = math.exp %64 : vector<8x128xf32>
      %cst_21 = arith.constant 1.000000e+00 : f32
      %66 = vector.broadcast %cst_21 : f32 to vector<8x128xf32>
      %67 = arith.addf %66, %65 : vector<8x128xf32>
      %68 = arith.divf %66, %67 : vector<8x128xf32>
      %69 = vector.extract_strided_slice %62 {offsets = [0, 128], sizes = [8, 128], strides = [1, 1]} : vector<8x512xf32> to vector<8x128xf32>
      %70 = arith.negf %69 : vector<8x128xf32>
      %71 = math.exp %70 : vector<8x128xf32>
      %cst_22 = arith.constant 1.000000e+00 : f32
      %72 = vector.broadcast %cst_22 : f32 to vector<8x128xf32>
      %73 = arith.addf %72, %71 : vector<8x128xf32>
      %74 = arith.divf %72, %73 : vector<8x128xf32>
      %75 = vector.extract_strided_slice %62 {offsets = [0, 256], sizes = [8, 128], strides = [1, 1]} : vector<8x512xf32> to vector<8x128xf32>
      %76 = math.tanh %75 : vector<8x128xf32>
      %77 = vector.extract_strided_slice %62 {offsets = [0, 384], sizes = [8, 128], strides = [1, 1]} : vector<8x512xf32> to vector<8x128xf32>
      %78 = arith.negf %77 : vector<8x128xf32>
      %79 = math.exp %78 : vector<8x128xf32>
      %cst_23 = arith.constant 1.000000e+00 : f32
      %80 = vector.broadcast %cst_23 : f32 to vector<8x128xf32>
      %81 = arith.addf %80, %79 : vector<8x128xf32>
      %82 = arith.divf %80, %81 : vector<8x128xf32>
      %83 = arith.mulf %74, %arg9 : vector<8x128xf32>
      %84 = arith.mulf %68, %76 : vector<8x128xf32>
      %85 = arith.addf %83, %84 : vector<8x128xf32>
      %86 = math.tanh %85 : vector<8x128xf32>
      %87 = arith.mulf %82, %86 : vector<8x128xf32>
      scf.yield %87, %85 : vector<8x128xf32>, vector<8x128xf32>
    }
    %c8_i32_2 = arith.constant 8 : i32
    %c0 = arith.constant 0 : index
    %c0_3 = arith.constant 0 : index
    %5 = vector.load %arg5[%c0, %c0_3] : memref<8x128xf32, #tpu.memory_space<vmem>>, vector<8x128xf32>
    tpu.vector_store %arg5[%c0, %c0_3], %4#0 {strides = array<i32>} : memref<8x128xf32, #tpu.memory_space<vmem>>, vector<8x128xf32>,
    %c0_4 = arith.constant 0 : index
    %c0_5 = arith.constant 0 : index
    %6 = vector.load %arg6[%c0_4, %c0_5] : memref<8x128xf32, #tpu.memory_space<vmem>>, vector<8x128xf32>
    tpu.vector_store %arg6[%c0_4, %c0_5], %4#1 {strides = array<i32>} : memref<8x128xf32, #tpu.memory_space<vmem>>, vector<8x128xf32>,
    return
  }
  func.func @transform_0(%arg0: i32, %arg1: memref<8x8xi32, #tpu.memory_space<smem>>) -> (i32, i32) {
    %c0_i32 = arith.constant 0 : i32
    %c0_i32_0 = arith.constant 0 : i32
    %c0_i32_1 = arith.constant 0 : i32
    return %c0_i32, %c0_i32_0 : i32, i32
  }
  func.func @transform_1(%arg0: i32, %arg1: memref<8x8xi32, #tpu.memory_space<smem>>) -> (i32, i32) {
    %c0_i32 = arith.constant 0 : i32
    %c0_i32_0 = arith.constant 0 : i32
    %c0_i32_1 = arith.constant 0 : i32
    return %c0_i32, %c0_i32_0 : i32, i32
  }
  func.func @transform_2(%arg0: i32, %arg1: memref<8x8xi32, #tpu.memory_space<smem>>) -> (i32, i32) {
    %c0_i32 = arith.constant 0 : i32
    %c0_i32_0 = arith.constant 0 : i32
    %c0_i32_1 = arith.constant 0 : i32
    return %c0_i32, %c0_i32_0 : i32, i32
  }
  func.func @transform_3(%arg0: i32, %arg1: memref<8x8xi32, #tpu.memory_space<smem>>) -> (i32, i32) {
    %c0_i32 = arith.constant 0 : i32
    %c0_i32_0 = arith.constant 0 : i32
    return %arg0, %c0_i32 : i32, i32
  }
  func.func @transform_4(%arg0: i32, %arg1: memref<8x8xi32, #tpu.memory_space<smem>>) -> (i32, i32) {
    %c0_i32 = arith.constant 0 : i32
    %c0_i32_0 = arith.constant 0 : i32
    return %arg0, %c0_i32 : i32, i32
  }
}

module attributes {stable_mosaic.version = 11 : i64} {
  func.func @autodec_kernel(%arg0: memref<8x128xf32, #tpu.memory_space<vmem>>, %arg1: memref<8x128xf32, #tpu.memory_space<vmem>>, %arg2: memref<1x512xf32, #tpu.memory_space<vmem>>, %arg3: memref<8x8x1xi32, #tpu.memory_space<vmem>>, %arg4: memref<256x512xbf16, #tpu.memory_space<vmem>>, %arg5: memref<128x512xbf16, #tpu.memory_space<vmem>>, %arg6: memref<1x512xf32, #tpu.memory_space<vmem>>, %arg7: memref<128x256xbf16, #tpu.memory_space<vmem>>, %arg8: memref<1x256xf32, #tpu.memory_space<vmem>>, %arg9: memref<1x2xf32, #tpu.memory_space<vmem>>) attributes {dimension_semantics = [], scalar_prefetch = 0 : i64, scratch_operands = 0 : i64, tpu.core_type = #tpu.core_type<tc>} {
    %c0 = arith.constant 0 : index
    %c0_0 = arith.constant 0 : index
    %0 = vector.load %arg2[%c0, %c0_0] : memref<1x512xf32, #tpu.memory_space<vmem>>, vector<1x512xf32>
    %1 = vector.shape_cast %0 : vector<1x512xf32> to vector<1x512xf32>
    %2 = vector.broadcast %1 : vector<1x512xf32> to vector<8x512xf32>
    %cst = arith.constant 0.000000e+00 : f32
    %3 = vector.broadcast %cst : f32 to vector<1x1xf32>
    %c0_1 = arith.constant 0 : index
    %c0_2 = arith.constant 0 : index
    %4 = vector.load %arg0[%c0_1, %c0_2] : memref<8x128xf32, #tpu.memory_space<vmem>>, vector<8x128xf32>
    %c0_3 = arith.constant 0 : index
    %c0_4 = arith.constant 0 : index
    %5 = vector.load %arg1[%c0_3, %c0_4] : memref<8x128xf32, #tpu.memory_space<vmem>>, vector<8x128xf32>
    %c0_i32 = arith.constant 0 : i32
    %c8_i32 = arith.constant 8 : i32
    %6 = arith.addi %c0_i32, %c8_i32 : i32
    %c1_i32 = arith.constant 1 : i32
    %7:5 = scf.for %arg10 = %c0_i32 to %6 step %c1_i32 iter_args(%arg11 = %4, %arg12 = %5, %arg13 = %2, %arg14 = %3, %arg15 = %3) -> (vector<8x128xf32>, vector<8x128xf32>, vector<8x512xf32>, vector<1x1xf32>, vector<1x1xf32>)  : i32 {
      %10 = arith.truncf %arg11 : vector<8x128xf32> to vector<8x128xbf16>
      %c0_8 = arith.constant 0 : index
      %c0_9 = arith.constant 0 : index
      %11 = vector.load %arg5[%c0_8, %c0_9] : memref<128x512xbf16, #tpu.memory_space<vmem>>, vector<128x512xbf16>
      %cst_10 = arith.constant dense<0.000000e+00> : vector<8x512xf32>
      %12 = tpu.matmul %10, %11, %cst_10 {dimension_numbers = #tpu.dot_dimension_numbers<[1], [0], [0], [1], [0, 0, 1, 1], [], []>} : vector<8x128xbf16>, vector<128x512xbf16>, vector<8x512xf32> -> vector<8x512xf32>
      %13 = arith.addf %arg13, %12 : vector<8x512xf32>
      %c0_11 = arith.constant 0 : index
      %c0_12 = arith.constant 0 : index
      %14 = vector.load %arg6[%c0_11, %c0_12] : memref<1x512xf32, #tpu.memory_space<vmem>>, vector<1x512xf32>
      %15 = vector.broadcast %14 : vector<1x512xf32> to vector<8x512xf32>
      %16 = arith.addf %13, %15 : vector<8x512xf32>
      %17 = vector.extract_strided_slice %16 {offsets = [0, 0], sizes = [8, 128], strides = [1, 1]} : vector<8x512xf32> to vector<8x128xf32>
      %18 = arith.negf %17 : vector<8x128xf32>
      %19 = math.exp %18 : vector<8x128xf32>
      %cst_13 = arith.constant 1.000000e+00 : f32
      %20 = vector.broadcast %cst_13 : f32 to vector<8x128xf32>
      %21 = arith.addf %20, %19 : vector<8x128xf32>
      %22 = arith.divf %20, %21 : vector<8x128xf32>
      %23 = vector.extract_strided_slice %16 {offsets = [0, 128], sizes = [8, 128], strides = [1, 1]} : vector<8x512xf32> to vector<8x128xf32>
      %24 = arith.negf %23 : vector<8x128xf32>
      %25 = math.exp %24 : vector<8x128xf32>
      %cst_14 = arith.constant 1.000000e+00 : f32
      %26 = vector.broadcast %cst_14 : f32 to vector<8x128xf32>
      %27 = arith.addf %26, %25 : vector<8x128xf32>
      %28 = arith.divf %26, %27 : vector<8x128xf32>
      %29 = vector.extract_strided_slice %16 {offsets = [0, 256], sizes = [8, 128], strides = [1, 1]} : vector<8x512xf32> to vector<8x128xf32>
      %30 = math.tanh %29 : vector<8x128xf32>
      %31 = vector.extract_strided_slice %16 {offsets = [0, 384], sizes = [8, 128], strides = [1, 1]} : vector<8x512xf32> to vector<8x128xf32>
      %32 = arith.negf %31 : vector<8x128xf32>
      %33 = math.exp %32 : vector<8x128xf32>
      %cst_15 = arith.constant 1.000000e+00 : f32
      %34 = vector.broadcast %cst_15 : f32 to vector<8x128xf32>
      %35 = arith.addf %34, %33 : vector<8x128xf32>
      %36 = arith.divf %34, %35 : vector<8x128xf32>
      %37 = arith.mulf %28, %arg12 : vector<8x128xf32>
      %38 = arith.mulf %22, %30 : vector<8x128xf32>
      %39 = arith.addf %37, %38 : vector<8x128xf32>
      %40 = math.tanh %39 : vector<8x128xf32>
      %41 = arith.mulf %36, %40 : vector<8x128xf32>
      %42 = arith.truncf %41 : vector<8x128xf32> to vector<8x128xbf16>
      %c0_16 = arith.constant 0 : index
      %c0_17 = arith.constant 0 : index
      %43 = vector.load %arg7[%c0_16, %c0_17] : memref<128x256xbf16, #tpu.memory_space<vmem>>, vector<128x256xbf16>
      %cst_18 = arith.constant dense<0.000000e+00> : vector<8x256xf32>
      %44 = tpu.matmul %42, %43, %cst_18 {dimension_numbers = #tpu.dot_dimension_numbers<[1], [0], [0], [1], [0, 0, 1, 1], [], []>} : vector<8x128xbf16>, vector<128x256xbf16>, vector<8x256xf32> -> vector<8x256xf32>
      %c0_19 = arith.constant 0 : index
      %c0_20 = arith.constant 0 : index
      %45 = vector.load %arg8[%c0_19, %c0_20] : memref<1x256xf32, #tpu.memory_space<vmem>>, vector<1x256xf32>
      %46 = vector.broadcast %45 : vector<1x256xf32> to vector<8x256xf32>
      %47 = arith.addf %44, %46 : vector<8x256xf32>
      %cst_21 = arith.constant dense<0xFF800000> : vector<8xf32>
      %48 = vector.multi_reduction <maximumf>, %47, %cst_21 [1] : vector<8x256xf32> to vector<8xf32>
      %49 = vector.shape_cast %48 : vector<8xf32> to vector<8x1xf32>
      %50 = vector.broadcast %49 : vector<8x1xf32> to vector<8x256xf32>
      %51 = arith.subf %47, %50 : vector<8x256xf32>
      %52 = math.exp %51 : vector<8x256xf32>
      %cst_22 = arith.constant dense<0.000000e+00> : vector<8xf32>
      %53 = vector.multi_reduction <add>, %52, %cst_22 [1] : vector<8x256xf32> to vector<8xf32>
      %54 = vector.shape_cast %53 : vector<8xf32> to vector<8x1xf32>
      %55 = tpu.reciprocal %54 {approx = true} : vector<8x1xf32> -> vector<8x1xf32>
      %56 = vector.broadcast %55 : vector<8x1xf32> to vector<8x256xf32>
      %57 = arith.mulf %52, %56 : vector<8x256xf32>
      %58 = arith.index_cast %arg10 : i32 to index
      %c0_23 = arith.constant 0 : index
      %c0_24 = arith.constant 0 : index
      %59 = vector.load %arg3[%58, %c0_23, %c0_24] : memref<8x8x1xi32, #tpu.memory_space<vmem>>, vector<1x8x1xi32>
      %60 = vector.shape_cast %59 : vector<1x8x1xi32> to vector<8x1xi32>
      %61 = tpu.iota {dimensions = array<i32: 1>} : vector<8x256xi32>
      %62 = vector.broadcast %60 : vector<8x1xi32> to vector<8x256xi32>
      %63 = arith.cmpi eq, %61, %62 : vector<8x256xi32>
      %64 = arith.extui %63 : vector<8x256xi1> to vector<8x256xi32>
      %65 = arith.sitofp %64 : vector<8x256xi32> to vector<8x256xf32>
      %66 = arith.mulf %57, %65 : vector<8x256xf32>
      %cst_25 = arith.constant dense<0.000000e+00> : vector<8xf32>
      %67 = vector.multi_reduction <add>, %66, %cst_25 [1] : vector<8x256xf32> to vector<8xf32>
      %68 = vector.shape_cast %67 : vector<8xf32> to vector<8x1xf32>
      %c0_i32_26 = arith.constant 0 : i32
      %69 = vector.broadcast %c0_i32_26 : i32 to vector<8x1xi32>
      %70 = arith.cmpi ne, %60, %69 : vector<8x1xi32>
      %71 = arith.extui %70 : vector<8x1xi1> to vector<8x1xi32>
      %72 = arith.sitofp %71 : vector<8x1xi32> to vector<8x1xf32>
      %cst_27 = arith.constant 9.99999982E-15 : f32
      %73 = vector.broadcast %cst_27 : f32 to vector<8x1xf32>
      %74 = arith.addf %68, %73 : vector<8x1xf32>
      %75 = math.log %74 : vector<8x1xf32>
      %76 = arith.mulf %75, %72 : vector<8x1xf32>
      %77 = vector.shape_cast %76 : vector<8x1xf32> to vector<1x8x1xf32>
      %cst_28 = arith.constant dense<0.000000e+00> : vector<1xf32>
      %78 = vector.multi_reduction <add>, %77, %cst_28 [1, 2] : vector<1x8x1xf32> to vector<1xf32>
      %79 = vector.shape_cast %78 : vector<1xf32> to vector<1x1x1xf32>
      %80 = vector.extract %79[0, 0, 0] : f32 from vector<1x1x1xf32>
      %cst_29 = arith.constant 0.000000e+00 : f32
      %81 = arith.subf %cst_29, %80 : f32
      %82 = vector.broadcast %81 : f32 to vector<1x1xf32>
      %83 = vector.shape_cast %72 : vector<8x1xf32> to vector<1x8x1xf32>
      %cst_30 = arith.constant dense<0.000000e+00> : vector<1xf32>
      %84 = vector.multi_reduction <add>, %83, %cst_30 [1, 2] : vector<1x8x1xf32> to vector<1xf32>
      %85 = vector.shape_cast %84 : vector<1xf32> to vector<1x1x1xf32>
      %86 = vector.extract %85[0, 0, 0] : f32 from vector<1x1x1xf32>
      %87 = vector.broadcast %86 : f32 to vector<1x1xf32>
      %cst_31 = arith.constant dense<0xFF800000> : vector<8xf32>
      %88 = vector.multi_reduction <maximumf>, %47, %cst_31 [1] : vector<8x256xf32> to vector<8xf32>
      %89 = vector.shape_cast %88 : vector<8xf32> to vector<8x1xf32>
      %90 = tpu.iota {dimensions = array<i32: 1>} : vector<8x256xi32>
      %91 = vector.broadcast %89 : vector<8x1xf32> to vector<8x256xf32>
      %92 = arith.cmpf oge, %47, %91 : vector<8x256xf32>
      %c256_i32 = arith.constant 256 : i32
      %93 = vector.broadcast %c256_i32 : i32 to vector<8x256xi32>
      %94 = arith.select %92, %90, %93 : vector<8x256xi1>, vector<8x256xi32>
      %cst_32 = arith.constant dense<2147483647> : vector<8xi32>
      %95 = vector.multi_reduction <minsi>, %94, %cst_32 [1] : vector<8x256xi32> to vector<8xi32>
      %96 = vector.shape_cast %95 : vector<8xi32> to vector<8x1xi32>
      %97 = vector.broadcast %96 : vector<8x1xi32> to vector<8x256xi32>
      %98 = arith.cmpi eq, %90, %97 : vector<8x256xi32>
      %99 = arith.extui %98 : vector<8x256xi1> to vector<8x256xi32>
      %100 = arith.sitofp %99 : vector<8x256xi32> to vector<8x256xf32>
      %101 = arith.truncf %100 : vector<8x256xf32> to vector<8x256xbf16>
      %c0_33 = arith.constant 0 : index
      %c0_34 = arith.constant 0 : index
      %102 = vector.load %arg4[%c0_33, %c0_34] : memref<256x512xbf16, #tpu.memory_space<vmem>>, vector<256x512xbf16>
      %cst_35 = arith.constant dense<0.000000e+00> : vector<8x512xf32>
      %103 = tpu.matmul %101, %102, %cst_35 {dimension_numbers = #tpu.dot_dimension_numbers<[1], [0], [0], [1], [0, 0, 1, 1], [], []>} : vector<8x256xbf16>, vector<256x512xbf16>, vector<8x512xf32> -> vector<8x512xf32>
      %104 = arith.addf %arg14, %82 : vector<1x1xf32>
      %105 = arith.addf %arg15, %87 : vector<1x1xf32>
      scf.yield %41, %39, %103, %104, %105 : vector<8x128xf32>, vector<8x128xf32>, vector<8x512xf32>, vector<1x1xf32>, vector<1x1xf32>
    }
    %c8_i32_5 = arith.constant 8 : i32
    %8 = tpu.concatenate %7#3, %7#4 in 1 : vector<1x1xf32>, vector<1x1xf32> -> vector<1x2xf32>
    %c0_6 = arith.constant 0 : index
    %c0_7 = arith.constant 0 : index
    %9 = vector.load %arg9[%c0_6, %c0_7] : memref<1x2xf32, #tpu.memory_space<vmem>>, vector<1x2xf32>
    tpu.vector_store %arg9[%c0_6, %c0_7], %8 {strides = array<i32>} : memref<1x2xf32, #tpu.memory_space<vmem>>, vector<1x2xf32>,
    return
  }
}

module attributes {stable_mosaic.version = 11 : i64} {
  func.func @summ_dec_enc_kernel(%arg0: memref<2x128xf32, #tpu.memory_space<vmem>>, %arg1: memref<2x128xf32, #tpu.memory_space<vmem>>, %arg2: memref<1x512xf32, #tpu.memory_space<vmem>>, %arg3: memref<8x2x1xi32, #tpu.memory_space<vmem>>, %arg4: memref<256x512xbf16, #tpu.memory_space<vmem>>, %arg5: memref<128x512xbf16, #tpu.memory_space<vmem>>, %arg6: memref<1x512xf32, #tpu.memory_space<vmem>>, %arg7: memref<128x256xbf16, #tpu.memory_space<vmem>>, %arg8: memref<1x256xf32, #tpu.memory_space<vmem>>, %arg9: memref<256x512xbf16, #tpu.memory_space<vmem>>, %arg10: memref<128x512xbf16, #tpu.memory_space<vmem>>, %arg11: memref<1x512xf32, #tpu.memory_space<vmem>>, %arg12: memref<8x2x1xi32, #tpu.memory_space<vmem>>, %arg13: memref<2x128xf32, #tpu.memory_space<vmem>>, %arg14: memref<2x128xf32, #tpu.memory_space<vmem>>, %arg15: memref<1x2xf32, #tpu.memory_space<vmem>>) attributes {dimension_semantics = [], scalar_prefetch = 0 : i64, scratch_operands = 0 : i64, tpu.core_type = #tpu.core_type<tc>} {
    %c0 = arith.constant 0 : index
    %c0_0 = arith.constant 0 : index
    %0 = vector.load %arg2[%c0, %c0_0] : memref<1x512xf32, #tpu.memory_space<vmem>>, vector<1x512xf32>
    %1 = vector.shape_cast %0 : vector<1x512xf32> to vector<1x512xf32>
    %2 = vector.broadcast %1 : vector<1x512xf32> to vector<2x512xf32>
    %cst = arith.constant 0.000000e+00 : f32
    %3 = vector.broadcast %cst : f32 to vector<2x128xf32>
    %cst_1 = arith.constant 0.000000e+00 : f32
    %4 = vector.broadcast %cst_1 : f32 to vector<1x1xf32>
    %c0_2 = arith.constant 0 : index
    %c0_3 = arith.constant 0 : index
    %5 = vector.load %arg0[%c0_2, %c0_3] : memref<2x128xf32, #tpu.memory_space<vmem>>, vector<2x128xf32>
    %c0_4 = arith.constant 0 : index
    %c0_5 = arith.constant 0 : index
    %6 = vector.load %arg1[%c0_4, %c0_5] : memref<2x128xf32, #tpu.memory_space<vmem>>, vector<2x128xf32>
    %c0_i32 = arith.constant 0 : i32
    %c8_i32 = arith.constant 8 : i32
    %7 = arith.addi %c0_i32, %c8_i32 : i32
    %c1_i32 = arith.constant 1 : i32
    %8:7 = scf.for %arg16 = %c0_i32 to %7 step %c1_i32 iter_args(%arg17 = %5, %arg18 = %6, %arg19 = %2, %arg20 = %3, %arg21 = %3, %arg22 = %4, %arg23 = %4) -> (vector<2x128xf32>, vector<2x128xf32>, vector<2x512xf32>, vector<2x128xf32>, vector<2x128xf32>, vector<1x1xf32>, vector<1x1xf32>)  : i32 {
      %13 = arith.truncf %arg17 : vector<2x128xf32> to vector<2x128xbf16>
      %c0_13 = arith.constant 0 : index
      %c0_14 = arith.constant 0 : index
      %14 = vector.load %arg5[%c0_13, %c0_14] : memref<128x512xbf16, #tpu.memory_space<vmem>>, vector<128x512xbf16>
      %cst_15 = arith.constant dense<0.000000e+00> : vector<2x512xf32>
      %15 = tpu.matmul %13, %14, %cst_15 {dimension_numbers = #tpu.dot_dimension_numbers<[1], [0], [0], [1], [0, 0, 1, 1], [], []>} : vector<2x128xbf16>, vector<128x512xbf16>, vector<2x512xf32> -> vector<2x512xf32>
      %16 = arith.addf %arg19, %15 : vector<2x512xf32>
      %c0_16 = arith.constant 0 : index
      %c0_17 = arith.constant 0 : index
      %17 = vector.load %arg6[%c0_16, %c0_17] : memref<1x512xf32, #tpu.memory_space<vmem>>, vector<1x512xf32>
      %18 = vector.broadcast %17 : vector<1x512xf32> to vector<2x512xf32>
      %19 = arith.addf %16, %18 : vector<2x512xf32>
      %20 = vector.extract_strided_slice %19 {offsets = [0, 0], sizes = [2, 128], strides = [1, 1]} : vector<2x512xf32> to vector<2x128xf32>
      %21 = arith.negf %20 : vector<2x128xf32>
      %22 = math.exp %21 : vector<2x128xf32>
      %cst_18 = arith.constant 1.000000e+00 : f32
      %23 = vector.broadcast %cst_18 : f32 to vector<2x128xf32>
      %24 = arith.addf %23, %22 : vector<2x128xf32>
      %25 = arith.divf %23, %24 : vector<2x128xf32>
      %26 = vector.extract_strided_slice %19 {offsets = [0, 128], sizes = [2, 128], strides = [1, 1]} : vector<2x512xf32> to vector<2x128xf32>
      %27 = arith.negf %26 : vector<2x128xf32>
      %28 = math.exp %27 : vector<2x128xf32>
      %cst_19 = arith.constant 1.000000e+00 : f32
      %29 = vector.broadcast %cst_19 : f32 to vector<2x128xf32>
      %30 = arith.addf %29, %28 : vector<2x128xf32>
      %31 = arith.divf %29, %30 : vector<2x128xf32>
      %32 = vector.extract_strided_slice %19 {offsets = [0, 256], sizes = [2, 128], strides = [1, 1]} : vector<2x512xf32> to vector<2x128xf32>
      %33 = math.tanh %32 : vector<2x128xf32>
      %34 = vector.extract_strided_slice %19 {offsets = [0, 384], sizes = [2, 128], strides = [1, 1]} : vector<2x512xf32> to vector<2x128xf32>
      %35 = arith.negf %34 : vector<2x128xf32>
      %36 = math.exp %35 : vector<2x128xf32>
      %cst_20 = arith.constant 1.000000e+00 : f32
      %37 = vector.broadcast %cst_20 : f32 to vector<2x128xf32>
      %38 = arith.addf %37, %36 : vector<2x128xf32>
      %39 = arith.divf %37, %38 : vector<2x128xf32>
      %40 = arith.mulf %31, %arg18 : vector<2x128xf32>
      %41 = arith.mulf %25, %33 : vector<2x128xf32>
      %42 = arith.addf %40, %41 : vector<2x128xf32>
      %43 = math.tanh %42 : vector<2x128xf32>
      %44 = arith.mulf %39, %43 : vector<2x128xf32>
      %45 = arith.truncf %44 : vector<2x128xf32> to vector<2x128xbf16>
      %c0_21 = arith.constant 0 : index
      %c0_22 = arith.constant 0 : index
      %46 = vector.load %arg7[%c0_21, %c0_22] : memref<128x256xbf16, #tpu.memory_space<vmem>>, vector<128x256xbf16>
      %cst_23 = arith.constant dense<0.000000e+00> : vector<2x256xf32>
      %47 = tpu.matmul %45, %46, %cst_23 {dimension_numbers = #tpu.dot_dimension_numbers<[1], [0], [0], [1], [0, 0, 1, 1], [], []>} : vector<2x128xbf16>, vector<128x256xbf16>, vector<2x256xf32> -> vector<2x256xf32>
      %c0_24 = arith.constant 0 : index
      %c0_25 = arith.constant 0 : index
      %48 = vector.load %arg8[%c0_24, %c0_25] : memref<1x256xf32, #tpu.memory_space<vmem>>, vector<1x256xf32>
      %49 = vector.broadcast %48 : vector<1x256xf32> to vector<2x256xf32>
      %50 = arith.addf %47, %49 : vector<2x256xf32>
      %cst_26 = arith.constant 1.11111116 : f32
      %51 = vector.broadcast %cst_26 : f32 to vector<2x256xf32>
      %52 = arith.mulf %50, %51 : vector<2x256xf32>
      %cst_27 = arith.constant dense<0xFF800000> : vector<2xf32>
      %53 = vector.multi_reduction <maximumf>, %52, %cst_27 [1] : vector<2x256xf32> to vector<2xf32>
      %54 = vector.shape_cast %53 : vector<2xf32> to vector<2x1xf32>
      %55 = vector.broadcast %54 : vector<2x1xf32> to vector<2x256xf32>
      %56 = arith.subf %52, %55 : vector<2x256xf32>
      %57 = math.exp %56 : vector<2x256xf32>
      %cst_28 = arith.constant dense<0.000000e+00> : vector<2xf32>
      %58 = vector.multi_reduction <add>, %57, %cst_28 [1] : vector<2x256xf32> to vector<2xf32>
      %59 = vector.shape_cast %58 : vector<2xf32> to vector<2x1xf32>
      %60 = tpu.reciprocal %59 {approx = true} : vector<2x1xf32> -> vector<2x1xf32>
      %61 = vector.broadcast %60 : vector<2x1xf32> to vector<2x256xf32>
      %62 = arith.mulf %57, %61 : vector<2x256xf32>
      %63 = arith.index_cast %arg16 : i32 to index
      %c0_29 = arith.constant 0 : index
      %c0_30 = arith.constant 0 : index
      %64 = vector.load %arg3[%63, %c0_29, %c0_30] : memref<8x2x1xi32, #tpu.memory_space<vmem>>, vector<1x2x1xi32>
      %65 = vector.shape_cast %64 : vector<1x2x1xi32> to vector<2x1xi32>
      %66 = tpu.iota {dimensions = array<i32: 1>} : vector<2x256xi32>
      %67 = vector.broadcast %65 : vector<2x1xi32> to vector<2x256xi32>
      %68 = arith.cmpi eq, %66, %67 : vector<2x256xi32>
      %69 = arith.extui %68 : vector<2x256xi1> to vector<2x256xi32>
      %70 = arith.sitofp %69 : vector<2x256xi32> to vector<2x256xf32>
      %71 = arith.mulf %62, %70 : vector<2x256xf32>
      %cst_31 = arith.constant dense<0.000000e+00> : vector<2xf32>
      %72 = vector.multi_reduction <add>, %71, %cst_31 [1] : vector<2x256xf32> to vector<2xf32>
      %73 = vector.shape_cast %72 : vector<2xf32> to vector<2x1xf32>
      %c0_i32_32 = arith.constant 0 : i32
      %74 = vector.broadcast %c0_i32_32 : i32 to vector<2x1xi32>
      %75 = arith.cmpi ne, %65, %74 : vector<2x1xi32>
      %76 = arith.extui %75 : vector<2x1xi1> to vector<2x1xi32>
      %77 = arith.sitofp %76 : vector<2x1xi32> to vector<2x1xf32>
      %cst_33 = arith.constant 9.99999982E-15 : f32
      %78 = vector.broadcast %cst_33 : f32 to vector<2x1xf32>
      %79 = arith.addf %73, %78 : vector<2x1xf32>
      %80 = math.log %79 : vector<2x1xf32>
      %81 = arith.mulf %80, %77 : vector<2x1xf32>
      %82 = vector.shape_cast %81 : vector<2x1xf32> to vector<1x2x1xf32>
      %cst_34 = arith.constant dense<0.000000e+00> : vector<1xf32>
      %83 = vector.multi_reduction <add>, %82, %cst_34 [1, 2] : vector<1x2x1xf32> to vector<1xf32>
      %84 = vector.shape_cast %83 : vector<1xf32> to vector<1x1x1xf32>
      %85 = vector.extract %84[0, 0, 0] : f32 from vector<1x1x1xf32>
      %cst_35 = arith.constant 0.000000e+00 : f32
      %86 = arith.subf %cst_35, %85 : f32
      %87 = vector.broadcast %86 : f32 to vector<1x1xf32>
      %88 = vector.shape_cast %77 : vector<2x1xf32> to vector<1x2x1xf32>
      %cst_36 = arith.constant dense<0.000000e+00> : vector<1xf32>
      %89 = vector.multi_reduction <add>, %88, %cst_36 [1, 2] : vector<1x2x1xf32> to vector<1xf32>
      %90 = vector.shape_cast %89 : vector<1xf32> to vector<1x1x1xf32>
      %91 = vector.extract %90[0, 0, 0] : f32 from vector<1x1x1xf32>
      %92 = vector.broadcast %91 : f32 to vector<1x1xf32>
      %cst_37 = arith.constant dense<0xFF800000> : vector<2xf32>
      %93 = vector.multi_reduction <maximumf>, %50, %cst_37 [1] : vector<2x256xf32> to vector<2xf32>
      %94 = vector.shape_cast %93 : vector<2xf32> to vector<2x1xf32>
      %95 = tpu.iota {dimensions = array<i32: 1>} : vector<2x256xi32>
      %96 = vector.broadcast %94 : vector<2x1xf32> to vector<2x256xf32>
      %97 = arith.cmpf oge, %50, %96 : vector<2x256xf32>
      %c256_i32 = arith.constant 256 : i32
      %98 = vector.broadcast %c256_i32 : i32 to vector<2x256xi32>
      %99 = arith.select %97, %95, %98 : vector<2x256xi1>, vector<2x256xi32>
      %cst_38 = arith.constant dense<2147483647> : vector<2xi32>
      %100 = vector.multi_reduction <minsi>, %99, %cst_38 [1] : vector<2x256xi32> to vector<2xi32>
      %101 = vector.shape_cast %100 : vector<2xi32> to vector<2x1xi32>
      %102 = vector.broadcast %101 : vector<2x1xi32> to vector<2x256xi32>
      %103 = arith.cmpi eq, %95, %102 : vector<2x256xi32>
      %104 = arith.extui %103 : vector<2x256xi1> to vector<2x256xi32>
      %105 = arith.sitofp %104 : vector<2x256xi32> to vector<2x256xf32>
      %106 = arith.index_cast %arg16 : i32 to index
      %c0_39 = arith.constant 0 : index
      %c0_40 = arith.constant 0 : index
      %107 = vector.load %arg12[%106, %c0_39, %c0_40] : memref<8x2x1xi32, #tpu.memory_space<vmem>>, vector<1x2x1xi32>
      %108 = vector.shape_cast %107 : vector<1x2x1xi32> to vector<2x1xi32>
      %109 = vector.shape_cast %101 : vector<2x1xi32> to vector<1x2x1xi32>
      tpu.vector_store %arg12[%106, %c0_39, %c0_40], %109 {strides = array<i32>} : memref<8x2x1xi32, #tpu.memory_space<vmem>>, vector<1x2x1xi32>,
      %110 = arith.truncf %105 : vector<2x256xf32> to vector<2x256xbf16>
      %c0_41 = arith.constant 0 : index
      %c0_42 = arith.constant 0 : index
      %111 = vector.load %arg4[%c0_41, %c0_42] : memref<256x512xbf16, #tpu.memory_space<vmem>>, vector<256x512xbf16>
      %cst_43 = arith.constant dense<0.000000e+00> : vector<2x512xf32>
      %112 = tpu.matmul %110, %111, %cst_43 {dimension_numbers = #tpu.dot_dimension_numbers<[1], [0], [0], [1], [0, 0, 1, 1], [], []>} : vector<2x256xbf16>, vector<256x512xbf16>, vector<2x512xf32> -> vector<2x512xf32>
      %113 = arith.truncf %62 : vector<2x256xf32> to vector<2x256xbf16>
      %c0_44 = arith.constant 0 : index
      %c0_45 = arith.constant 0 : index
      %114 = vector.load %arg9[%c0_44, %c0_45] : memref<256x512xbf16, #tpu.memory_space<vmem>>, vector<256x512xbf16>
      %cst_46 = arith.constant dense<0.000000e+00> : vector<2x512xf32>
      %115 = tpu.matmul %113, %114, %cst_46 {dimension_numbers = #tpu.dot_dimension_numbers<[1], [0], [0], [1], [0, 0, 1, 1], [], []>} : vector<2x256xbf16>, vector<256x512xbf16>, vector<2x512xf32> -> vector<2x512xf32>
      %116 = arith.truncf %arg20 : vector<2x128xf32> to vector<2x128xbf16>
      %c0_47 = arith.constant 0 : index
      %c0_48 = arith.constant 0 : index
      %117 = vector.load %arg10[%c0_47, %c0_48] : memref<128x512xbf16, #tpu.memory_space<vmem>>, vector<128x512xbf16>
      %cst_49 = arith.constant dense<0.000000e+00> : vector<2x512xf32>
      %118 = tpu.matmul %116, %117, %cst_49 {dimension_numbers = #tpu.dot_dimension_numbers<[1], [0], [0], [1], [0, 0, 1, 1], [], []>} : vector<2x128xbf16>, vector<128x512xbf16>, vector<2x512xf32> -> vector<2x512xf32>
      %119 = arith.addf %115, %118 : vector<2x512xf32>
      %c0_50 = arith.constant 0 : index
      %c0_51 = arith.constant 0 : index
      %120 = vector.load %arg11[%c0_50, %c0_51] : memref<1x512xf32, #tpu.memory_space<vmem>>, vector<1x512xf32>
      %121 = vector.broadcast %120 : vector<1x512xf32> to vector<2x512xf32>
      %122 = arith.addf %119, %121 : vector<2x512xf32>
      %123 = vector.extract_strided_slice %122 {offsets = [0, 0], sizes = [2, 128], strides = [1, 1]} : vector<2x512xf32> to vector<2x128xf32>
      %124 = arith.negf %123 : vector<2x128xf32>
      %125 = math.exp %124 : vector<2x128xf32>
      %cst_52 = arith.constant 1.000000e+00 : f32
      %126 = vector.broadcast %cst_52 : f32 to vector<2x128xf32>
      %127 = arith.addf %126, %125 : vector<2x128xf32>
      %128 = arith.divf %126, %127 : vector<2x128xf32>
      %129 = vector.extract_strided_slice %122 {offsets = [0, 128], sizes = [2, 128], strides = [1, 1]} : vector<2x512xf32> to vector<2x128xf32>
      %130 = arith.negf %129 : vector<2x128xf32>
      %131 = math.exp %130 : vector<2x128xf32>
      %cst_53 = arith.constant 1.000000e+00 : f32
      %132 = vector.broadcast %cst_53 : f32 to vector<2x128xf32>
      %133 = arith.addf %132, %131 : vector<2x128xf32>
      %134 = arith.divf %132, %133 : vector<2x128xf32>
      %135 = vector.extract_strided_slice %122 {offsets = [0, 256], sizes = [2, 128], strides = [1, 1]} : vector<2x512xf32> to vector<2x128xf32>
      %136 = math.tanh %135 : vector<2x128xf32>
      %137 = vector.extract_strided_slice %122 {offsets = [0, 384], sizes = [2, 128], strides = [1, 1]} : vector<2x512xf32> to vector<2x128xf32>
      %138 = arith.negf %137 : vector<2x128xf32>
      %139 = math.exp %138 : vector<2x128xf32>
      %cst_54 = arith.constant 1.000000e+00 : f32
      %140 = vector.broadcast %cst_54 : f32 to vector<2x128xf32>
      %141 = arith.addf %140, %139 : vector<2x128xf32>
      %142 = arith.divf %140, %141 : vector<2x128xf32>
      %143 = arith.mulf %134, %arg21 : vector<2x128xf32>
      %144 = arith.mulf %128, %136 : vector<2x128xf32>
      %145 = arith.addf %143, %144 : vector<2x128xf32>
      %146 = math.tanh %145 : vector<2x128xf32>
      %147 = arith.mulf %142, %146 : vector<2x128xf32>
      %148 = arith.addf %arg22, %87 : vector<1x1xf32>
      %149 = arith.addf %arg23, %92 : vector<1x1xf32>
      scf.yield %44, %42, %112, %147, %145, %148, %149 : vector<2x128xf32>, vector<2x128xf32>, vector<2x512xf32>, vector<2x128xf32>, vector<2x128xf32>, vector<1x1xf32>, vector<1x1xf32>
    }
    %c8_i32_6 = arith.constant 8 : i32
    %c0_7 = arith.constant 0 : index
    %c0_8 = arith.constant 0 : index
    %9 = vector.load %arg13[%c0_7, %c0_8] : memref<2x128xf32, #tpu.memory_space<vmem>>, vector<2x128xf32>
    tpu.vector_store %arg13[%c0_7, %c0_8], %8#3 {strides = array<i32>} : memref<2x128xf32, #tpu.memory_space<vmem>>, vector<2x128xf32>,
    %c0_9 = arith.constant 0 : index
    %c0_10 = arith.constant 0 : index
    %10 = vector.load %arg14[%c0_9, %c0_10] : memref<2x128xf32, #tpu.memory_space<vmem>>, vector<2x128xf32>
    tpu.vector_store %arg14[%c0_9, %c0_10], %8#4 {strides = array<i32>} : memref<2x128xf32, #tpu.memory_space<vmem>>, vector<2x128xf32>,
    %11 = tpu.concatenate %8#5, %8#6 in 1 : vector<1x1xf32>, vector<1x1xf32> -> vector<1x2xf32>
    %c0_11 = arith.constant 0 : index
    %c0_12 = arith.constant 0 : index
    %12 = vector.load %arg15[%c0_11, %c0_12] : memref<1x2xf32, #tpu.memory_space<vmem>>, vector<1x2xf32>
    tpu.vector_store %arg15[%c0_11, %c0_12], %11 {strides = array<i32>} : memref<1x2xf32, #tpu.memory_space<vmem>>, vector<1x2xf32>,
    return
  }
}

</mosaic_0001>

<bundles_post_ra>
// kernel: mul.6
= control target key start
LH: loop header
LB: loop body
LE: loop exit
PB: predicated region body
PF: predicated region fallthrough
CT: control target
= control target key end

     0   :  { %s34_s0 = inlined_call_operand.vmem [shape: f32[2,128], index: 0, kind: input, shape index: {}, may-alias: {0,1}]   ;;  %s35_s1 = inlined_call_operand.vmem [shape: f32[2,128], index: 1, kind: input, shape index: {}, may-alias: {0,1}]   ;;  %s36_s2 = inlined_call_operand.vmem [shape: f32[2,128], index: 2, kind: output, shape index: {}]  }
   0x1   :  { %v3_v0 = vld [vmem:[%s34_s0] sm:$0x3] }
   0x2   :  { %v4_v1 = vld [vmem:[%s35_s1] sm:$0x3] }
   0x3   :  { %v7_v2 = vmul.f32 %v4_v1, %v3_v0 }
   0x5   :  { %9 = vst [vmem:[%s36_s2] sm:$0x3] %v7_v2 }

// kernel: _lambda_.3
= control target key start
LH: loop header
LB: loop body
LE: loop exit
PB: predicated region body
PF: predicated region fallthrough
CT: control target
= control target key end

     0   :  { %s1249_s0 = inlined_call_operand.vmem [shape: s32[8,8], index: 0, kind: input, shape index: {}]   ;;  %s1250_s1 = inlined_call_operand.hbm [shape: f32[256,512], index: 1, kind: input, shape index: {}]   ;;  %s1251_s2 = inlined_call_operand.hbm [shape: bf16[128,512], index: 2, kind: input, shape index: {}]   ;;  %s1252_s3 = inlined_call_operand.vmem [shape: f32[1,512], index: 3, kind: input, shape index: {}]   ;;  %s1253_s4 = inlined_call_operand.vmem [shape: f32[8,128], index: 4, kind: output, shape index: {0}]   ;;  %s1254_s5 = inlined_call_operand.vmem [shape: f32[8,128], index: 5, kind: output, shape index: {1}]  }
   0x1   :  { %s11_s20 = sshll.u32 %s1249_s0, 4  ;;  %s12_s20 = int_to_ptr.vmem [resolvable:$true] %s11_s20 }
   0x2   :  { %s946_s21 = scalar_lea.vmem %s12_s20, 128  ;;  %p951_p1 = scmp.lt.s32.totalorder %s12_s20, %s12_s20 }
   0x3   :  { %p947_p0 = scmp.ne.s32.totalorder %s12_s20, %s946_s21  ;;  %p952_p2 = scmp.lt.s32.totalorder %s946_s21, %s946_s21 }
   0x5   :  { %p953_p3 = por %p952_p2, %p951_p1 }
   0x7   :  { %p954_p4 = pnand %p953_p3, %p947_p0 }
   0x9   :  { %957 = shalt.err (!%p954_p4)  }
   0xa   :  { %s1032_s22 = smov [#allocation3]  }
   0xb   :  { %14 = dma.vmem_to_smem %s12_s20, 128, %s1032_s22, [#allocation2] }
   0xc   :  { %1014 = dma.done.wait [#allocation2], 128 }
   0xd   :  { %1015 = vsyncadd [#allocation2], 4294967168 }
   0xe   :  { %16 = sfence }
   0xf   :  { %17 = vsyncpa [#allocation5], 0 }
  0x10   :  { %18 = vsyncpa [#allocation7], 0  ;;  %s1033_s23 = smov [#allocation4]   ;;  %s958_s26 = scalar_lea.hbm %s1250_s1, 16384 }
  0x11   :  { %s24_s24 = sshll.u32 %s1033_s23, 4  ;;  %p959_p5 = scmp.ne.s32.totalorder %s1250_s1, %s958_s26  ;;  %s25_s24 = int_to_ptr.vmem [resolvable:$true] %s24_s24 }
  0x12   :  { %p962_p6 = scmp.lt.u32.totalorder %s958_s26, %s1250_s1 }
  0x14   :  { %p964_p7 = pnand %p962_p6, %p959_p5 }
  0x16   :  { %967 = shalt.err (!%p964_p7)
}
  0x17   :  { %s968_s6 = scalar_lea.vmem %s25_s24, 16384  ;;  %p973_p9 = scmp.lt.s32.totalorder %s25_s24, %s25_s24 }
  0x18   :  { %p969_p8 = scmp.ne.s32.totalorder %s25_s24, %s968_s6  ;;  %p974_p10 = scmp.lt.s32.totalorder %s968_s6, %s968_s6 }
  0x1a   :  { %p975_p11 = por %p974_p10, %p973_p9 }
  0x1c   :  { %p976_p12 = pnand %p975_p11, %p969_p8 }
  0x1e   :  { %979 = shalt.err (!%p976_p12)
}
  0x1f   :  { %s1034_s7 = smov 512   ;;  %s1035_s8 = smov 32  }
  0x20   :  { %30 = dma.hbm_to_vmem [thread:$0]  %s1250_s1, 16384, %s25_s24, [#allocation5], %s1034_s7, %s1034_s7, %s1035_s8  }
  0x21   :  { %s1036_s11 = smov [#allocation6]   ;;  %s980_s15 = scalar_lea.hbm %s1251_s2, 4096 }
  0x22   :  { %s36_s12 = sshll.u32 %s1036_s11, 4  ;;  %p981_p13 = scmp.ne.s32.totalorder %s1251_s2, %s980_s15  ;;  %s37_s12 = int_to_ptr.vmem [resolvable:$true] %s36_s12 }
  0x23   :  { %p984_p0 = scmp.lt.u32.totalorder %s980_s15, %s1251_s2 }
  0x25   :  { %p986_p1 = pnand %p984_p0, %p981_p13 }
  0x27   :  { %989 = shalt.err (!%p986_p1)
}
  0x28   :  { %s990_s20 = scalar_lea.vmem %s37_s12, 4096  ;;  %p995_p3 = scmp.lt.s32.totalorder %s37_s12, %s37_s12 }
  0x29   :  { %p991_p2 = scmp.ne.s32.totalorder %s37_s12, %s990_s20  ;;  %p996_p4 = scmp.lt.s32.totalorder %s990_s20, %s990_s20 }
  0x2b   :  { %p997_p5 = por %p996_p4, %p995_p3 }
  0x2d   :  { %p998_p6 = pnand %p997_p5, %p991_p2 }
  0x2f   :  { %1001 = shalt.err (!%p998_p6)
}
  0x30   :  { %s1037_s1 = smov 256   ;;  %s1038_s21 = smov 16  }
  0x31   :  { %42 = dma.hbm_to_vmem [thread:$0]  %s1251_s2, 4096, %s37_s12, [#allocation7], %s1037_s1, %s1037_s1, %s1038_s21  }
  0x32   :  { %1016 = dma.done.wait [#allocation5], 16384  }
  0x33   :  { %1017 = vsyncadd [#allocation5], 4294950912 }
  0x34   :  { %1018 = dma.done.wait [#allocation7], 4096  }
  0x35   :  { %1019 = vsyncadd [#allocation7], 4294963200  ;;  %v1097_v0 = vmov 0.0   ;;  %v1099_v1 = vmov 0.0   ;;  %s1101_s24 = smov 0  }
  0x36 LB: > { %v882_v2 = vld [vmem:[#allocation6 + $0x4] ss:$16 sps:$4 sm:$0xff]   ;;  %v884_v3 = vld [vmem:[#allocation6] ss:$16 sps:$4 sm:$0xff]   ;;  %v1039_v4 = vmov 0   ;;  %v407_v34 = vpack.c.bf16 %v1026_v1, %v1026_v1  ;;  %s1115_s2 = sshll.u32 %s1030_s24, 7  ;;  %v205_v36 = vlaneseq  ;;  %s1030_s24 = sphi %s1101_s24, %s58_s24   ;;  %v1026_v1 = vphi %v1099_v1, %v1256_v1   ;;  %v1022_v0 = vphi %v1097_v0, %v1255_v0  }
  0x37   : > { %632 = vmatprep.mubr.bf16.mxu0 %v1039_v4  ;;  %673 = vmatprep.mubr.bf16.mxu1 %v1039_v4  ;;  %v885_v5 = vld [vmem:[#allocation6 + $0x24] ss:$16 sps:$4 sm:$0xff]   ;;  %v887_v6 = vld [vmem:[#allocation6 + $0x20] ss:$16 sps:$4 sm:$0xff]   ;;  %v893_v8 = vld [vmem:[#allocation6 + $0xc] ss:$16 sps:$4 sm:$0xff]  }
  0x38   : > { %600 = vmatprep.subr.bf16.mxu0 %v882_v2  ;;  %v888_v7 = vld [vmem:[#allocation6 + $0x44] ss:$16 sps:$4 sm:$0xff]   ;;  %v896_v9 = vld [vmem:[#allocation6 + $0x8] ss:$16 sps:$4 sm:$0xff]   ;;  %v890_v10 = vld [vmem:[#allocation6 + $0x40] ss:$16 sps:$4 sm:$0xff]   ;;  %641 = vmatprep.subr.bf16.mxu1 %v893_v8 }
  0x39   : > { %601 = vmatpush1.bf16.msra.mxu0 %v884_v3  ;;  %v891_v11 = vld [vmem:[#allocation6 + $0x64] ss:$16 sps:$4 sm:$0xff]   ;;  %642 = vmatpush1.bf16.msra.mxu1 %v896_v9  ;;  %v899_v12 = vld [vmem:[#allocation6 + $0x2c] ss:$16 sps:$4 sm:$0xff]   ;;  %v902_v13 = vld [vmem:[#allocation6 + $0x28] ss:$16 sps:$4 sm:$0xff]  }
  0x3a   : > { %602 = vmatprep.subr.bf16.mxu0 %v885_v5  ;;  %643 = vmatprep.subr.bf16.mxu1 %v899_v12  ;;  %v895_v14 = vld [vmem:[#allocation6 + $0x60] ss:$16 sps:$4 sm:$0xff]   ;;  %v897_v15 = vld [vmem:[#allocation6 + $0x84] ss:$16 sps:$4 sm:$0xff]   ;;  %v905_v16 = vld [vmem:[#allocation6 + $0x4c] ss:$16 sps:$4 sm:$0xff]  }
  0x3b   : > { %v908_v17 = vld [vmem:[#allocation6 + $0x48] ss:$16 sps:$4 sm:$0xff]   ;;  %v911_v18 = vld [vmem:[#allocation6 + $0x6c] ss:$16 sps:$4 sm:$0xff]   ;;  %v901_v19 = vld [vmem:[#allocation6 + $0x80] ss:$16 sps:$4 sm:$0xff]  }
  0x3c   : > { %v903_v20 = vld [vmem:[#allocation6 + $0xa4] ss:$16 sps:$4 sm:$0xff]   ;;  %v914_v21 = vld [vmem:[#allocation6 + $0x68] ss:$16 sps:$4 sm:$0xff]   ;;  %v917_v22 = vld [vmem:[#allocation6 + $0x8c] ss:$16 sps:$4 sm:$0xff]  }
  0x3d   : > { %603 = vmatpush1.bf16.msra.mxu0 %v887_v6  ;;  %644 = vmatpush1.bf16.msra.mxu1 %v902_v13  ;;  %v907_v23 = vld [vmem:[#allocation6 + $0xa0] ss:$16 sps:$4 sm:$0xff]   ;;  %v909_v24 = vld [vmem:[#allocation6 + $0xc4] ss:$16 sps:$4 sm:$0xff]   ;;  %v920_v25 = vld [vmem:[#allocation6 + $0x88] ss:$16 sps:$4 sm:$0xff]  }
  0x3e   : > { %604 = vmatprep.subr.bf16.mxu0 %v888_v7  ;;  %645 = vmatprep.subr.bf16.mxu1 %v905_v16  ;;  %v921_v26 = vld [vmem:[#allocation6 + $0xac] ss:$16 sps:$4 sm:$0xff]   ;;  %v913_v27 = vld [vmem:[#allocation6 + $0xc0] ss:$16 sps:$4 sm:$0xff]   ;;  %v915_v28 = vld [vmem:[#allocation6 + $0xe4] ss:$16 sps:$4 sm:$0xff]  }
  0x3f   : > { %v923_v29 = vld [vmem:[#allocation6 + $0xa8] ss:$16 sps:$4 sm:$0xff]   ;;  %v924_v30 = vld [vmem:[#allocation6 + $0xcc] ss:$16 sps:$4 sm:$0xff]   ;;  %v919_v31 = vld [vmem:[#allocation6 + $0xe0] ss:$16 sps:$4 sm:$0xff]  }
  0x40   : > { %v926_v32 = vld [vmem:[#allocation6 + $0xc8] ss:$16 sps:$4 sm:$0xff]   ;;  %v927_v33 = vld [vmem:[#allocation6 + $0xec] ss:$16 sps:$4 sm:$0xff]   ;;  %s68_s25 = sld [smem:[#allocation3 + %s1115_s2]]  ;;  %s85_s0 = sadd.s32 1, %s1115_s2 }
  0x41   : > { %605 = vmatpush1.bf16.msra.mxu0 %v890_v10  ;;  %646 = vmatpush1.bf16.msra.mxu1 %v908_v17  ;;  %v929_v35 = vld [vmem:[#allocation6 + $0xe8] ss:$16 sps:$4 sm:$0xff]   ;;  %s103_s26 = sadd.s32 2, %s1115_s2  ;;  %s86_s27 = sld [smem:[#allocation3 + %s85_s0]]  ;;  %v206_v37 = vshrl.u32 %v205_v36, 7  ;;  %vm372_vm0 = vcmask 1040384  }
  0x42   : > { %606 = vmatprep.subr.bf16.mxu0 %v891_v11  ;;  %647 = vmatprep.subr.bf16.mxu1 %v911_v18  ;;  %s104_s28 = sld [smem:[#allocation3 + %s103_s26]]  ;;  %s121_s29 = sadd.s32 3, %s1115_s2  ;;  %vm377_vm1 = vcmask 1041408   ;;  %vm382_vm2 = vcmask 1042432   ;;  %vm387_vm3 = vcmask 1043456   ;;  %vm392_vm4 = vcmask 1044480  }
  0x43   : > { %s1121_s6 = sld [smem:[#allocation3 + %s121_s29]]  ;;  %s139_s7 = sadd.s32 4, %s1115_s2  ;;  %v1141_v39 = vsub.s32 0, %v206_v37  ;;  %v1144_v41 = vsub.s32 1, %v206_v37  ;;  %v1159_v47 = vsub.s32 3, %v206_v37  ;;  %v1168_v53 = vsub.s32 2, %v206_v37 }
  0x44   : > { %s157_s10 = sadd.s32 5, %s1115_s2  ;;  %s1125_s12 = sld [smem:[#allocation3 + %s139_s7]]  ;;  %vm397_vm5 = vcmask 1045504   ;;  %vm402_vm6 = vcmask 1046528  }
  0x45   : > { %607 = vmatpush1.bf16.msra.mxu0 %v895_v14  ;;  %648 = vmatpush1.bf16.msra.mxu1 %v914_v21  ;;  %s1127_s16 = sld [smem:[#allocation3 + %s157_s10]]  ;;  %s175_s18 = sadd.s32 6, %s1115_s2 }
  0x46   : > { %608 = vmatprep.subr.bf16.mxu0 %v897_v15  ;;  %649 = vmatprep.subr.bf16.mxu1 %v917_v22  ;;  %s69_s30 = sshra.s32 %s68_s25, 3  ;;  %s72_s8 = sand.u32 7, %s68_s25 }
  0x47   : > { %s842_s9 = sshll.u32 %s69_s30, 5  ;;  %s87_s11 = sshra.s32 %s86_s27, 3 }
  0x48   : > { %s75_s13 = sadd.s32 %s842_s9, %s72_s8  ;;  %s105_s14 = sshra.s32 %s104_s28, 3 }
  0x49   : > { %609 = vmatpush1.bf16.msra.mxu0 %v901_v19  ;;  %650 = vmatpush1.bf16.msra.mxu1 %v920_v25  ;;  %s90_s15 = sand.u32 7, %s86_s27  ;;  %s843_s17 = sshll.u32 %s87_s11, 5 }
  0x4a   : > { %610 = vmatprep.subr.bf16.mxu0 %v903_v20  ;;  %651 = vmatprep.subr.bf16.mxu1 %v921_v26  ;;  %s108_s19 = sand.u32 7, %s104_s28  ;;  %s844_s20 = sshll.u32 %s105_s14, 5 }
  0x4b   : > { %s123_s1 = sshra.s32 %s1121_s6, 3  ;;  %s93_s21 = sadd.s32 %s843_s17, %s90_s15 }
  0x4c   : > { %s1131_s22 = sld [smem:[#allocation3 + %s175_s18]]  ;;  %s111_s23 = sadd.s32 %s844_s20, %s108_s19 }
  0x4d   : > { %611 = vmatpush1.bf16.msra.mxu0 %v907_v23  ;;  %652 = vmatpush1.bf16.msra.mxu1 %v923_v29  ;;  %s193_s25 = sadd.s32 7, %s1115_s2  ;;  %s126_s0 = sand.u32 7, %s1121_s6 }
  0x4e   : > { %612 = vmatprep.subr.bf16.mxu0 %v909_v24  ;;  %653 = vmatprep.subr.bf16.mxu1 %v924_v30  ;;  %s845_s26 = sshll.u32 %s123_s1, 5  ;;  %s141_s27 = sshra.s32 %s1125_s12, 3 }
  0x4f   : > { %s159_s29 = sshra.s32 %s1127_s16, 3  ;;  %s1137_s30 = sld [smem:[#allocation3 + %s193_s25]] }
  0x50   : > { %s76_s7 = scalar_lea.vmem [#allocation4], %s75_s13  ;;  %s129_s28 = sadd.s32 %s845_s26, %s126_s0 }
  0x51   : > { %613 = vmatpush1.bf16.msra.mxu0 %v913_v27  ;;  %654 = vmatpush1.bf16.msra.mxu1 %v926_v32  ;;  %v1139_v38 = vld [vmem:[%s76_s7] ss:$8 sm:$0xf]  ;;  %s94_s8 = scalar_lea.vmem [#allocation4], %s93_s21  ;;  %s144_s9 = sand.u32 7, %s1125_s12 }
  0x52   : > { %614 = vmatprep.subr.bf16.mxu0 %v915_v28  ;;  %655 = vmatprep.subr.bf16.mxu1 %v927_v33  ;;  %v95_v40 = vld [vmem:[%s94_s8] ss:$8 sm:$0xf]  ;;  %s846_s2 = sshll.u32 %s141_s27, 5  ;;  %s162_s6 = sand.u32 7, %s1127_s16  ;;  %v208_v43 = vrot.slane %v1139_v38, %v1141_v39  ;;  %v212_v45 = vrot.slane %v1139_v38, %v1144_v41  ;;  %v220_v56 = vrot.slane %v1139_v38, %v1159_v47 }
  0x53   : > { %s847_s10 = sshll.u32 %s159_s29, 5  ;;  %s177_s11 = sshra.s32 %s1131_s22, 3  ;;  %v229_v44 = vrot.slane %v95_v40, %v1141_v39  ;;  %v233_v46 = vrot.slane %v95_v40, %v1144_v41  ;;  %v241_v57 = vrot.slane %v95_v40, %v1159_v47  ;;  %v216_v63 = vrot.slane %v1139_v38, %v1168_v53  ;;  %v686_v32 = vld [vmem:[%s1252_s3] sm:$0xf] }
  0x54   : > { %s112_s14 = scalar_lea.vmem [#allocation4], %s111_s23  ;;  %s147_s13 = sadd.s32 %s846_s2, %s144_s9  ;;  %v237_v1 = vrot.slane %v95_v40, %v1168_v53  ;;  %v691_v40 = vrot.slane %v686_v32, %v1141_v39 }
  0x55   : > { %615 = vmatpush1.bf16.msra.mxu0 %v919_v31  ;;  %656 = vmatpush1.bf16.msra.mxu1 %v929_v35  ;;  %v1148_v42 = vld [vmem:[%s112_s14] ss:$8 sm:$0xf]  ;;  %s1153_s15 = sadd.s32 %s847_s10, %s162_s6  ;;  %s180_s12 = sand.u32 7, %s1131_s22  ;;  %v373_v50 = vsel %vm372_vm0, %v208_v43, %v229_v44  ;;  %v374_v52 = vsel %vm372_vm0, %v212_v45, %v233_v46  ;;  %v376_v5 = vsel %vm372_vm0, %v220_v56, %v241_v57 }
  0x56   : > { %s848_s16 = sshll.u32 %s177_s11, 5  ;;  %s130_s17 = scalar_lea.vmem [#allocation4], %s129_s28  ;;  %v250_v49 = vrot.slane %v1148_v42, %v1141_v39  ;;  %v254_v51 = vrot.slane %v1148_v42, %v1144_v41  ;;  %v262_v2 = vrot.slane %v1148_v42, %v1159_v47  ;;  %v258_v9 = vrot.slane %v1148_v42, %v1168_v53 }
  0x57   : > { %v131_v48 = vld [vmem:[%s130_s17] ss:$8 sm:$0xf]  ;;  %s195_s18 = sshra.s32 %s1137_s30, 3  ;;  %s183_s19 = sadd.s32 %s848_s16, %s180_s12  ;;  %v375_v13 = vsel %vm372_vm0, %v216_v63, %v237_v1  ;;  %v695_v44 = vrot.slane %v686_v32, %v1144_v41 }
  0x58   : > { %633 = vmatmul.mubr.bf16.vlgmr.msra.gmra.mrb[0].mxu0 %v407_v34  ;;  %674 = vmatmul.mubr.bf16.vlgmr.msra.gmra.mrb[0].mxu1 %v407_v34  ;;  %s148_s20 = scalar_lea.vmem [#allocation4], %s147_s13  ;;  %s198_s1 = sand.u32 7, %s1137_s30  ;;  %v271_v55 = vrot.slane %v131_v48, %v1141_v39  ;;  %v378_v58 = vsel %vm377_vm1, %v373_v50, %v250_v49  ;;  %v275_v59 = vrot.slane %v131_v48, %v1144_v41 }
  0x59   : > { %v149_v54 = vld [vmem:[%s148_s20] ss:$8 sm:$0xf]  ;;  %s849_s21 = sshll.u32 %s195_s18, 5  ;;  %v379_v60 = vsel %vm377_vm1, %v374_v52, %v254_v51  ;;  %s166_s22 = scalar_lea.vmem [#allocation4], %s1153_s15  ;;  %v283_v10 = vrot.slane %v131_v48, %v1159_v47  ;;  %v381_v14 = vsel %vm377_vm1, %v376_v5, %v262_v2  ;;  %v279_v18 = vrot.slane %v131_v48, %v1168_v53 }
  0x5a   : > { %v167_v61 = vld [vmem:[%s166_s22] ss:$8 sm:$0xf]  ;;  %s201_s23 = sadd.s32 %s849_s21, %s198_s1  ;;  %v292_v62 = vrot.slane %v149_v54, %v1141_v39  ;;  %v383_v3 = vsel %vm382_vm2, %v378_v58, %v271_v55  ;;  %v296_v4 = vrot.slane %v149_v54, %v1144_v41  ;;  %v384_v6 = vsel %vm382_vm2, %v379_v60, %v275_v59  ;;  %s184_s25 = scalar_lea.vmem [#allocation4], %s183_s19 }
  0x5b   : > { %v185_v7 = vld [vmem:[%s184_s25] ss:$8 sm:$0xf]  ;;  %v313_v8 = vrot.slane %v167_v61, %v1141_v39  ;;  %v317_v12 = vrot.slane %v167_v61, %v1144_v41  ;;  %s202_s0 = scalar_lea.vmem [#allocation4], %s201_s23  ;;  %v304_v19 = vrot.slane %v149_v54, %v1159_v47  ;;  %v380_v22 = vsel %vm377_vm1, %v375_v13, %v258_v9  ;;  %s58_s24 = sadd.s32 1, %s1030_s24  }
  0x5c   : > { %v388_v11 = vsel %vm387_vm3, %v383_v3, %v292_v62  ;;  %v389_v15 = vsel %vm387_vm3, %v384_v6, %v296_v4  ;;  %v203_v16 = vld [vmem:[%s202_s0] ss:$8 sm:$0xf]  ;;  %v334_v17 = vrot.slane %v185_v7, %v1141_v39  ;;  %v338_v21 = vrot.slane %v185_v7, %v1144_v41  ;;  %p55_p7 = scmp.ge.s32.totalorder %s58_s24, 8  }
  0x5d   : > { %v393_v20 = vsel %vm392_vm4, %v388_v11, %v313_v8  ;;  %v386_v23 = vsel %vm382_vm2, %v381_v14, %v283_v10  ;;  %v394_v24 = vsel %vm392_vm4, %v389_v15, %v317_v12  ;;  %v355_v25 = vrot.slane %v203_v16, %v1141_v39 }
  0x5e   : > { %v300_v26 = vrot.slane %v149_v54, %v1168_v53  ;;  %v325_v27 = vrot.slane %v167_v61, %v1159_v47  ;;  %v398_v28 = vsel %vm397_vm5, %v393_v20, %v334_v17  ;;  %v359_v29 = vrot.slane %v203_v16, %v1144_v41 }
  0x5f   : > { %v385_v30 = vsel %vm382_vm2, %v380_v22, %v279_v18  ;;  %v391_v31 = vsel %vm387_vm3, %v386_v23, %v304_v19  ;;  %v399_v33 = vsel %vm397_vm5, %v394_v24, %v338_v21  ;;  %v321_v34 = vrot.slane %v167_v61, %v1168_v53 }
  0x60   : > { %v346_v35 = vrot.slane %v185_v7, %v1159_v47  ;;  %v403_v36 = vsel %vm402_vm6, %v398_v28, %v355_v25  ;;  %v390_v37 = vsel %vm387_vm3, %v385_v30, %v300_v26  ;;  %v396_v38 = vsel %vm392_vm4, %v391_v31, %v325_v27 }
  0x61   : > { %v404_v42 = vsel %vm402_vm6, %v399_v33, %v359_v29  ;;  %v342_v45 = vrot.slane %v185_v7, %v1168_v53  ;;  %v367_v46 = vrot.slane %v203_v16, %v1159_v47  ;;  %v395_v50 = vsel %vm392_vm4, %v390_v37, %v321_v34 }
  0x62   : > { %v401_v51 = vsel %vm397_vm5, %v396_v38, %v346_v35  ;;  %v363_v39 = vrot.slane %v203_v16, %v1168_v53  ;;  %v703_v61 = vrot.slane %v686_v32, %v1159_v47  ;;  %v699_v7 = vrot.slane %v686_v32, %v1168_v53 }
  0x63   : > { %v400_v58 = vsel %vm397_vm5, %v395_v50, %v342_v45  ;;  %v406_v41 = vsel %vm402_vm6, %v401_v51, %v367_v46 }
  0x64   : > { %v405_v1 = vsel %vm402_vm6, %v400_v58, %v363_v39 }
 0x12b   : > { %v634_v43 = vpop.f32.mrb[0].mxu0  ;;  %v675_v60 = vpop.f32.mrb[0].mxu1 }
 0x12c   : > { %v682_v48 = vadd.f32 %v634_v43, %v403_v36  ;;  %v636_v49 = vpop.f32.mrb[1].mxu0  ;;  %v677_v63 = vpop.f32.mrb[1].mxu1  ;;  %v684_v6 = vadd.f32 %v675_v60, %v405_v1 }
 0x12d   : > { %v683_v52 = vadd.f32 %v636_v49, %v404_v42  ;;  %v638_v54 = vpop.f32.mrb[2].mxu0  ;;  %v685_v2 = vadd.f32 %v677_v63, %v406_v41  ;;  %v679_v3 = vpop.f32.mrb[2].mxu1 }
 0x12e   : > { %v708_v55 = vadd.f32 %v691_v40, %v682_v48  ;;  %v639_v56 = vpop.f32.mrb[3].mxu0  ;;  %v680_v4 = vpop.f32.mrb[3].mxu1  ;;  %v710_v9 = vadd.f32 %v699_v7, %v684_v6 }
 0x12f   : > { %v709_v57 = vadd.f32 %v695_v44, %v683_v52  ;;  %v711_v5 = vadd.f32 %v703_v61, %v685_v2 }
 0x130   : > { %v839_v59 = vmul.f32 -1.442695, %v708_v55 }
 0x131   : > { %v840_v62 = vmul.f32 -1.442695, %v709_v57  ;;  %v841_v8 = vmul.f32 -1.442695, %v711_v5 }
 0x132   : > { %930 = vpow2.f32 %v839_v59 }
 0x133   : > { %932 = vpow2.f32 %v840_v62 }
 0x134   : > { %934 = vpow2.f32 %v841_v8 }
 0x135   : > { %936 = vtanh.f32 %v710_v9 }
 0x13c   : > { %v931_v10 = vpop.eup %930 }
 0x13d   : > { %v933_v11 = vpop.eup %932  ;;  %v715_v12 = vadd.f32 1.0, %v931_v10 }
 0x13e   : > { %v721_v47 = vadd.f32 1.0, %v933_v11  ;;  %v935_v13 = vpop.eup %934 }
 0x13f   : > { %938 = vrcp.f32 %v715_v12  ;;  %v937_v14 = vpop.eup %936  ;;  %v728_v16 = vadd.f32 1.0, %v935_v13 }
 0x140   : > { %940 = vrcp.f32 %v721_v47 }
 0x141   : > { %942 = vrcp.f32 %v728_v16 }
 0x149   : > { %v939_v15 = vpop.eup %938 }
 0x14a   : > { %v941_v17 = vpop.eup %940  ;;  %v732_v18 = vmul.f32 %v939_v15, %v937_v14 }
 0x14b   : > { %v731_v19 = vmul.f32 %v1022_v0, %v941_v17  ;;  %v943_v53 = vpop.eup %942 }
 0x14d   : > { %v733_v20 = vadd.f32 %v732_v18, %v731_v19  }
 0x14f   : > { %944 = vtanh.f32 %v733_v20  ;;  %v1255_v0 = vmov %v733_v20  ;;  %737 = vst [vmem:[%s1254_s5] sm:$0xff] (%p55_p7), %v733_v20 }
 0x156   :  { %57 = sbr.rel (!%p55_p7) target bundleno = 54 (0x36), region = 63 }
 0x159   : > { %v945_v21 = vpop.eup %944 }
 0x15a   : > { %v735_v22 = vmul.f32 %v945_v21, %v943_v53  }
 0x15c   : > { %v1256_v1 = vmov %v735_v22  ;;  %736 = vst [vmem:[%s1253_s4] sm:$0xff] (%p55_p7), %v735_v22 }
 0x15d   :  { %746 = vsyncpa [#allocation5], 1 }
 0x15e   :  { %747 = vsyncpa [#allocation7], 1 }

// kernel: _lambda_.4
= control target key start
LH: loop header
LB: loop body
LE: loop exit
PB: predicated region body
PF: predicated region fallthrough
CT: control target
= control target key end

     0   :  { %v35_v0 = vlaneseq  ;;  %v1704_v13 = vmov 0.0   ;;  %v1706_v14 = vmov 0.0   ;;  %s2183_s0 = inlined_call_operand.vmem [shape: f32[8,128], index: 0, kind: input, shape index: {}]   ;;  %s2184_s1 = inlined_call_operand.vmem [shape: f32[8,128], index: 1, kind: input, shape index: {}]   ;;  %s2185_s2 = inlined_call_operand.vmem [shape: f32[1,512], index: 2, kind: input, shape index: {}]   ;;  %s2186_s3 = inlined_call_operand.vmem [shape: s32[8,8,1], index: 3, kind: input, shape index: {}]   ;;  %s2187_s4 = inlined_call_operand.vmem [shape: bf16[256,512], index: 4, kind: input, shape index: {}]   ;;  %s2188_s5 = inlined_call_operand.vmem [shape: bf16[128,512], index: 5, kind: input, shape index: {}]   ;;  %s2189_s6 = inlined_call_operand.vmem [shape: f32[1,512], index: 6, kind: input, shape index: {}]   ;;  %s2190_s7 = inlined_call_operand.vmem [shape: bf16[128,256], index: 7, kind: input, shape index: {}]   ;;  %s2191_s8 = inlined_call_operand.vmem [shape: f32[1,256], index: 8, kind: input, shape index: {}]   ;;  %s2192_s9 = inlined_call_operand.vmem [shape: f32[1,2], index: 9, kind: output, shape index: {}]  }
   0x1   :  { %v55_v1 = vld [vmem:[%s2183_s0] sm:$0xff]   ;;  %s1720_s0 = smov 0  }
   0x2   :  { %v56_v2 = vld [vmem:[%s2184_s1] sm:$0xff]   ;;  %v1685_v3 = vshrl.u32 %v35_v0, 7 }
   0x3   :  { %v33_v4 = vld [vmem:[%s2185_s2] sm:$0xf] }
   0x4   :  { %v1691_v5 = vsub.s32 0, %v1685_v3  ;;  %v1694_v6 = vsub.s32 1, %v1685_v3  ;;  %v45_v7 = vsub.s32 2, %v1685_v3  ;;  %v49_v8 = vsub.s32 3, %v1685_v3 }
   0x6   :  { %v38_v9 = vrot.slane %v33_v4, %v1691_v5   ;;  %v42_v10 = vrot.slane %v33_v4, %v1694_v6   ;;  %v46_v11 = vrot.slane %v33_v4, %v45_v7   ;;  %v50_v12 = vrot.slane %v33_v4, %v49_v8  }
   0x7 LB: > { %v1361_v15 = vld [vmem:[%s2188_s5 + $0x4] ss:$16 sps:$4 sm:$0xff]   ;;  %v1363_v16 = vld [vmem:[%s2188_s5] ss:$16 sps:$4 sm:$0xff]   ;;  %v1625_v17 = vmov 0   ;;  %v71_v47 = vpack.c.bf16 %v1619_v1, %v1619_v1  ;;  %s1202_s21 = sshll.u32 %s1623_s0, 3  ;;  %s1623_s0 = sphi %s1720_s0, %s62_s0   ;;  %v1619_v1 = vphi %v55_v1, %v1917_v1   ;;  %v1615_v2 = vphi %v56_v2, %v1914_v2   ;;  %v1611_v9 = vphi %v38_v9, %v1062_v9   ;;  %v1607_v10 = vphi %v42_v10, %v1064_v10   ;;  %v1603_v11 = vphi %v46_v11, %v1103_v11   ;;  %v1599_v12 = vphi %v50_v12, %v1105_v12   ;;  %v1595_v14 = vphi %v1706_v14, %v2194_v14   ;;  %v1591_v13 = vphi %v1704_v13, %v2193_v13  }
   0x8   : > { %296 = vmatprep.mubr.bf16.mxu0 %v1625_v17  ;;  %337 = vmatprep.mubr.bf16.mxu1 %v1625_v17  ;;  %v1364_v18 = vld [vmem:[%s2188_s5 + $0x24] ss:$16 sps:$4 sm:$0xff]   ;;  %v1366_v19 = vld [vmem:[%s2188_s5 + $0x20] ss:$16 sps:$4 sm:$0xff]   ;;  %v1372_v21 = vld [vmem:[%s2188_s5 + $0xc] ss:$16 sps:$4 sm:$0xff]   ;;  %s566_s24 = scalar_lea.vmem %s2186_s3, %s1202_s21 }
   0x9   : > { %264 = vmatprep.subr.bf16.mxu0 %v1361_v15  ;;  %1359 = vset.pattern.permute.xlu1 %v1625_v17  ;;  %v1367_v20 = vld [vmem:[%s2188_s5 + $0x44] ss:$16 sps:$4 sm:$0xff]   ;;  %v1375_v22 = vld [vmem:[%s2188_s5 + $0x8] ss:$16 sps:$4 sm:$0xff]   ;;  %v1369_v23 = vld [vmem:[%s2188_s5 + $0x40] ss:$16 sps:$4 sm:$0xff]  }
   0xa   : > { %265 = vmatpush1.bf16.msra.mxu0 %v1363_v16  ;;  %1360 = vset.pattern.permute.xlu0 %v1625_v17  ;;  %v1370_v24 = vld [vmem:[%s2188_s5 + $0x64] ss:$16 sps:$4 sm:$0xff]   ;;  %v1378_v25 = vld [vmem:[%s2188_s5 + $0x2c] ss:$16 sps:$4 sm:$0xff]   ;;  %v1381_v26 = vld [vmem:[%s2188_s5 + $0x28] ss:$16 sps:$4 sm:$0xff]  }
   0xb   : > { %266 = vmatprep.subr.bf16.mxu0 %v1364_v18  ;;  %305 = vmatprep.subr.bf16.mxu1 %v1372_v21  ;;  %v1374_v27 = vld [vmem:[%s2188_s5 + $0x60] ss:$16 sps:$4 sm:$0xff]   ;;  %v1376_v28 = vld [vmem:[%s2188_s5 + $0x84] ss:$16 sps:$4 sm:$0xff]   ;;  %v1384_v29 = vld [vmem:[%s2188_s5 + $0x4c] ss:$16 sps:$4 sm:$0xff]  }
   0xc   : > { %306 = vmatpush1.bf16.msra.mxu1 %v1375_v22  ;;  %v1387_v30 = vld [vmem:[%s2188_s5 + $0x48] ss:$16 sps:$4 sm:$0xff]   ;;  %v1390_v31 = vld [vmem:[%s2188_s5 + $0x6c] ss:$16 sps:$4 sm:$0xff]   ;;  %v1380_v32 = vld [vmem:[%s2188_s5 + $0x80] ss:$16 sps:$4 sm:$0xff]  }
   0xd   : > { %307 = vmatprep.subr.bf16.mxu1 %v1378_v25  ;;  %v1382_v33 = vld [vmem:[%s2188_s5 + $0xa4] ss:$16 sps:$4 sm:$0xff]   ;;  %v1393_v34 = vld [vmem:[%s2188_s5 + $0x68] ss:$16 sps:$4 sm:$0xff]   ;;  %v1396_v35 = vld [vmem:[%s2188_s5 + $0x8c] ss:$16 sps:$4 sm:$0xff]  }
   0xe   : > { %267 = vmatpush1.bf16.msra.mxu0 %v1366_v19  ;;  %v1386_v36 = vld [vmem:[%s2188_s5 + $0xa0] ss:$16 sps:$4 sm:$0xff]   ;;  %v1388_v37 = vld [vmem:[%s2188_s5 + $0xc4] ss:$16 sps:$4 sm:$0xff]   ;;  %v1399_v38 = vld [vmem:[%s2188_s5 + $0x88] ss:$16 sps:$4 sm:$0xff]  }
   0xf   : > { %268 = vmatprep.subr.bf16.mxu0 %v1367_v20  ;;  %v1392_v39 = vld [vmem:[%s2188_s5 + $0xc0] ss:$16 sps:$4 sm:$0xff]   ;;  %v1400_v40 = vld [vmem:[%s2188_s5 + $0xac] ss:$16 sps:$4 sm:$0xff]   ;;  %v1394_v41 = vld [vmem:[%s2188_s5 + $0xe4] ss:$16 sps:$4 sm:$0xff]  }
  0x10   : > { %308 = vmatpush1.bf16.msra.mxu1 %v1381_v26  ;;  %v1402_v42 = vld [vmem:[%s2188_s5 + $0xa8] ss:$16 sps:$4 sm:$0xff]   ;;  %v1403_v43 = vld [vmem:[%s2188_s5 + $0xcc] ss:$16 sps:$4 sm:$0xff]   ;;  %v1398_v44 = vld [vmem:[%s2188_s5 + $0xe0] ss:$16 sps:$4 sm:$0xff]  }
  0x11   : > { %309 = vmatprep.subr.bf16.mxu1 %v1384_v29  ;;  %v1405_v45 = vld [vmem:[%s2188_s5 + $0xc8] ss:$16 sps:$4 sm:$0xff]   ;;  %v1406_v46 = vld [vmem:[%s2188_s5 + $0xec] ss:$16 sps:$4 sm:$0xff]   ;;  %v350_v4 = vld [vmem:[%s2189_s6] sm:$0xf] }
  0x12   : > { %269 = vmatpush1.bf16.msra.mxu0 %v1369_v23  ;;  %v1408_v48 = vld [vmem:[%s2188_s5 + $0xe8] ss:$16 sps:$4 sm:$0xff]   ;;  %v1411_v49 = vld [vmem:[%s2190_s7 + $0x4] ss:$8 sps:$4 sm:$0xff]   ;;  %v1414_v51 = vld [vmem:[%s2190_s7 + $0x14] ss:$8 sps:$4 sm:$0xff]   ;;  %v355_v15 = vrot.slane %v350_v4, %v1691_v5 }
  0x13   : > { %270 = vmatprep.subr.bf16.mxu0 %v1370_v24  ;;  %v1409_v50 = vld [vmem:[%s2190_s7] ss:$8 sps:$4 sm:$0xff]   ;;  %v1412_v52 = vld [vmem:[%s2190_s7 + $0x10] ss:$8 sps:$4 sm:$0xff]   ;;  %v1417_v53 = vld [vmem:[%s2190_s7 + $0x24] ss:$8 sps:$4 sm:$0xff]  }
  0x14   : > { %310 = vmatpush1.bf16.msra.mxu1 %v1387_v30  ;;  %v1415_v54 = vld [vmem:[%s2190_s7 + $0x20] ss:$8 sps:$4 sm:$0xff]   ;;  %v1420_v55 = vld [vmem:[%s2190_s7 + $0x34] ss:$8 sps:$4 sm:$0xff]   ;;  %v1418_v56 = vld [vmem:[%s2190_s7 + $0x30] ss:$8 sps:$4 sm:$0xff]  }
  0x15   : > { %311 = vmatprep.subr.bf16.mxu1 %v1390_v31  ;;  %v1423_v57 = vld [vmem:[%s2190_s7 + $0x44] ss:$8 sps:$4 sm:$0xff]   ;;  %v1421_v58 = vld [vmem:[%s2190_s7 + $0x40] ss:$8 sps:$4 sm:$0xff]   ;;  %v1424_v59 = vld [vmem:[%s2190_s7 + $0x50] ss:$8 sps:$4 sm:$0xff]  }
  0x16   : > { %271 = vmatpush1.bf16.msra.mxu0 %v1374_v27  ;;  %v1426_v60 = vld [vmem:[%s2190_s7 + $0x54] ss:$8 sps:$4 sm:$0xff]   ;;  %v1429_v61 = vld [vmem:[%s2190_s7 + $0x64] ss:$8 sps:$4 sm:$0xff]   ;;  %v1427_v62 = vld [vmem:[%s2190_s7 + $0x60] ss:$8 sps:$4 sm:$0xff]   ;;  %v367_v27 = vrot.slane %v350_v4, %v49_v8 }
  0x17   : > { %272 = vmatprep.subr.bf16.mxu0 %v1376_v28  ;;  %v1432_v63 = vld [vmem:[%s2190_s7 + $0x74] ss:$8 sps:$4 sm:$0xff]   ;;  %v1430_v1 = vld [vmem:[%s2190_s7 + $0x70] ss:$8 sps:$4 sm:$0xff]   ;;  %vm592_vm11 = vcmask 7168   ;;  %s62_s0 = sadd.s32 1, %s1623_s0  }
  0x18   : > { %312 = vmatpush1.bf16.msra.mxu1 %v1393_v34  ;;  %p59_p0 = scmp.ge.s32.totalorder %s62_s0, 8  }
  0x19   : > { %313 = vmatprep.subr.bf16.mxu1 %v1396_v35  ;;  %vm1114_vm12 = vcmask (%p59_p0), 8192  }
  0x1a   : > { %273 = vmatpush1.bf16.msra.mxu0 %v1380_v32 }
  0x1b   : > { %274 = vmatprep.subr.bf16.mxu0 %v1382_v33  ;;  %v363_v33 = vrot.slane %v350_v4, %v45_v7 }
  0x1c   : > { %314 = vmatpush1.bf16.msra.mxu1 %v1399_v38 }
  0x1d   : > { %315 = vmatprep.subr.bf16.mxu1 %v1400_v40 }
  0x1e   : > { %275 = vmatpush1.bf16.msra.mxu0 %v1386_v36 }
  0x1f   : > { %276 = vmatprep.subr.bf16.mxu0 %v1388_v37 }
  0x20   : > { %316 = vmatpush1.bf16.msra.mxu1 %v1402_v42 }
  0x21   : > { %317 = vmatprep.subr.bf16.mxu1 %v1403_v43 }
  0x22   : > { %277 = vmatpush1.bf16.msra.mxu0 %v1392_v39 }
  0x23   : > { %278 = vmatprep.subr.bf16.mxu0 %v1394_v41 }
  0x24   : > { %318 = vmatpush1.bf16.msra.mxu1 %v1405_v45 }
  0x25   : > { %319 = vmatprep.subr.bf16.mxu1 %v1406_v46 }
  0x26   : > { %279 = vmatpush1.bf16.msra.mxu0 %v1398_v44 }
  0x27   : > { %509 = vmatprep.subr.bf16.mxu0 %v1411_v49 }
  0x28   : > { %320 = vmatpush1.bf16.msra.mxu1 %v1408_v48  ;;  %v417_v48 = vld [vmem:[%s2191_s8] sm:$0x3] }
  0x29   : > { %297 = vmatmul.mubr.bf16.vlgmr.msra.gmra.mrb[0].mxu0 %v71_v47  ;;  %v422_v49 = vrot.slane %v417_v48, %v1691_v5 }
  0x2a   : > { %541 = vmatprep.mubr.bf16.mxu0 %v1625_v17  ;;  %510 = vmatpush1.bf16.msra.mxu0 %v1409_v50  ;;  %v359_v17 = vrot.slane %v350_v4, %v1694_v6  ;;  %v426_v50 = vrot.slane %v417_v48, %v1694_v6  ;;  %v1477_v48 = vld [vmem:[%s2187_s4 + $0xe4] ss:$16 sps:$4 sm:$0xff]  }
  0x2b   : > { %338 = vmatmul.mubr.bf16.vlgmr.msra.gmra.mrb[0].mxu1 %v71_v47  ;;  %511 = vmatprep.subr.bf16.mxu0 %v1414_v51 }
  0x2e   : > { %512 = vmatpush1.bf16.msra.mxu0 %v1412_v52 }
  0x2f   : > { %513 = vmatprep.subr.bf16.mxu0 %v1417_v53 }
  0x32   : > { %514 = vmatpush1.bf16.msra.mxu0 %v1415_v54 }
  0x33   : > { %515 = vmatprep.subr.bf16.mxu0 %v1420_v55 }
  0x36   : > { %516 = vmatpush1.bf16.msra.mxu0 %v1418_v56 }
  0x37   : > { %517 = vmatprep.subr.bf16.mxu0 %v1423_v57 }
  0x3a   : > { %518 = vmatpush1.bf16.msra.mxu0 %v1421_v58  ;;  %v1927_v58 = vand.u32 127, %v35_v0 }
  0x3b   : > { %519 = vmatprep.subr.bf16.mxu0 %v1426_v60 }
  0x3e   : > { %520 = vmatpush1.bf16.msra.mxu0 %v1424_v59  ;;  %v1930_v59 = vadd.s32 128, %v1927_v58 }
  0x3f   : > { %521 = vmatprep.subr.bf16.mxu0 %v1429_v61 }
  0x42   : > { %522 = vmatpush1.bf16.msra.mxu0 %v1427_v62 }
  0x43   : > { %523 = vmatprep.subr.bf16.mxu0 %v1432_v63 }
  0x46   : > { %524 = vmatpush1.bf16.msra.mxu0 %v1430_v1 }
  0xfc   : > { %v298_v16 = vpop.f32.mrb[0].mxu0 }
  0xfd   : > { %v346_v18 = vadd.f32 %v1611_v9, %v298_v16  ;;  %v300_v19 = vpop.f32.mrb[1].mxu0 }
  0xfe   : > { %v347_v20 = vadd.f32 %v1607_v10, %v300_v19  ;;  %v302_v21 = vpop.f32.mrb[2].mxu0  ;;  %v339_v26 = vpop.f32.mrb[0].mxu1 }
  0xff   : > { %v372_v22 = vadd.f32 %v355_v15, %v346_v18  ;;  %v303_v23 = vpop.f32.mrb[3].mxu0  ;;  %v341_v29 = vpop.f32.mrb[1].mxu1  ;;  %v348_v10 = vadd.f32 %v1603_v11, %v339_v26  ;;  %v1436_v26 = vld [vmem:[%s2187_s4 + $0x8] ss:$16 sps:$4 sm:$0xff]  }
 0x100   : > { %v373_v24 = vadd.f32 %v359_v17, %v347_v20  ;;  %v349_v30 = vadd.f32 %v1599_v12, %v341_v29  ;;  %v343_v31 = vpop.f32.mrb[2].mxu1  ;;  %v1950_v23 = vld [vmem:[%s566_s24] sm:$0xff]  ;;  %v1444_v29 = vld [vmem:[%s2187_s4 + $0x2c] ss:$16 sps:$4 sm:$0xff]  }
 0x101   : > { %v1183_v25 = vmul.f32 -1.442695, %v372_v22  ;;  %v344_v9 = vpop.f32.mrb[3].mxu1  ;;  %v374_v35 = vadd.f32 %v363_v33, %v348_v10  ;;  %v1442_v31 = vld [vmem:[%s2187_s4 + $0x28] ss:$16 sps:$4 sm:$0xff]   ;;  %vm585_vm10 = vcmp.ne.s32.totalorder %v1950_v23, 0 }
 0x102   : > { %v1184_v28 = vmul.f32 -1.442695, %v373_v24  ;;  %v375_v32 = vadd.f32 %v367_v27, %v349_v30  ;;  %v1433_v24 = vld [vmem:[%s2187_s4] ss:$16 sps:$4 sm:$0xff]   ;;  %v1438_v27 = vld [vmem:[%s2187_s4 + $0xc] ss:$16 sps:$4 sm:$0xff]  }
 0x103   : > { %1529 = vpow2.f32 %v1183_v25  ;;  %v1435_v25 = vld [vmem:[%s2187_s4 + $0x4] ss:$16 sps:$4 sm:$0xff]   ;;  %1069 = vmatprep.subr.bf16.mxu0 %v1438_v27  ;;  %v1439_v30 = vld [vmem:[%s2187_s4 + $0x20] ss:$16 sps:$4 sm:$0xff]   ;;  %v1448_v33 = vld [vmem:[%s2187_s4 + $0x48] ss:$16 sps:$4 sm:$0xff]  }
 0x104   : > { %1531 = vpow2.f32 %v1184_v28  ;;  %v1185_v34 = vmul.f32 -1.442695, %v375_v32  ;;  %v1441_v28 = vld [vmem:[%s2187_s4 + $0x24] ss:$16 sps:$4 sm:$0xff]   ;;  %1028 = vmatprep.subr.bf16.mxu1 %v1435_v25  ;;  %v1450_v32 = vld [vmem:[%s2187_s4 + $0x4c] ss:$16 sps:$4 sm:$0xff]  }
 0x105   : > { %1029 = vmatpush1.bf16.msra.mxu1 %v1433_v24  ;;  %v1447_v9 = vld [vmem:[%s2187_s4 + $0x44] ss:$16 sps:$4 sm:$0xff]   ;;  %v1445_v10 = vld [vmem:[%s2187_s4 + $0x40] ss:$16 sps:$4 sm:$0xff]   ;;  %v1502_v24 = vld [vmem:[%s2187_s4 + $0x168] ss:$16 sps:$4 sm:$0xff]  }
 0x106   : > { %1533 = vpow2.f32 %v1185_v34  ;;  %1030 = vmatprep.subr.bf16.mxu1 %v1441_v28  ;;  %v1453_v34 = vld [vmem:[%s2187_s4 + $0x64] ss:$16 sps:$4 sm:$0xff]   ;;  %v1505_v27 = vld [vmem:[%s2187_s4 + $0x180] ss:$16 sps:$4 sm:$0xff]   ;;  %v1508_v28 = vld [vmem:[%s2187_s4 + $0x188] ss:$16 sps:$4 sm:$0xff]  }
 0x107   : > { %1535 = vtanh.f32 %v374_v35  ;;  %v1456_v35 = vld [vmem:[%s2187_s4 + $0x6c] ss:$16 sps:$4 sm:$0xff]   ;;  %v1507_v25 = vld [vmem:[%s2187_s4 + $0x184] ss:$16 sps:$4 sm:$0xff]  }
 0x109   : > { %1031 = vmatpush1.bf16.msra.mxu1 %v1439_v30  ;;  %v1516_v30 = vld [vmem:[%s2187_s4 + $0x1ac] ss:$16 sps:$4 sm:$0xff]  }
 0x10a   : > { %1032 = vmatprep.subr.bf16.mxu1 %v1447_v9  ;;  %v1514_v9 = vld [vmem:[%s2187_s4 + $0x1a8] ss:$16 sps:$4 sm:$0xff]  }
 0x10d   : > { %v1530_v36 = vpop.eup %1529  ;;  %1033 = vmatpush1.bf16.msra.mxu1 %v1445_v10  ;;  %v1522_v10 = vld [vmem:[%s2187_s4 + $0x1cc] ss:$16 sps:$4 sm:$0xff]  }
 0x10e   : > { %v1532_v37 = vpop.eup %1531  ;;  %v379_v38 = vadd.f32 1.0, %v1530_v36  ;;  %v1451_v36 = vld [vmem:[%s2187_s4 + $0x60] ss:$16 sps:$4 sm:$0xff]   ;;  %1034 = vmatprep.subr.bf16.mxu1 %v1453_v34  ;;  %v1520_v34 = vld [vmem:[%s2187_s4 + $0x1c8] ss:$16 sps:$4 sm:$0xff]  }
 0x10f   : > { %v385_v39 = vadd.f32 1.0, %v1532_v37  ;;  %v1454_v37 = vld [vmem:[%s2187_s4 + $0x68] ss:$16 sps:$4 sm:$0xff]  }
 0x110   : > { %1537 = vrcp.f32 %v379_v38  ;;  %v1534_v12 = vpop.eup %1533  ;;  %v1459_v38 = vld [vmem:[%s2187_s4 + $0x84] ss:$16 sps:$4 sm:$0xff]  }
 0x111   : > { %1539 = vrcp.f32 %v385_v39  ;;  %v1536_v40 = vpop.eup %1535  ;;  %v392_v42 = vadd.f32 1.0, %v1534_v12  ;;  %v1462_v39 = vld [vmem:[%s2187_s4 + $0x8c] ss:$16 sps:$4 sm:$0xff]   ;;  %1035 = vmatpush1.bf16.msra.mxu1 %v1451_v36  ;;  %v1457_v12 = vld [vmem:[%s2187_s4 + $0x80] ss:$16 sps:$4 sm:$0xff]  }
 0x112   : > { %1036 = vmatprep.subr.bf16.mxu1 %v1459_v38 }
 0x113   : > { %1541 = vrcp.f32 %v392_v42  ;;  %v1468_v42 = vld [vmem:[%s2187_s4 + $0xac] ss:$16 sps:$4 sm:$0xff]  }
 0x115   : > { %1037 = vmatpush1.bf16.msra.mxu1 %v1457_v12 }
 0x11a   : > { %v1538_v41 = vpop.eup %1537 }
 0x11b   : > { %v1540_v43 = vpop.eup %1539  ;;  %v396_v44 = vmul.f32 %v1538_v41, %v1536_v40  ;;  %v1460_v40 = vld [vmem:[%s2187_s4 + $0x88] ss:$16 sps:$4 sm:$0xff]   ;;  %v1465_v41 = vld [vmem:[%s2187_s4 + $0xa4] ss:$16 sps:$4 sm:$0xff]  }
 0x11c   : > { %v395_v11 = vmul.f32 %v1615_v2, %v1540_v43  ;;  %v1463_v43 = vld [vmem:[%s2187_s4 + $0xa0] ss:$16 sps:$4 sm:$0xff]   ;;  %1038 = vmatprep.subr.bf16.mxu1 %v1465_v41  ;;  %v1526_v41 = vld [vmem:[%s2187_s4 + $0x1e8] ss:$16 sps:$4 sm:$0xff]  }
 0x11d   : > { %v1542_v45 = vpop.eup %1541  ;;  %1039 = vmatpush1.bf16.msra.mxu1 %v1463_v43  ;;  %v1626_v43 = vmov 0.0  }
 0x11e   : > { %v1914_v2 = vadd.f32 %v396_v44, %v395_v11   ;;  %v1466_v44 = vld [vmem:[%s2187_s4 + $0xa8] ss:$16 sps:$4 sm:$0xff]   ;;  %v1471_v11 = vld [vmem:[%s2187_s4 + $0xc4] ss:$16 sps:$4 sm:$0xff]  }
 0x11f   : > { %1040 = vmatprep.subr.bf16.mxu1 %v1471_v11 }
 0x120   : > { %1543 = vtanh.f32 %v1914_v2 }
 0x12a   : > { %v1544_v46 = vpop.eup %1543 }
 0x12b   : > { %v1917_v1 = vmul.f32 %v1544_v46, %v1542_v45   ;;  %v1474_v45 = vld [vmem:[%s2187_s4 + $0xcc] ss:$16 sps:$4 sm:$0xff]   ;;  %v1469_v46 = vld [vmem:[%s2187_s4 + $0xc0] ss:$16 sps:$4 sm:$0xff]  }
 0x12c   : > { %1041 = vmatpush1.bf16.msra.mxu1 %v1469_v46 }
 0x12d   : > { %v400_v47 = vpack.c.bf16 %v1917_v1, %v1917_v1  ;;  %1042 = vmatprep.subr.bf16.mxu1 %v1477_v48 }
 0x12f   : > { %542 = vmatmul.mubr.bf16.vlgmr.msra.gmra.mrb[4].mxu0 %v400_v47  ;;  %v1472_v47 = vld [vmem:[%s2187_s4 + $0xc8] ss:$16 sps:$4 sm:$0xff]  }
 0x130   : > { %1070 = vmatpush1.bf16.msra.mxu0 %v1436_v26  ;;  %v1510_v26 = vld [vmem:[%s2187_s4 + $0x18c] ss:$16 sps:$4 sm:$0xff]  }
 0x131   : > { %1071 = vmatprep.subr.bf16.mxu0 %v1444_v29  ;;  %v1513_v29 = vld [vmem:[%s2187_s4 + $0x1a4] ss:$16 sps:$4 sm:$0xff]  }
 0x134   : > { %1072 = vmatpush1.bf16.msra.mxu0 %v1442_v31  ;;  %v1511_v31 = vld [vmem:[%s2187_s4 + $0x1a0] ss:$16 sps:$4 sm:$0xff]  }
 0x135   : > { %1073 = vmatprep.subr.bf16.mxu0 %v1450_v32  ;;  %v1519_v32 = vld [vmem:[%s2187_s4 + $0x1c4] ss:$16 sps:$4 sm:$0xff]  }
 0x138   : > { %1074 = vmatpush1.bf16.msra.mxu0 %v1448_v33  ;;  %v1517_v33 = vld [vmem:[%s2187_s4 + $0x1c0] ss:$16 sps:$4 sm:$0xff]  }
 0x139   : > { %1075 = vmatprep.subr.bf16.mxu0 %v1456_v35 }
 0x13c   : > { %1076 = vmatpush1.bf16.msra.mxu0 %v1454_v37 }
 0x13d   : > { %1077 = vmatprep.subr.bf16.mxu0 %v1462_v39 }
 0x140   : > { %1078 = vmatpush1.bf16.msra.mxu0 %v1460_v40  ;;  %v1525_v40 = vld [vmem:[%s2187_s4 + $0x1e4] ss:$16 sps:$4 sm:$0xff]  }
 0x141   : > { %1079 = vmatprep.subr.bf16.mxu0 %v1468_v42 }
 0x144   : > { %1080 = vmatpush1.bf16.msra.mxu0 %v1466_v44 }
 0x145   : > { %1081 = vmatprep.subr.bf16.mxu0 %v1474_v45 }
 0x148   : > { %1082 = vmatpush1.bf16.msra.mxu0 %v1472_v47 }
 0x202   : > { %v543_v51 = vpop.f32.mrb[4].mxu0 }
 0x203   : > { %v544_v52 = vadd.f32 %v543_v51, %v422_v49  ;;  %v545_v53 = vpop.f32.mrb[5].mxu0  ;;  %v1480_v49 = vld [vmem:[%s2187_s4 + $0xec] ss:$16 sps:$4 sm:$0xff]   ;;  %v1478_v51 = vld [vmem:[%s2187_s4 + $0xe8] ss:$16 sps:$4 sm:$0xff]  }
 0x204   : > { %v546_v54 = vadd.f32 %v545_v53, %v426_v50  ;;  %v547_v55 = vpop.f32.mrb[6].mxu0  ;;  %v1475_v50 = vld [vmem:[%s2187_s4 + $0xe0] ss:$16 sps:$4 sm:$0xff]   ;;  %1083 = vmatprep.subr.bf16.mxu0 %v1480_v49  ;;  %v1486_v53 = vld [vmem:[%s2187_s4 + $0x10c] ss:$16 sps:$4 sm:$0xff]  }
 0x205   : > { %v548_v56 = vpop.f32.mrb[7].mxu0  ;;  %1043 = vmatpush1.bf16.msra.mxu1 %v1475_v50  ;;  %1084 = vmatpush1.bf16.msra.mxu0 %v1478_v51  ;;  %v1484_v55 = vld [vmem:[%s2187_s4 + $0x108] ss:$16 sps:$4 sm:$0xff]  }
 0x206   : > { %v550_v57 = vmax.f32 %v544_v52, %v546_v54  ;;  %v1489_v56 = vld [vmem:[%s2187_s4 + $0x124] ss:$16 sps:$4 sm:$0xff]   ;;  %1085 = vmatprep.subr.bf16.mxu0 %v1486_v53 }
 0x208   : > { %551 = vmax.xlane.f32.xlu0 %v550_v57  ;;  %v1492_v57 = vld [vmem:[%s2187_s4 + $0x12c] ss:$16 sps:$4 sm:$0xff]  }
 0x209   : > { %1086 = vmatpush1.bf16.msra.mxu0 %v1484_v55 }
 0x20a   : > { %1087 = vmatprep.subr.bf16.mxu0 %v1492_v57  ;;  %v1205_v57 = vsel %vm585_vm10, 1.0, %v1626_v43 }
 0x295   : > { %v552_v60 = vpop.xlane.xlu0 %551 }
 0x296   : > { %v553_v61 = vsub.f32 %v544_v52, %v552_v60  ;;  %v554_v62 = vsub.f32 %v546_v54, %v552_v60  ;;  %vm616_vm0 = vcmp.ge.f32.partialorder %v544_v52, %v552_v60  ;;  %vm617_vm1 = vcmp.ge.f32.partialorder %v546_v54, %v552_v60  ;;  %v1483_v52 = vld [vmem:[%s2187_s4 + $0x104] ss:$16 sps:$4 sm:$0xff]   ;;  %v1481_v54 = vld [vmem:[%s2187_s4 + $0x100] ss:$16 sps:$4 sm:$0xff]  }
 0x297   : > { %v618_v63 = vsel %vm616_vm0, %v1927_v58, 256  ;;  %v619_v4 = vsel %vm617_vm1, %v1930_v59, 256  ;;  %1044 = vmatprep.subr.bf16.mxu1 %v1483_v52  ;;  %v1487_v60 = vld [vmem:[%s2187_s4 + $0x120] ss:$16 sps:$4 sm:$0xff]  }
 0x298   : > { %v555_v15 = vmul.f32 1.442695, %v553_v61  ;;  %v557_v16 = vmul.f32 1.442695, %v554_v62  ;;  %vm620_vm2 = vcmp.lt.s32.totalorder %v618_v63, %v619_v4  ;;  %1045 = vmatpush1.bf16.msra.mxu1 %v1481_v54  ;;  %v1490_v61 = vld [vmem:[%s2187_s4 + $0x128] ss:$16 sps:$4 sm:$0xff]  }
 0x299   : > { %v1934_v17 = vsel %vm620_vm2, %v618_v63, %v619_v4  ;;  %1046 = vmatprep.subr.bf16.mxu1 %v1489_v56  ;;  %v1495_v62 = vld [vmem:[%s2187_s4 + $0x144] ss:$16 sps:$4 sm:$0xff]   ;;  %v1498_v63 = vld [vmem:[%s2187_s4 + $0x14c] ss:$16 sps:$4 sm:$0xff]   ;;  %v1493_v4 = vld [vmem:[%s2187_s4 + $0x140] ss:$16 sps:$4 sm:$0xff]   ;;  %1088 = vmatpush1.bf16.msra.mxu0 %v1490_v61 }
 0x29a   : > { %1545 = vpow2.f32 %v555_v15  ;;  %v623_v18 = vshra.s32 %v1934_v17, 16  ;;  %v1496_v15 = vld [vmem:[%s2187_s4 + $0x148] ss:$16 sps:$4 sm:$0xff]   ;;  %1089 = vmatprep.subr.bf16.mxu0 %v1498_v63  ;;  %v622_v35 = vand.u32 65535, %v1934_v17  ;;  %v1528_v17 = vld [vmem:[%s2187_s4 + $0x1ec] ss:$16 sps:$4 sm:$0xff]  }
 0x29b   : > { %1547 = vpow2.f32 %v557_v16  ;;  %v1501_v16 = vld [vmem:[%s2187_s4 + $0x164] ss:$16 sps:$4 sm:$0xff]  }
 0x29c   : > { %v1937_v19 = vcvt.s32.f32 %v623_v18  ;;  %1047 = vmatpush1.bf16.msra.mxu1 %v1487_v60  ;;  %v1504_v18 = vld [vmem:[%s2187_s4 + $0x16c] ss:$16 sps:$4 sm:$0xff]   ;;  %v624_v37 = vcvt.s32.f32 %v622_v35 }
 0x29d   : > { %1048 = vmatprep.subr.bf16.mxu1 %v1495_v62  ;;  %1090 = vmatpush1.bf16.msra.mxu0 %v1496_v15 }
 0x29e   : > { %626 = vmin.xlane.f32.xlu0 %v1937_v19  ;;  %1091 = vmatprep.subr.bf16.mxu0 %v1504_v18 }
 0x2a0   : > { %1049 = vmatpush1.bf16.msra.mxu1 %v1493_v4 }
 0x2a1   : > { %1050 = vmatprep.subr.bf16.mxu1 %v1501_v16  ;;  %1092 = vmatpush1.bf16.msra.mxu0 %v1502_v24 }
 0x2a2   : > { %1093 = vmatprep.subr.bf16.mxu0 %v1510_v26 }
 0x2a4   : > { %v1940_v20 = vpop.eup %1545 }
 0x2a5   : > { %v1942_v21 = vpop.eup %1547  ;;  %1094 = vmatpush1.bf16.msra.mxu0 %v1508_v28 }
 0x2a6   : > { %v559_v22 = vadd.f32 %v1942_v21, %v1940_v20  ;;  %1095 = vmatprep.subr.bf16.mxu0 %v1516_v30 }
 0x2a8   : > { %560 = vadd.xlane.f32.xlu1 %v559_v22  ;;  %v1499_v22 = vld [vmem:[%s2187_s4 + $0x160] ss:$16 sps:$4 sm:$0xff]  }
 0x2a9   : > { %1051 = vmatpush1.bf16.msra.mxu1 %v1499_v22  ;;  %1096 = vmatpush1.bf16.msra.mxu0 %v1514_v9 }
 0x2aa   : > { %1052 = vmatprep.subr.bf16.mxu1 %v1507_v25  ;;  %1097 = vmatprep.subr.bf16.mxu0 %v1522_v10 }
 0x2ad   : > { %1053 = vmatpush1.bf16.msra.mxu1 %v1505_v27  ;;  %1098 = vmatpush1.bf16.msra.mxu0 %v1520_v34 }
 0x2ae   : > { %1054 = vmatprep.subr.bf16.mxu1 %v1513_v29  ;;  %1099 = vmatprep.subr.bf16.mxu0 %v1528_v17 }
 0x2b1   : > { %1055 = vmatpush1.bf16.msra.mxu1 %v1511_v31  ;;  %1100 = vmatpush1.bf16.msra.mxu0 %v1526_v41 }
 0x2b2   : > { %1056 = vmatprep.subr.bf16.mxu1 %v1519_v32 }
 0x2b5   : > { %1057 = vmatpush1.bf16.msra.mxu1 %v1517_v33 }
 0x2b6   : > { %1058 = vmatprep.subr.bf16.mxu1 %v1525_v40 }
 0x2b9   : > { %572 = vperm.xlu1 %1359, %v1950_v23  }
 0x32b   : > { %v627_v36 = vpop.xlane.xlu0 %626 }
 0x32c   : > { %vm628_vm3 = vcmp.eq.f32.partialorder %v1937_v19, %v627_v36  ;;  %v1523_v19 = vld [vmem:[%s2187_s4 + $0x1e0] ss:$16 sps:$4 sm:$0xff]   ;;  %v633_v50 = vcvt.f32.s32 %v627_v36 }
 0x32d   : > { %v629_v38 = vsel %vm628_vm3, %v624_v37, inf  ;;  %1059 = vmatpush1.bf16.msra.mxu1 %v1523_v19 }
 0x32e   : > { %630 = vmin.xlane.f32.xlu0 %v629_v38  ;;  %v634_v52 = vshll.u32 %v633_v50, 16 }
 0x335   : > { %v561_v39 = vpop.xlane.xlu1 %560 }
 0x336   : > { %1549 = vrcp.f32 %v561_v39 }
 0x339   : > { %v573_v12 = vpop.permute.xlu1 %572 }
 0x33a   : > { %vm574_vm4 = vcmp.eq.s32.totalorder %v1927_v58, %v573_v12  ;;  %vm575_vm5 = vcmp.eq.s32.totalorder %v1930_v59, %v573_v12 }
 0x33b   : > { %v1203_v44 = vsel %vm574_vm4, 1.0, %v1626_v43  ;;  %v1204_v11 = vsel %vm575_vm5, 1.0, %v1626_v43 }
 0x340   : > { %v1550_v42 = vpop.eup %1549 }
 0x341   : > { %v563_v45 = vmul.f32 %v1550_v42, %v1940_v20  ;;  %v564_v46 = vmul.f32 %v1550_v42, %v1942_v21  ;;  %v1627_v20 = vmov 1.0|1.0  }
 0x343   : > { %v580_v47 = vmul.f32 %v1203_v44, %v563_v45  ;;  %v581_v48 = vmul.f32 %v1204_v11, %v564_v46 }
 0x345   : > { %v582_v49 = vadd.f32 %v581_v48, %v580_v47 }
 0x347   : > { %583 = vadd.xlane.f32.xlu0 %v582_v49 }
 0x3bb   : > { %v631_v51 = vpop.xlane.xlu0 %630 }
 0x3bc   : > { %v632_v53 = vcvt.f32.s32 %v631_v51 }
 0x3be   : > { %v635_v54 = vadd.s32 %v634_v52, %v632_v53 }
 0x3c0   : > { %vm636_vm6 = vcmp.eq.s32.totalorder %v1927_v58, %v635_v54  ;;  %vm637_vm7 = vcmp.eq.s32.totalorder %v1930_v59, %v635_v54  ;;  %v605_v59 = vsel %vm592_vm11, %v1205_v57, 0.0 }
 0x3c1   : > { %vm1274_vm8 = vmpackc.low %vm636_vm6, %vm636_vm6 }
 0x3c2   : > { %vm1272_vm9 = vmpackc.low %vm637_vm7, %vm637_vm7 }
 0x3c3   : > { %1273 = vmatprep.mubr.msk.bf16.mxu1 %vm1272_vm9, %v1627_v20  ;;  %1277 = vmatprep.mubr.msk.bf16.mxu0 %vm1272_vm9, %v1627_v20 }
 0x3c4   : > { %1275 = vmatmul.mubr.msk.bf16.vlgmr.msra.gmra.mrb[4].mxu1 %vm1274_vm8, %v1627_v20  ;;  %1279 = vmatmul.mubr.msk.bf16.vlgmr.msra.gmra.mrb[8].mxu0 %vm1274_vm8, %v1627_v20 }
 0x3d4   : > { %v584_v21 = vpop.xlane.xlu0 %583 }
 0x3d5   : > { %v588_v55 = vadd.f32 1e-14, %v584_v21 }
 0x3d7   : > { %1551 = vlog2.f32 %v588_v55 }
 0x3e1   : > { %v1552_v56 = vpop.eup %1551 }
 0x3e2   : > { %v590_v60 = vmul.f32 0.6931472, %v1552_v56 }
 0x3e4   : > { %v591_v61 = vmul.f32 %v1205_v57, %v590_v60 }
 0x3e6   : > { %v593_v58 = vsel %vm592_vm11, %v591_v61, 0.0 }
 0x3e7   : > { %594 = vadd.xlane.f32.xlu0 %v593_v58 }
 0x3eb   : > { %606 = vadd.xlane.f32.xlu0 %v605_v59 }
 0x474   : > { %v595_v62 = vpop.xlane.xlu0 %594 }
 0x475   : > { %v596_v63 = vrot.slane %v595_v62, 4 }
 0x477   : > { %v597_v4 = vadd.f32 %v596_v63, %v595_v62 }
 0x478   : > { %v607_v15 = vpop.xlane.xlu0 %606 }
 0x479   : > { %v598_v16 = vrot.slane %v597_v4, 2  ;;  %v608_v18 = vrot.slane %v607_v15, 4 }
 0x47b   : > { %v609_v22 = vadd.f32 %v608_v18, %v607_v15  ;;  %v599_v24 = vadd.f32 %v598_v16, %v597_v4 }
 0x47d   : > { %v610_v23 = vrot.slane %v609_v22, 2  ;;  %v600_v25 = vrot.slane %v599_v24, 1 }
 0x47f   : > { %v611_v26 = vadd.f32 %v610_v23, %v609_v22  ;;  %v601_v27 = vadd.f32 %v600_v25, %v599_v24 }
 0x481   : > { %1280 = vpush %v601_v27  ;;  %v612_v28 = vrot.slane %v611_v26, 1 }
 0x483   : > { %v613_v29 = vadd.f32 %v612_v28, %v611_v26 }
 0x485   : > { %1282 = vpush %v613_v29 }
 0x497   : > { %v1062_v9 = vpop.f32.mrb[4].mxu1   ;;  %v1103_v11 = vpop.f32.mrb[8].mxu0  }
 0x498   : > { %v1064_v10 = vpop.f32.mrb[5].mxu1   ;;  %v1105_v12 = vpop.f32.mrb[9].mxu0  }
 0x499   : > { %v1066_v30 = vpop.f32.mrb[6].mxu1  ;;  %v1107_v31 = vpop.f32.mrb[10].mxu0 }
 0x49a   : > { %v1067_v32 = vpop.f32.mrb[7].mxu1  ;;  %v1108_v33 = vpop.f32.mrb[11].mxu0 }
 0x4b2   : > { %s1281_s15 = spop %1280 }
 0x4b3   : > { %s603_s16 = ssub.f32 0.0, %s1281_s15 }
 0x4b4   :  { %61 = sbr.rel (!%p59_p0) target bundleno = 7 (0x7), region = 64 }
 0x4b5   : > { %v604_v34 = vstv %s603_s16 }
 0x4b6   : > { %v1110_v35 = vadd.f32 %v1595_v14, %v604_v34   ;;  %s1283_s17 = spop %1282 }
 0x4b7   : > { %v615_v36 = vstv %s1283_s17 }
 0x4b8   : > { %v1111_v37 = vadd.f32 %v1591_v13, %v615_v36   ;;  %v2194_v14 = vmov %v1110_v35 }
 0x4ba   : > { %v2193_v13 = vmov %v1111_v37  ;;  %v1113_v38 = vsel (%p59_p0), %vm592_vm11, %v1110_v35, %v1111_v37 }
 0x4bb   :  { %1115 = vst.msk [vmem:[%s2192_s9] sm:$0x1] %vm1114_vm12, %v1113_v38 }

// kernel: _lambda_.5
= control target key start
LH: loop header
LB: loop body
LE: loop exit
PB: predicated region body
PF: predicated region fallthrough
CT: control target
= control target key end

     0   :  { %21 = vsyncpa [#allocation3], 0  ;;  %s2806_s18 = smov [#allocation2]   ;;  %s3713_s0 = inlined_call_operand.vmem [shape: f32[2,128], index: 0, kind: input, shape index: {}]   ;;  %s3714_s1 = inlined_call_operand.vmem [shape: f32[2,128], index: 1, kind: input, shape index: {}]   ;;  %s3715_s2 = inlined_call_operand.vmem [shape: f32[1,512], index: 2, kind: input, shape index: {}]   ;;  %s3716_s3 = inlined_call_operand.vmem [shape: s32[8,2,1], index: 3, kind: input, shape index: {}]   ;;  %s3717_s4 = inlined_call_operand.vmem [shape: bf16[256,512], index: 4, kind: input, shape index: {}]   ;;  %s3718_s5 = inlined_call_operand.vmem [shape: bf16[128,512], index: 5, kind: input, shape index: {}]   ;;  %s3719_s6 = inlined_call_operand.vmem [shape: f32[1,512], index: 6, kind: input, shape index: {}]   ;;  %s3720_s7 = inlined_call_operand.hbm [shape: bf16[128,256], index: 7, kind: input, shape index: {}]   ;;  %s3721_s8 = inlined_call_operand.vmem [shape: f32[1,256], index: 8, kind: input, shape index: {}]   ;;  %s3722_s9 = inlined_call_operand.vmem [shape: bf16[256,512], index: 9, kind: input, shape index: {}]   ;;  %s3723_s10 = inlined_call_operand.vmem [shape: bf16[128,512], index: 10, kind: input, shape index: {}]   ;;  %s3724_s11 = inlined_call_operand.vmem [shape: f32[1,512], index: 11, kind: input, shape index: {}]   ;;  %s3725_s12 = inlined_call_operand.vmem [shape: s32[8,2,1], index: 12, kind: output, shape index: {0}]   ;;  %s3726_s13 = inlined_call_operand.vmem [shape: f32[2,128], index: 13, kind: output, shape index: {1}]   ;;  %s3727_s14 = inlined_call_operand.vmem [shape: f32[2,128], index: 14, kind: output, shape index: {2}]   ;;  %s3728_s15 = inlined_call_operand.vmem [shape: f32[1,2], index: 15, kind: output, shape index: {3}]  }
   0x1   :  { %s41_s19 = sshll.u32 %s2806_s18, 4  ;;  %s2694_s22 = scalar_lea.hbm %s3720_s7, 2048  ;;  %s42_s19 = int_to_ptr.vmem [resolvable:$true] %s41_s19 }
   0x2   :  { %p2695_p0 = scmp.ne.s32.totalorder %s3720_s7, %s2694_s22  ;;  %p2698_p1 = scmp.lt.u32.totalorder %s2694_s22, %s3720_s7 }
   0x4   :  { %p2700_p2 = pnand %p2698_p1, %p2695_p0 }
   0x6   :  { %2703 = shalt.err (!%p2700_p2)
}
   0x7   :  { %s2704_s27 = scalar_lea.vmem %s42_s19, 2048  ;;  %p2709_p4 = scmp.lt.s32.totalorder %s42_s19, %s42_s19 }
   0x8   :  { %p2705_p3 = scmp.ne.s32.totalorder %s42_s19, %s2704_s27  ;;  %p2710_p5 = scmp.lt.s32.totalorder %s2704_s27, %s2704_s27 }
   0xa   :  { %p2711_p6 = por %p2710_p5, %p2709_p4 }
   0xc   :  { %p2712_p7 = pnand %p2711_p6, %p2705_p3 }
   0xe   :  { %2715 = shalt.err (!%p2712_p7)
}
   0xf   :  { %s2807_s28 = smov 128   ;;  %s2808_s29 = smov 8  }
  0x10   :  { %47 = dma.hbm_to_vmem [thread:$0]  %s3720_s7, 2048, %s42_s19, [#allocation3], %s2807_s28, %s2807_s28, %s2808_s29  }
  0x11   :  { %2760 = dma.done.wait [#allocation3], 2048  }
  0x12   :  { %2761 = vsyncadd [#allocation3], 4294965248  ;;  %v62_v0 = vlaneseq  ;;  %v60_v6 = vld [vmem:[%s3715_s2] sm:$0xf]  ;;  %v2926_v13 = vmov 0.0   ;;  %v2928_v14 = vmov 0.0  }
  0x13   :  { %v82_v7 = vld [vmem:[%s3713_s0] sm:$0x3]   ;;  %v2930_v15 = vmov 0.0   ;;  %v2932_v16 = vmov 0.0   ;;  %s2946_s0 = smov 0  }
  0x14   :  { %v63_v1 = vshrl.u32 %v62_v0, 7  ;;  %v83_v8 = vld [vmem:[%s3714_s1] sm:$0x3]  }
  0x16   :  { %v2905_v2 = vsub.s32 0, %v63_v1  ;;  %v2907_v3 = vsub.s32 1, %v63_v1  ;;  %v2909_v4 = vsub.s32 2, %v63_v1  ;;  %v2911_v5 = vsub.s32 3, %v63_v1 }
  0x18   :  { %v65_v9 = vrot.slane %v60_v6, %v2905_v2   ;;  %v69_v10 = vrot.slane %v60_v6, %v2907_v3   ;;  %v73_v11 = vrot.slane %v60_v6, %v2909_v4   ;;  %v77_v12 = vrot.slane %v60_v6, %v2911_v5  }
  0x19 LB: > { %v2342_v17 = vld [vmem:[%s3718_s5 + $0x4] ss:$16 sps:$4 sm:$0xff]   ;;  %v2344_v18 = vld [vmem:[%s3718_s5] ss:$16 sps:$4 sm:$0xff]   ;;  %v2809_v19 = vmov 0   ;;  %v100_v49 = vpack.c.bf16 %v2800_v7, %v2800_v7  ;;  %vm581_vm0 = vcmask 1041408   ;;  %s2804_s0 = sphi %s2946_s0, %s89_s0   ;;  %v2800_v7 = vphi %v82_v7, %v3099_v7   ;;  %v2796_v8 = vphi %v83_v8, %v3096_v8   ;;  %v2792_v9 = vphi %v65_v9, %v3657_v9   ;;  %v2788_v10 = vphi %v69_v10, %v3661_v10   ;;  %v2784_v11 = vphi %v73_v11, %v3659_v11   ;;  %v2780_v12 = vphi %v77_v12, %v3663_v12   ;;  %v2776_v16 = vphi %v2932_v16, %v3732_v16   ;;  %v2772_v15 = vphi %v2930_v15, %v3731_v15   ;;  %v2768_v14 = vphi %v2928_v14, %v3730_v14   ;;  %v2764_v13 = vphi %v2926_v13, %v3729_v13  }
  0x1a   : > { %325 = vmatprep.mubr.bf16.mxu0 %v2809_v19  ;;  %366 = vmatprep.mubr.bf16.mxu1 %v2809_v19  ;;  %v2345_v20 = vld [vmem:[%s3718_s5 + $0x24] ss:$16 sps:$4 sm:$0xff]   ;;  %v2347_v21 = vld [vmem:[%s3718_s5 + $0x20] ss:$16 sps:$4 sm:$0xff]   ;;  %v2353_v23 = vld [vmem:[%s3718_s5 + $0xc] ss:$16 sps:$4 sm:$0xff]  }
  0x1b   : > { %293 = vmatprep.subr.bf16.mxu0 %v2342_v17  ;;  %2340 = vset.pattern.permute.xlu1 %v2809_v19  ;;  %v2348_v22 = vld [vmem:[%s3718_s5 + $0x44] ss:$16 sps:$4 sm:$0xff]   ;;  %v2356_v24 = vld [vmem:[%s3718_s5 + $0x8] ss:$16 sps:$4 sm:$0xff]   ;;  %v2350_v25 = vld [vmem:[%s3718_s5 + $0x40] ss:$16 sps:$4 sm:$0xff]  }
  0x1c   : > { %294 = vmatpush1.bf16.msra.mxu0 %v2344_v18  ;;  %2341 = vset.pattern.permute.xlu0 %v2809_v19  ;;  %v2351_v26 = vld [vmem:[%s3718_s5 + $0x64] ss:$16 sps:$4 sm:$0xff]   ;;  %v2359_v27 = vld [vmem:[%s3718_s5 + $0x2c] ss:$16 sps:$4 sm:$0xff]   ;;  %v2362_v28 = vld [vmem:[%s3718_s5 + $0x28] ss:$16 sps:$4 sm:$0xff]  }
  0x1d   : > { %295 = vmatprep.subr.bf16.mxu0 %v2345_v20  ;;  %334 = vmatprep.subr.bf16.mxu1 %v2353_v23  ;;  %v2355_v29 = vld [vmem:[%s3718_s5 + $0x60] ss:$16 sps:$4 sm:$0xff]   ;;  %v2357_v30 = vld [vmem:[%s3718_s5 + $0x84] ss:$16 sps:$4 sm:$0xff]   ;;  %v2365_v31 = vld [vmem:[%s3718_s5 + $0x4c] ss:$16 sps:$4 sm:$0xff]  }
  0x1e   : > { %335 = vmatpush1.bf16.msra.mxu1 %v2356_v24  ;;  %v2368_v32 = vld [vmem:[%s3718_s5 + $0x48] ss:$16 sps:$4 sm:$0xff]   ;;  %v2371_v33 = vld [vmem:[%s3718_s5 + $0x6c] ss:$16 sps:$4 sm:$0xff]   ;;  %v2361_v34 = vld [vmem:[%s3718_s5 + $0x80] ss:$16 sps:$4 sm:$0xff]  }
  0x1f   : > { %336 = vmatprep.subr.bf16.mxu1 %v2359_v27  ;;  %v2363_v35 = vld [vmem:[%s3718_s5 + $0xa4] ss:$16 sps:$4 sm:$0xff]   ;;  %v2374_v36 = vld [vmem:[%s3718_s5 + $0x68] ss:$16 sps:$4 sm:$0xff]   ;;  %v2377_v37 = vld [vmem:[%s3718_s5 + $0x8c] ss:$16 sps:$4 sm:$0xff]  }
  0x20   : > { %296 = vmatpush1.bf16.msra.mxu0 %v2347_v21  ;;  %v2367_v38 = vld [vmem:[%s3718_s5 + $0xa0] ss:$16 sps:$4 sm:$0xff]   ;;  %v2369_v39 = vld [vmem:[%s3718_s5 + $0xc4] ss:$16 sps:$4 sm:$0xff]   ;;  %v2380_v40 = vld [vmem:[%s3718_s5 + $0x88] ss:$16 sps:$4 sm:$0xff]  }
  0x21   : > { %297 = vmatprep.subr.bf16.mxu0 %v2348_v22  ;;  %v2373_v41 = vld [vmem:[%s3718_s5 + $0xc0] ss:$16 sps:$4 sm:$0xff]   ;;  %v2381_v42 = vld [vmem:[%s3718_s5 + $0xac] ss:$16 sps:$4 sm:$0xff]   ;;  %v2375_v43 = vld [vmem:[%s3718_s5 + $0xe4] ss:$16 sps:$4 sm:$0xff]  }
  0x22   : > { %337 = vmatpush1.bf16.msra.mxu1 %v2362_v28  ;;  %v2383_v44 = vld [vmem:[%s3718_s5 + $0xa8] ss:$16 sps:$4 sm:$0xff]   ;;  %v2384_v45 = vld [vmem:[%s3718_s5 + $0xcc] ss:$16 sps:$4 sm:$0xff]   ;;  %v2379_v46 = vld [vmem:[%s3718_s5 + $0xe0] ss:$16 sps:$4 sm:$0xff]  }
  0x23   : > { %338 = vmatprep.subr.bf16.mxu1 %v2365_v31  ;;  %v2386_v47 = vld [vmem:[%s3718_s5 + $0xc8] ss:$16 sps:$4 sm:$0xff]   ;;  %v2387_v48 = vld [vmem:[%s3718_s5 + $0xec] ss:$16 sps:$4 sm:$0xff]   ;;  %v379_v17 = vld [vmem:[%s3719_s6] sm:$0xf] }
  0x24   : > { %298 = vmatpush1.bf16.msra.mxu0 %v2350_v25  ;;  %v2389_v50 = vld [vmem:[%s3718_s5 + $0xe8] ss:$16 sps:$4 sm:$0xff]   ;;  %v2392_v51 = vld [vmem:[#allocation2 + $0x4] ss:$8 sps:$4 sm:$0xff]   ;;  %v2395_v53 = vld [vmem:[#allocation2 + $0x14] ss:$8 sps:$4 sm:$0xff]   ;;  %v384_v18 = vrot.slane %v379_v17, %v2905_v2  ;;  %v388_v21 = vrot.slane %v379_v17, %v2907_v3  ;;  %v396_v31 = vrot.slane %v379_v17, %v2911_v5 }
  0x25   : > { %299 = vmatprep.subr.bf16.mxu0 %v2351_v26  ;;  %v2390_v52 = vld [vmem:[#allocation2] ss:$8 sps:$4 sm:$0xff]   ;;  %v2393_v54 = vld [vmem:[#allocation2 + $0x10] ss:$8 sps:$4 sm:$0xff]   ;;  %v2398_v55 = vld [vmem:[#allocation2 + $0x24] ss:$8 sps:$4 sm:$0xff]  }
  0x26   : > { %339 = vmatpush1.bf16.msra.mxu1 %v2368_v32  ;;  %v2396_v56 = vld [vmem:[#allocation2 + $0x20] ss:$8 sps:$4 sm:$0xff]   ;;  %v2401_v57 = vld [vmem:[#allocation2 + $0x34] ss:$8 sps:$4 sm:$0xff]   ;;  %v2399_v58 = vld [vmem:[#allocation2 + $0x30] ss:$8 sps:$4 sm:$0xff]  }
  0x27   : > { %340 = vmatprep.subr.bf16.mxu1 %v2371_v33  ;;  %v2404_v59 = vld [vmem:[#allocation2 + $0x44] ss:$8 sps:$4 sm:$0xff]   ;;  %v2402_v60 = vld [vmem:[#allocation2 + $0x40] ss:$8 sps:$4 sm:$0xff]   ;;  %v2405_v61 = vld [vmem:[#allocation2 + $0x50] ss:$8 sps:$4 sm:$0xff]  }
  0x28   : > { %300 = vmatpush1.bf16.msra.mxu0 %v2355_v29  ;;  %v2407_v62 = vld [vmem:[#allocation2 + $0x54] ss:$8 sps:$4 sm:$0xff]   ;;  %v2410_v63 = vld [vmem:[#allocation2 + $0x64] ss:$8 sps:$4 sm:$0xff]   ;;  %v2408_v1 = vld [vmem:[#allocation2 + $0x60] ss:$8 sps:$4 sm:$0xff]  }
  0x29   : > { %301 = vmatprep.subr.bf16.mxu0 %v2357_v30  ;;  %v2413_v6 = vld [vmem:[#allocation2 + $0x74] ss:$8 sps:$4 sm:$0xff]   ;;  %v2411_v7 = vld [vmem:[#allocation2 + $0x70] ss:$8 sps:$4 sm:$0xff]   ;;  %s2065_s28 = sshll.u32 %s2804_s0, 1  ;;  %vm630_vm5 = vcmask 1024  }
  0x2a   : > { %341 = vmatpush1.bf16.msra.mxu1 %v2374_v36  ;;  %s602_s16 = scalar_lea.vmem %s3716_s3, %s2065_s28  ;;  %s683_s29 = scalar_lea.vmem %s3725_s12, %s2065_s28 }
  0x2b   : > { %342 = vmatprep.subr.bf16.mxu1 %v2377_v37  ;;  %s89_s0 = sadd.s32 1, %s2804_s0  }
  0x2c   : > { %302 = vmatpush1.bf16.msra.mxu0 %v2361_v34  ;;  %p86_p8 = scmp.ge.s32.totalorder %s89_s0, 8  }
  0x2d   : > { %303 = vmatprep.subr.bf16.mxu0 %v2363_v35  ;;  %vm1954_vm13 = vcmask (%p86_p8), 7168   ;;  %vm1956_vm14 = vcmask (%p86_p8), 8192  }
  0x2e   : > { %343 = vmatpush1.bf16.msra.mxu1 %v2380_v40 }
  0x2f   : > { %344 = vmatprep.subr.bf16.mxu1 %v2381_v42 }
  0x30   : > { %304 = vmatpush1.bf16.msra.mxu0 %v2367_v38 }
  0x31   : > { %305 = vmatprep.subr.bf16.mxu0 %v2369_v39 }
  0x32   : > { %345 = vmatpush1.bf16.msra.mxu1 %v2383_v44 }
  0x33   : > { %346 = vmatprep.subr.bf16.mxu1 %v2384_v45 }
  0x34   : > { %306 = vmatpush1.bf16.msra.mxu0 %v2373_v41 }
  0x35   : > { %307 = vmatprep.subr.bf16.mxu0 %v2375_v43 }
  0x36   : > { %347 = vmatpush1.bf16.msra.mxu1 %v2386_v47 }
  0x37   : > { %348 = vmatprep.subr.bf16.mxu1 %v2387_v48 }
  0x38   : > { %308 = vmatpush1.bf16.msra.mxu0 %v2379_v46 }
  0x39   : > { %538 = vmatprep.subr.bf16.mxu0 %v2392_v51 }
  0x3a   : > { %349 = vmatpush1.bf16.msra.mxu1 %v2389_v50 }
  0x3b   : > { %326 = vmatmul.mubr.bf16.vlgmr.msra.gmra.mrb[0].mxu0 %v100_v49 }
  0x3c   : > { %570 = vmatprep.mubr.bf16.mxu0 %v2809_v19  ;;  %539 = vmatpush1.bf16.msra.mxu0 %v2390_v52  ;;  %v446_v52 = vld [vmem:[%s3721_s8] sm:$0x3] }
  0x3d   : > { %367 = vmatmul.mubr.bf16.vlgmr.msra.gmra.mrb[0].mxu1 %v100_v49  ;;  %540 = vmatprep.subr.bf16.mxu0 %v2395_v53  ;;  %v451_v53 = vrot.slane %v446_v52, %v2905_v2 }
  0x40   : > { %541 = vmatpush1.bf16.msra.mxu0 %v2393_v54  ;;  %v455_v54 = vrot.slane %v446_v52, %v2907_v3  ;;  %v2435_v52 = vld [vmem:[%s3717_s4 + $0x68] ss:$16 sps:$4 sm:$0xff]  }
  0x41   : > { %542 = vmatprep.subr.bf16.mxu0 %v2398_v55 }
  0x44   : > { %543 = vmatpush1.bf16.msra.mxu0 %v2396_v56 }
  0x45   : > { %544 = vmatprep.subr.bf16.mxu0 %v2401_v57 }
  0x48   : > { %545 = vmatpush1.bf16.msra.mxu0 %v2399_v58 }
  0x49   : > { %546 = vmatprep.subr.bf16.mxu0 %v2404_v59 }
  0x4c   : > { %547 = vmatpush1.bf16.msra.mxu0 %v2402_v60 }
  0x4d   : > { %548 = vmatprep.subr.bf16.mxu0 %v2407_v62 }
  0x50   : > { %549 = vmatpush1.bf16.msra.mxu0 %v2405_v61 }
  0x51   : > { %550 = vmatprep.subr.bf16.mxu0 %v2410_v63 }
  0x54   : > { %551 = vmatpush1.bf16.msra.mxu0 %v2408_v1 }
  0x55   : > { %552 = vmatprep.subr.bf16.mxu0 %v2413_v6 }
  0x58   : > { %553 = vmatpush1.bf16.msra.mxu0 %v2411_v7 }
 0x10e   : > { %v327_v20 = vpop.f32.mrb[0].mxu0 }
 0x10f   : > { %v375_v22 = vadd.f32 %v2792_v9, %v327_v20  ;;  %v329_v23 = vpop.f32.mrb[1].mxu0 }
 0x110   : > { %v376_v24 = vadd.f32 %v2788_v10, %v329_v23  ;;  %v331_v25 = vpop.f32.mrb[2].mxu0  ;;  %v368_v30 = vpop.f32.mrb[0].mxu1  ;;  %v392_v10 = vrot.slane %v379_v17, %v2909_v4 }
 0x111   : > { %v401_v26 = vadd.f32 %v384_v18, %v375_v22  ;;  %v332_v27 = vpop.f32.mrb[3].mxu0  ;;  %v370_v33 = vpop.f32.mrb[1].mxu1  ;;  %v377_v37 = vadd.f32 %v2784_v11, %v368_v30 }
 0x112   : > { %v402_v28 = vadd.f32 %v388_v21, %v376_v24  ;;  %v378_v34 = vadd.f32 %v2780_v12, %v370_v33  ;;  %v372_v35 = vpop.f32.mrb[2].mxu1  ;;  %v3113_v21 = vand.u32 127, %v62_v0 }
 0x113   : > { %v2046_v29 = vmul.f32 -1.442695, %v401_v26  ;;  %v373_v36 = vpop.f32.mrb[3].mxu1  ;;  %v403_v39 = vadd.f32 %v392_v10, %v377_v37 }
 0x114   : > { %v2047_v32 = vmul.f32 -1.442695, %v402_v28  ;;  %v404_v9 = vadd.f32 %v396_v31, %v378_v34  ;;  %v3116_v22 = vadd.s32 128, %v3113_v21 }
 0x115   : > { %2654 = vpow2.f32 %v2046_v29 }
 0x116   : > { %2656 = vpow2.f32 %v2047_v32  ;;  %v2048_v38 = vmul.f32 -1.442695, %v404_v9 }
 0x118   : > { %2658 = vpow2.f32 %v2048_v38 }
 0x119   : > { %2660 = vtanh.f32 %v403_v39  ;;  %v2414_v39 = vld [vmem:[%s3717_s4] ss:$16 sps:$4 sm:$0xff]  }
 0x11f   : > { %v2655_v40 = vpop.eup %2654 }
 0x120   : > { %v2657_v41 = vpop.eup %2656  ;;  %v408_v42 = vadd.f32 1.0, %v2655_v40  ;;  %v2416_v40 = vld [vmem:[%s3717_s4 + $0x4] ss:$16 sps:$4 sm:$0xff]  }
 0x121   : > { %v414_v43 = vadd.f32 1.0, %v2657_v41  ;;  %v2417_v41 = vld [vmem:[%s3717_s4 + $0x8] ss:$16 sps:$4 sm:$0xff]   ;;  %1075 = vmatprep.subr.bf16.mxu1 %v2416_v40 }
 0x122   : > { %2662 = vrcp.f32 %v408_v42  ;;  %v2659_v44 = vpop.eup %2658  ;;  %v2419_v42 = vld [vmem:[%s3717_s4 + $0xc] ss:$16 sps:$4 sm:$0xff]   ;;  %1076 = vmatpush1.bf16.msra.mxu1 %v2414_v39  ;;  %v2480_v39 = vld [vmem:[%s3717_s4 + $0x160] ss:$16 sps:$4 sm:$0xff]   ;;  %v2483_v40 = vld [vmem:[%s3717_s4 + $0x168] ss:$16 sps:$4 sm:$0xff]  }
 0x123   : > { %2664 = vrcp.f32 %v414_v43  ;;  %v2661_v12 = vpop.eup %2660  ;;  %v421_v46 = vadd.f32 1.0, %v2659_v44  ;;  %v2422_v43 = vld [vmem:[%s3717_s4 + $0x24] ss:$16 sps:$4 sm:$0xff]   ;;  %v2425_v44 = vld [vmem:[%s3717_s4 + $0x2c] ss:$16 sps:$4 sm:$0xff]   ;;  %1116 = vmatprep.subr.bf16.mxu0 %v2419_v42 }
 0x124   : > { %1077 = vmatprep.subr.bf16.mxu1 %v2422_v43  ;;  %v2491_v42 = vld [vmem:[%s3717_s4 + $0x18c] ss:$16 sps:$4 sm:$0xff]   ;;  %v2486_v43 = vld [vmem:[%s3717_s4 + $0x180] ss:$16 sps:$4 sm:$0xff]  }
 0x125   : > { %2666 = vrcp.f32 %v421_v46  ;;  %v2428_v46 = vld [vmem:[%s3717_s4 + $0x44] ss:$16 sps:$4 sm:$0xff]  }
 0x12c   : > { %v2663_v45 = vpop.eup %2662 }
 0x12d   : > { %v2665_v47 = vpop.eup %2664  ;;  %v425_v48 = vmul.f32 %v2663_v45, %v2661_v12  ;;  %v2420_v12 = vld [vmem:[%s3717_s4 + $0x20] ss:$16 sps:$4 sm:$0xff]   ;;  %v2423_v45 = vld [vmem:[%s3717_s4 + $0x28] ss:$16 sps:$4 sm:$0xff]  }
 0x12e   : > { %v424_v11 = vmul.f32 %v2796_v8, %v2665_v47  ;;  %v2431_v47 = vld [vmem:[%s3717_s4 + $0x4c] ss:$16 sps:$4 sm:$0xff]   ;;  %1078 = vmatpush1.bf16.msra.mxu1 %v2420_v12  ;;  %v2494_v12 = vld [vmem:[%s3717_s4 + $0x1a4] ss:$16 sps:$4 sm:$0xff]  }
 0x12f   : > { %v2667_v49 = vpop.eup %2666  ;;  %1079 = vmatprep.subr.bf16.mxu1 %v2428_v46  ;;  %v2492_v46 = vld [vmem:[%s3717_s4 + $0x1a0] ss:$16 sps:$4 sm:$0xff]  }
 0x130   : > { %v3096_v8 = vadd.f32 %v425_v48, %v424_v11   ;;  %v2426_v48 = vld [vmem:[%s3717_s4 + $0x40] ss:$16 sps:$4 sm:$0xff]   ;;  %v2429_v11 = vld [vmem:[%s3717_s4 + $0x48] ss:$16 sps:$4 sm:$0xff]  }
 0x132   : > { %2668 = vtanh.f32 %v3096_v8  ;;  %1080 = vmatpush1.bf16.msra.mxu1 %v2426_v48  ;;  %v2500_v48 = vld [vmem:[%s3717_s4 + $0x1c4] ss:$16 sps:$4 sm:$0xff]  }
 0x13c   : > { %v2669_v50 = vpop.eup %2668 }
 0x13d   : > { %v3099_v7 = vmul.f32 %v2669_v50, %v2667_v49   ;;  %v2434_v49 = vld [vmem:[%s3717_s4 + $0x64] ss:$16 sps:$4 sm:$0xff]   ;;  %v2437_v50 = vld [vmem:[%s3717_s4 + $0x6c] ss:$16 sps:$4 sm:$0xff]  }
 0x13e   : > { %1081 = vmatprep.subr.bf16.mxu1 %v2434_v49  ;;  %v2498_v49 = vld [vmem:[%s3717_s4 + $0x1c0] ss:$16 sps:$4 sm:$0xff]  }
 0x13f   : > { %v429_v51 = vpack.c.bf16 %v3099_v7, %v3099_v7 }
 0x141   : > { %571 = vmatmul.mubr.bf16.vlgmr.msra.gmra.mrb[4].mxu0 %v429_v51  ;;  %v2432_v51 = vld [vmem:[%s3717_s4 + $0x60] ss:$16 sps:$4 sm:$0xff]  }
 0x142   : > { %1117 = vmatpush1.bf16.msra.mxu0 %v2417_v41  ;;  %1082 = vmatpush1.bf16.msra.mxu1 %v2432_v51  ;;  %v2488_v41 = vld [vmem:[%s3717_s4 + $0x184] ss:$16 sps:$4 sm:$0xff]  }
 0x143   : > { %1118 = vmatprep.subr.bf16.mxu0 %v2425_v44  ;;  %v2489_v44 = vld [vmem:[%s3717_s4 + $0x188] ss:$16 sps:$4 sm:$0xff]  }
 0x146   : > { %1119 = vmatpush1.bf16.msra.mxu0 %v2423_v45  ;;  %v2497_v45 = vld [vmem:[%s3717_s4 + $0x1ac] ss:$16 sps:$4 sm:$0xff]  }
 0x147   : > { %1120 = vmatprep.subr.bf16.mxu0 %v2431_v47  ;;  %v2495_v47 = vld [vmem:[%s3717_s4 + $0x1a8] ss:$16 sps:$4 sm:$0xff]  }
 0x14a   : > { %1121 = vmatpush1.bf16.msra.mxu0 %v2429_v11  ;;  %v2503_v11 = vld [vmem:[%s3717_s4 + $0x1cc] ss:$16 sps:$4 sm:$0xff]  }
 0x14b   : > { %1122 = vmatprep.subr.bf16.mxu0 %v2437_v50  ;;  %v2501_v50 = vld [vmem:[%s3717_s4 + $0x1c8] ss:$16 sps:$4 sm:$0xff]  }
 0x14e   : > { %1123 = vmatpush1.bf16.msra.mxu0 %v2435_v52 }
 0x214   : > { %v572_v55 = vpop.f32.mrb[4].mxu0 }
 0x215   : > { %v573_v56 = vadd.f32 %v572_v55, %v451_v53  ;;  %v574_v57 = vpop.f32.mrb[5].mxu0  ;;  %v2440_v53 = vld [vmem:[%s3717_s4 + $0x84] ss:$16 sps:$4 sm:$0xff]   ;;  %v2438_v55 = vld [vmem:[%s3717_s4 + $0x80] ss:$16 sps:$4 sm:$0xff]  }
 0x216   : > { %v575_v58 = vadd.f32 %v574_v57, %v455_v54  ;;  %v576_v59 = vpop.f32.mrb[6].mxu0  ;;  %v2443_v54 = vld [vmem:[%s3717_s4 + $0x8c] ss:$16 sps:$4 sm:$0xff]   ;;  %1083 = vmatprep.subr.bf16.mxu1 %v2440_v53  ;;  %v2446_v57 = vld [vmem:[%s3717_s4 + $0xa4] ss:$16 sps:$4 sm:$0xff]  }
 0x217   : > { %v577_v60 = vpop.f32.mrb[7].mxu0  ;;  %v654_v61 = vsel %vm581_vm0, %v573_v56, -inf  ;;  %v579_v62 = vmul.f32 1.1111112, %v573_v56  ;;  %1124 = vmatprep.subr.bf16.mxu0 %v2443_v54  ;;  %1084 = vmatpush1.bf16.msra.mxu1 %v2438_v55  ;;  %v2444_v59 = vld [vmem:[%s3717_s4 + $0xa0] ss:$16 sps:$4 sm:$0xff]  }
 0x218   : > { %v655_v63 = vsel %vm581_vm0, %v575_v58, -inf  ;;  %v580_v1 = vmul.f32 1.1111112, %v575_v58  ;;  %1085 = vmatprep.subr.bf16.mxu1 %v2446_v57  ;;  %v2447_v60 = vld [vmem:[%s3717_s4 + $0xa8] ss:$16 sps:$4 sm:$0xff]  }
 0x219   : > { %v656_v6 = vmax.f32 %v654_v61, %v655_v63  ;;  %v582_v17 = vsel %vm581_vm0, %v579_v62, -inf  ;;  %v2452_v61 = vld [vmem:[%s3717_s4 + $0xc4] ss:$16 sps:$4 sm:$0xff]   ;;  %v2450_v63 = vld [vmem:[%s3717_s4 + $0xc0] ss:$16 sps:$4 sm:$0xff]  }
 0x21a   : > { %v583_v18 = vsel %vm581_vm0, %v580_v1, -inf  ;;  %v3322_v55 = vld [vmem:[%s602_s16] sm:$0x3]  ;;  %v2507_v57 = vld [vmem:[%s3717_s4 + $0x1e8] ss:$16 sps:$4 sm:$0xff]  }
 0x21b   : > { %657 = vmax.xlane.f32.xlu0 %v656_v6  ;;  %v584_v20 = vmax.f32 %v582_v17, %v583_v18  ;;  %1086 = vmatpush1.bf16.msra.mxu1 %v2444_v59  ;;  %v2458_v6 = vld [vmem:[%s3717_s4 + $0xe4] ss:$16 sps:$4 sm:$0xff]   ;;  %v2461_v17 = vld [vmem:[%s3717_s4 + $0xec] ss:$16 sps:$4 sm:$0xff]   ;;  %v2456_v18 = vld [vmem:[%s3717_s4 + $0xe0] ss:$16 sps:$4 sm:$0xff]  }
 0x21c   : > { %1087 = vmatprep.subr.bf16.mxu1 %v2452_v61  ;;  %v2515_v59 = vld [vmem:[%s3723_s10 + $0xc] ss:$16 sps:$4 sm:$0xff]   ;;  %vm623_vm12 = vcmp.ne.s32.totalorder %v3322_v55, 0 }
 0x21d   : > { %585 = vmax.xlane.f32.xlu1 %v584_v20  ;;  %v2459_v20 = vld [vmem:[%s3717_s4 + $0xe8] ss:$16 sps:$4 sm:$0xff]  }
 0x21f   : > { %1088 = vmatpush1.bf16.msra.mxu1 %v2450_v63 }
 0x220   : > { %1089 = vmatprep.subr.bf16.mxu1 %v2458_v6 }
 0x223   : > { %1090 = vmatpush1.bf16.msra.mxu1 %v2456_v18 }
 0x2a8   : > { %v658_v23 = vpop.xlane.xlu0 %657 }
 0x2a9   : > { %vm659_vm1 = vcmp.ge.f32.partialorder %v573_v56, %v658_v23  ;;  %vm660_vm2 = vcmp.ge.f32.partialorder %v575_v58, %v658_v23  ;;  %v2441_v56 = vld [vmem:[%s3717_s4 + $0x88] ss:$16 sps:$4 sm:$0xff]   ;;  %v2449_v58 = vld [vmem:[%s3717_s4 + $0xac] ss:$16 sps:$4 sm:$0xff]   ;;  %v2464_v23 = vld [vmem:[%s3717_s4 + $0x104] ss:$16 sps:$4 sm:$0xff]  }
 0x2aa   : > { %v661_v24 = vsel %vm659_vm1, %v3113_v21, 256  ;;  %v662_v25 = vsel %vm660_vm2, %v3116_v22, 256  ;;  %v586_v26 = vpop.xlane.xlu1 %585  ;;  %1125 = vmatpush1.bf16.msra.mxu0 %v2441_v56  ;;  %1091 = vmatprep.subr.bf16.mxu1 %v2464_v23  ;;  %v2506_v56 = vld [vmem:[%s3717_s4 + $0x1e4] ss:$16 sps:$4 sm:$0xff]  }
 0x2ab   : > { %v663_v27 = vsel %vm581_vm0, %v661_v24, 2147483647  ;;  %v664_v28 = vsel %vm581_vm0, %v662_v25, 2147483647  ;;  %v587_v29 = vsub.f32 %v579_v62, %v586_v26  ;;  %v588_v30 = vsub.f32 %v580_v1, %v586_v26  ;;  %1126 = vmatprep.subr.bf16.mxu0 %v2449_v58  ;;  %v2455_v62 = vld [vmem:[%s3717_s4 + $0xcc] ss:$16 sps:$4 sm:$0xff]  }
 0x2ac   : > { %vm665_vm3 = vcmp.lt.s32.totalorder %v663_v27, %v664_v28  ;;  %v2453_v1 = vld [vmem:[%s3717_s4 + $0xc8] ss:$16 sps:$4 sm:$0xff]   ;;  %v2467_v24 = vld [vmem:[%s3717_s4 + $0x10c] ss:$16 sps:$4 sm:$0xff]   ;;  %v2462_v25 = vld [vmem:[%s3717_s4 + $0x100] ss:$16 sps:$4 sm:$0xff]  }
 0x2ad   : > { %v589_v31 = vmul.f32 1.442695, %v587_v29  ;;  %v591_v32 = vmul.f32 1.442695, %v588_v30  ;;  %v3122_v33 = vsel %vm665_vm3, %v663_v27, %v664_v28  ;;  %v2465_v26 = vld [vmem:[%s3717_s4 + $0x108] ss:$16 sps:$4 sm:$0xff]   ;;  %1092 = vmatpush1.bf16.msra.mxu1 %v2462_v25 }
 0x2ae   : > { %v668_v34 = vshra.s32 %v3122_v33, 16  ;;  %1127 = vmatpush1.bf16.msra.mxu0 %v2447_v60  ;;  %v2470_v27 = vld [vmem:[%s3717_s4 + $0x124] ss:$16 sps:$4 sm:$0xff]   ;;  %v2473_v28 = vld [vmem:[%s3717_s4 + $0x12c] ss:$16 sps:$4 sm:$0xff]   ;;  %v667_v51 = vand.u32 65535, %v3122_v33 }
 0x2af   : > { %2670 = vpow2.f32 %v589_v31  ;;  %1128 = vmatprep.subr.bf16.mxu0 %v2455_v62  ;;  %v2468_v29 = vld [vmem:[%s3717_s4 + $0x120] ss:$16 sps:$4 sm:$0xff]   ;;  %1093 = vmatprep.subr.bf16.mxu1 %v2470_v27  ;;  %v2471_v30 = vld [vmem:[%s3717_s4 + $0x128] ss:$16 sps:$4 sm:$0xff]   ;;  %v2476_v31 = vld [vmem:[%s3717_s4 + $0x144] ss:$16 sps:$4 sm:$0xff]  }
 0x2b0   : > { %2672 = vpow2.f32 %v591_v32  ;;  %v3125_v35 = vcvt.s32.f32 %v668_v34  ;;  %v2479_v32 = vld [vmem:[%s3717_s4 + $0x14c] ss:$16 sps:$4 sm:$0xff]   ;;  %v2474_v34 = vld [vmem:[%s3717_s4 + $0x140] ss:$16 sps:$4 sm:$0xff]   ;;  %v669_v53 = vcvt.s32.f32 %v667_v51  ;;  %v2512_v58 = vld [vmem:[%s3723_s10 + $0x4] ss:$16 sps:$4 sm:$0xff]  }
 0x2b1   : > { %1094 = vmatpush1.bf16.msra.mxu1 %v2468_v29  ;;  %v2509_v33 = vld [vmem:[%s3717_s4 + $0x1ec] ss:$16 sps:$4 sm:$0xff]   ;;  %v2513_v25 = vld [vmem:[%s3723_s10 + $0x8] ss:$16 sps:$4 sm:$0xff]   ;;  %v2811_v29 = vmov 1.0|1.0  }
 0x2b2   : > { %671 = vmin.xlane.f32.xlu0 %v3125_v35  ;;  %1129 = vmatpush1.bf16.msra.mxu0 %v2453_v1  ;;  %v2521_v27 = vld [vmem:[%s3723_s10 + $0x2c] ss:$16 sps:$4 sm:$0xff]  }
 0x2b3   : > { %1130 = vmatprep.subr.bf16.mxu0 %v2461_v17  ;;  %1095 = vmatprep.subr.bf16.mxu1 %v2476_v31  ;;  %v2519_v31 = vld [vmem:[%s3723_s10 + $0x28] ss:$16 sps:$4 sm:$0xff]   ;;  %v2551_v51 = vld [vmem:[%s3723_s10 + $0xcc] ss:$16 sps:$4 sm:$0xff]  }
 0x2b5   : > { %1096 = vmatpush1.bf16.msra.mxu1 %v2474_v34 }
 0x2b6   : > { %1131 = vmatpush1.bf16.msra.mxu0 %v2459_v20 }
 0x2b7   : > { %1132 = vmatprep.subr.bf16.mxu0 %v2467_v24  ;;  %v2510_v24 = vld [vmem:[%s3723_s10] ss:$16 sps:$4 sm:$0xff]  }
 0x2b9   : > { %v3128_v36 = vpop.eup %2670 }
 0x2ba   : > { %v3130_v9 = vpop.eup %2672  ;;  %v593_v37 = vsel %vm581_vm0, %v3128_v36, 0.0  ;;  %1133 = vmatpush1.bf16.msra.mxu0 %v2465_v26 }
 0x2bb   : > { %v594_v10 = vsel %vm581_vm0, %v3130_v9, 0.0  ;;  %1134 = vmatprep.subr.bf16.mxu0 %v2473_v28 }
 0x2bc   : > { %v595_v38 = vadd.f32 %v594_v10, %v593_v37  ;;  %v2477_v37 = vld [vmem:[%s3717_s4 + $0x148] ss:$16 sps:$4 sm:$0xff]   ;;  %v2482_v10 = vld [vmem:[%s3717_s4 + $0x164] ss:$16 sps:$4 sm:$0xff]  }
 0x2bd   : > { %1097 = vmatprep.subr.bf16.mxu1 %v2482_v10  ;;  %v2524_v10 = vld [vmem:[%s3723_s10 + $0x44] ss:$16 sps:$4 sm:$0xff]  }
 0x2be   : > { %596 = vadd.xlane.f32.xlu0 %v595_v38  ;;  %1135 = vmatpush1.bf16.msra.mxu0 %v2471_v30  ;;  %v2485_v38 = vld [vmem:[%s3717_s4 + $0x16c] ss:$16 sps:$4 sm:$0xff]   ;;  %v2516_v30 = vld [vmem:[%s3723_s10 + $0x20] ss:$16 sps:$4 sm:$0xff]  }
 0x2bf   : > { %1136 = vmatprep.subr.bf16.mxu0 %v2479_v32  ;;  %1098 = vmatpush1.bf16.msra.mxu1 %v2480_v39  ;;  %v2522_v39 = vld [vmem:[%s3723_s10 + $0x40] ss:$16 sps:$4 sm:$0xff]  }
 0x2c0   : > { %1099 = vmatprep.subr.bf16.mxu1 %v2488_v41  ;;  %v2530_v41 = vld [vmem:[%s3723_s10 + $0x64] ss:$16 sps:$4 sm:$0xff]  }
 0x2c2   : > { %1137 = vmatpush1.bf16.msra.mxu0 %v2477_v37 }
 0x2c3   : > { %1138 = vmatprep.subr.bf16.mxu0 %v2485_v38  ;;  %1100 = vmatpush1.bf16.msra.mxu1 %v2486_v43  ;;  %v2527_v38 = vld [vmem:[%s3723_s10 + $0x4c] ss:$16 sps:$4 sm:$0xff]   ;;  %v2531_v43 = vld [vmem:[%s3723_s10 + $0x68] ss:$16 sps:$4 sm:$0xff]  }
 0x2c4   : > { %1101 = vmatprep.subr.bf16.mxu1 %v2494_v12  ;;  %v2539_v12 = vld [vmem:[%s3723_s10 + $0x8c] ss:$16 sps:$4 sm:$0xff]  }
 0x2c6   : > { %1139 = vmatpush1.bf16.msra.mxu0 %v2483_v40  ;;  %v2525_v40 = vld [vmem:[%s3723_s10 + $0x48] ss:$16 sps:$4 sm:$0xff]  }
 0x2c7   : > { %1140 = vmatprep.subr.bf16.mxu0 %v2491_v42  ;;  %1102 = vmatpush1.bf16.msra.mxu1 %v2492_v46  ;;  %v2528_v42 = vld [vmem:[%s3723_s10 + $0x60] ss:$16 sps:$4 sm:$0xff]   ;;  %v2537_v46 = vld [vmem:[%s3723_s10 + $0x88] ss:$16 sps:$4 sm:$0xff]  }
 0x2c8   : > { %1103 = vmatprep.subr.bf16.mxu1 %v2500_v48  ;;  %v2545_v48 = vld [vmem:[%s3723_s10 + $0xac] ss:$16 sps:$4 sm:$0xff]  }
 0x2ca   : > { %1141 = vmatpush1.bf16.msra.mxu0 %v2489_v44  ;;  %v2536_v44 = vld [vmem:[%s3723_s10 + $0x84] ss:$16 sps:$4 sm:$0xff]  }
 0x2cb   : > { %1142 = vmatprep.subr.bf16.mxu0 %v2497_v45  ;;  %1104 = vmatpush1.bf16.msra.mxu1 %v2498_v49  ;;  %v2534_v45 = vld [vmem:[%s3723_s10 + $0x80] ss:$16 sps:$4 sm:$0xff]   ;;  %v2543_v49 = vld [vmem:[%s3723_s10 + $0xa8] ss:$16 sps:$4 sm:$0xff]  }
 0x2cc   : > { %1105 = vmatprep.subr.bf16.mxu1 %v2506_v56  ;;  %v2557_v56 = vld [vmem:[%s3723_s10 + $0xec] ss:$16 sps:$4 sm:$0xff]  }
 0x2ce   : > { %1143 = vmatpush1.bf16.msra.mxu0 %v2495_v47  ;;  %v2542_v47 = vld [vmem:[%s3723_s10 + $0xa4] ss:$16 sps:$4 sm:$0xff]  }
 0x2cf   : > { %1144 = vmatprep.subr.bf16.mxu0 %v2503_v11  ;;  %v2540_v11 = vld [vmem:[%s3723_s10 + $0xa0] ss:$16 sps:$4 sm:$0xff]  }
 0x2d2   : > { %1145 = vmatpush1.bf16.msra.mxu0 %v2501_v50  ;;  %v2548_v50 = vld [vmem:[%s3723_s10 + $0xc4] ss:$16 sps:$4 sm:$0xff]  }
 0x2d3   : > { %1146 = vmatprep.subr.bf16.mxu0 %v2509_v33  ;;  %v2552_v33 = vld [vmem:[%s3723_s10 + $0xe0] ss:$16 sps:$4 sm:$0xff]  }
 0x2d6   : > { %1147 = vmatpush1.bf16.msra.mxu0 %v2507_v57  ;;  %v2560_v57 = vld [vmem:[%s3722_s9 + $0x4] ss:$16 sps:$4 sm:$0xff]  }
 0x2d7   : > { %1457 = vmatprep.subr.bf16.mxu0 %v2515_v59  ;;  %v1223_v59 = vpack.c.bf16 %v2776_v16, %v2776_v16  ;;  %v2569_v16 = vld [vmem:[%s3722_s9 + $0x2c] ss:$16 sps:$4 sm:$0xff]  }
 0x33f   : > { %v672_v52 = vpop.xlane.xlu0 %671 }
 0x340   : > { %vm673_vm4 = vcmp.eq.f32.partialorder %v3125_v35, %v672_v52  ;;  %v2504_v35 = vld [vmem:[%s3717_s4 + $0x1e0] ss:$16 sps:$4 sm:$0xff]   ;;  %v678_v61 = vcvt.f32.s32 %v672_v52 }
 0x341   : > { %v674_v54 = vsel %vm673_vm4, %v669_v53, inf  ;;  %1106 = vmatpush1.bf16.msra.mxu1 %v2504_v35  ;;  %v2546_v52 = vld [vmem:[%s3723_s10 + $0xc0] ss:$16 sps:$4 sm:$0xff]   ;;  %v2549_v53 = vld [vmem:[%s3723_s10 + $0xc8] ss:$16 sps:$4 sm:$0xff]  }
 0x342   : > { %675 = vmin.xlane.f32.xlu1 %v674_v54  ;;  %1416 = vmatprep.subr.bf16.mxu1 %v2512_v58  ;;  %v679_v1 = vshll.u32 %v678_v61, 16  ;;  %v2554_v54 = vld [vmem:[%s3723_s10 + $0xe4] ss:$16 sps:$4 sm:$0xff]   ;;  %v2555_v35 = vld [vmem:[%s3723_s10 + $0xe8] ss:$16 sps:$4 sm:$0xff]  }
 0x343   : > { %v2563_v58 = vld [vmem:[%s3722_s9 + $0xc] ss:$16 sps:$4 sm:$0xff]   ;;  %v2561_v61 = vld [vmem:[%s3722_s9 + $0x8] ss:$16 sps:$4 sm:$0xff]  }
 0x34b   : > { %v597_v60 = vpop.xlane.xlu0 %596 }
 0x34c   : > { %2674 = vrcp.f32 %v597_v60  ;;  %v2558_v60 = vld [vmem:[%s3722_s9] ss:$16 sps:$4 sm:$0xff]  }
 0x353   : > { %608 = vperm.xlu1 %2340, %v3322_v55  }
 0x356   : > { %v2675_v63 = vpop.eup %2674 }
 0x357   : > { %v3347_v18 = vmul.f32 %v2675_v63, %v3128_v36  ;;  %v3350_v20 = vmul.f32 %v2675_v63, %v3130_v9  ;;  %v2810_v36 = vmov 0.0   ;;  %v2566_v63 = vld [vmem:[%s3722_s9 + $0x24] ss:$16 sps:$4 sm:$0xff]  }
 0x3cf   : > { %v676_v62 = vpop.xlane.xlu1 %675 }
 0x3d0   : > { %v677_v6 = vcvt.f32.s32 %v676_v62  ;;  %v1158_v62 = vpack.c.bf16 %v3350_v20, %v3350_v20 }
 0x3d2   : > { %v680_v17 = vadd.s32 %v679_v1, %v677_v6  ;;  %v2564_v1 = vld [vmem:[%s3722_s9 + $0x20] ss:$16 sps:$4 sm:$0xff]   ;;  %v2567_v6 = vld [vmem:[%s3722_s9 + $0x28] ss:$16 sps:$4 sm:$0xff]  }
 0x3d3   : > { %v609_v23 = vpop.permute.xlu1 %608 }
 0x3d4   : > { %vm610_vm6 = vcmp.eq.s32.totalorder %v3113_v21, %v609_v23  ;;  %vm611_vm7 = vcmp.eq.s32.totalorder %v3116_v22, %v609_v23  ;;  %vm682_vm8 = vcmp.eq.s32.totalorder %v3116_v22, %v680_v17  ;;  %vm681_vm9 = vcmp.eq.s32.totalorder %v3113_v21, %v680_v17  ;;  %684 = vst.msk [vmem:[%s683_s29] sm:$0x3] %vm630_vm5, %v680_v17  ;;  %v2518_v22 = vld [vmem:[%s3723_s10 + $0x24] ss:$16 sps:$4 sm:$0xff]   ;;  %v2570_v23 = vld [vmem:[%s3722_s9 + $0x40] ss:$16 sps:$4 sm:$0xff]  }
 0x3d5   : > { %v2066_v9 = vsel %vm610_vm6, 1.0, %v2810_v36  ;;  %v2067_v26 = vsel %vm611_vm7, 1.0, %v2810_v36  ;;  %vm2135_vm10 = vmpackc.low %vm682_vm8, %vm682_vm8  ;;  %v2572_v17 = vld [vmem:[%s3722_s9 + $0x44] ss:$16 sps:$4 sm:$0xff]  }
 0x3d6   : > { %v616_v28 = vmul.f32 %v2066_v9, %v3347_v18  ;;  %v617_v21 = vmul.f32 %v2067_v26, %v3350_v20  ;;  %2136 = vmatprep.mubr.msk.bf16.mxu1 %vm2135_vm10, %v2811_v29  ;;  %2140 = vmatprep.mubr.msk.bf16.mxu0 %vm2135_vm10, %v2811_v29  ;;  %vm2137_vm11 = vmpackc.low %vm681_vm9, %vm681_vm9  ;;  %v2575_v20 = vld [vmem:[%s3722_s9 + $0x4c] ss:$16 sps:$4 sm:$0xff]   ;;  %v2576_v26 = vld [vmem:[%s3722_s9 + $0x60] ss:$16 sps:$4 sm:$0xff]  }
 0x3d7   : > { %2138 = vmatmul.mubr.msk.bf16.vlgmr.msra.gmra.mrb[4].mxu1 %vm2137_vm11, %v2811_v29  ;;  %2142 = vmatmul.mubr.msk.bf16.vlgmr.msra.gmra.mrb[8].mxu0 %vm2137_vm11, %v2811_v29  ;;  %v2581_v9 = vld [vmem:[%s3722_s9 + $0x6c] ss:$16 sps:$4 sm:$0xff]   ;;  %v2585_v29 = vld [vmem:[%s3722_s9 + $0x88] ss:$16 sps:$4 sm:$0xff]  }
 0x3d8   : > { %1417 = vmatpush1.bf16.msra.mxu1 %v2510_v24  ;;  %1458 = vmatpush1.bf16.msra.mxu0 %v2513_v25  ;;  %v618_v32 = vsel %vm581_vm0, %v616_v28, 0.0  ;;  %v619_v34 = vsel %vm581_vm0, %v617_v21, 0.0  ;;  %v2573_v24 = vld [vmem:[%s3722_s9 + $0x48] ss:$16 sps:$4 sm:$0xff]   ;;  %v2578_v25 = vld [vmem:[%s3722_s9 + $0x64] ss:$16 sps:$4 sm:$0xff]  }
 0x3d9   : > { %1418 = vmatprep.subr.bf16.mxu1 %v2518_v22  ;;  %1459 = vmatprep.subr.bf16.mxu0 %v2521_v27  ;;  %v620_v37 = vadd.f32 %v619_v34, %v618_v32  ;;  %v2579_v22 = vld [vmem:[%s3722_s9 + $0x68] ss:$16 sps:$4 sm:$0xff]   ;;  %v2584_v27 = vld [vmem:[%s3722_s9 + $0x84] ss:$16 sps:$4 sm:$0xff]   ;;  %v2587_v28 = vld [vmem:[%s3722_s9 + $0x8c] ss:$16 sps:$4 sm:$0xff]  }
 0x3da   : > { %1448 = vmatprep.mubr.bf16.mxu1 %v2809_v19  ;;  %1489 = vmatprep.mubr.bf16.mxu0 %v2809_v19  ;;  %v2533_v19 = vld [vmem:[%s3723_s10 + $0x6c] ss:$16 sps:$4 sm:$0xff]   ;;  %v2582_v21 = vld [vmem:[%s3722_s9 + $0x80] ss:$16 sps:$4 sm:$0xff]   ;;  %v2591_v34 = vld [vmem:[%s3722_s9 + $0xa8] ss:$16 sps:$4 sm:$0xff]  }
 0x3db   : > { %621 = vadd.xlane.f32.xlu0 %v620_v37  ;;  %v2588_v32 = vld [vmem:[%s3722_s9 + $0xa0] ss:$16 sps:$4 sm:$0xff]   ;;  %v2596_v37 = vld [vmem:[%s3722_s9 + $0xc4] ss:$16 sps:$4 sm:$0xff]  }
 0x3dc   : > { %1419 = vmatpush1.bf16.msra.mxu1 %v2516_v30  ;;  %1460 = vmatpush1.bf16.msra.mxu0 %v2519_v31  ;;  %v2590_v30 = vld [vmem:[%s3722_s9 + $0xa4] ss:$16 sps:$4 sm:$0xff]   ;;  %v2593_v31 = vld [vmem:[%s3722_s9 + $0xac] ss:$16 sps:$4 sm:$0xff]  }
 0x3dd   : > { %1420 = vmatprep.subr.bf16.mxu1 %v2524_v10  ;;  %1461 = vmatprep.subr.bf16.mxu0 %v2527_v38  ;;  %v2599_v10 = vld [vmem:[%s3722_s9 + $0xcc] ss:$16 sps:$4 sm:$0xff]   ;;  %v2594_v38 = vld [vmem:[%s3722_s9 + $0xc0] ss:$16 sps:$4 sm:$0xff]  }
 0x3e0   : > { %1421 = vmatpush1.bf16.msra.mxu1 %v2522_v39  ;;  %1462 = vmatpush1.bf16.msra.mxu0 %v2525_v40  ;;  %v2597_v39 = vld [vmem:[%s3722_s9 + $0xc8] ss:$16 sps:$4 sm:$0xff]   ;;  %v2602_v40 = vld [vmem:[%s3722_s9 + $0xe4] ss:$16 sps:$4 sm:$0xff]  }
 0x3e1   : > { %1422 = vmatprep.subr.bf16.mxu1 %v2530_v41  ;;  %1463 = vmatprep.subr.bf16.mxu0 %v2533_v19  ;;  %v2605_v41 = vld [vmem:[%s3722_s9 + $0xec] ss:$16 sps:$4 sm:$0xff]   ;;  %v2600_v19 = vld [vmem:[%s3722_s9 + $0xe0] ss:$16 sps:$4 sm:$0xff]  }
 0x3e4   : > { %1423 = vmatpush1.bf16.msra.mxu1 %v2528_v42  ;;  %1464 = vmatpush1.bf16.msra.mxu0 %v2531_v43  ;;  %v2603_v42 = vld [vmem:[%s3722_s9 + $0xe8] ss:$16 sps:$4 sm:$0xff]   ;;  %v2608_v43 = vld [vmem:[%s3722_s9 + $0x104] ss:$16 sps:$4 sm:$0xff]  }
 0x3e5   : > { %1424 = vmatprep.subr.bf16.mxu1 %v2536_v44  ;;  %1465 = vmatprep.subr.bf16.mxu0 %v2539_v12  ;;  %v2611_v44 = vld [vmem:[%s3722_s9 + $0x10c] ss:$16 sps:$4 sm:$0xff]   ;;  %v2606_v12 = vld [vmem:[%s3722_s9 + $0x100] ss:$16 sps:$4 sm:$0xff]  }
 0x3e8   : > { %1425 = vmatpush1.bf16.msra.mxu1 %v2534_v45  ;;  %1466 = vmatpush1.bf16.msra.mxu0 %v2537_v46  ;;  %v2609_v45 = vld [vmem:[%s3722_s9 + $0x108] ss:$16 sps:$4 sm:$0xff]   ;;  %v2614_v46 = vld [vmem:[%s3722_s9 + $0x124] ss:$16 sps:$4 sm:$0xff]  }
 0x3e9   : > { %1426 = vmatprep.subr.bf16.mxu1 %v2542_v47  ;;  %1467 = vmatprep.subr.bf16.mxu0 %v2545_v48  ;;  %v2617_v47 = vld [vmem:[%s3722_s9 + $0x12c] ss:$16 sps:$4 sm:$0xff]   ;;  %v2612_v48 = vld [vmem:[%s3722_s9 + $0x120] ss:$16 sps:$4 sm:$0xff]  }
 0x3ec   : > { %1427 = vmatpush1.bf16.msra.mxu1 %v2540_v11  ;;  %1468 = vmatpush1.bf16.msra.mxu0 %v2543_v49  ;;  %v2615_v11 = vld [vmem:[%s3722_s9 + $0x128] ss:$16 sps:$4 sm:$0xff]   ;;  %v2620_v49 = vld [vmem:[%s3722_s9 + $0x144] ss:$16 sps:$4 sm:$0xff]  }
 0x3ed   : > { %1428 = vmatprep.subr.bf16.mxu1 %v2548_v50  ;;  %1469 = vmatprep.subr.bf16.mxu0 %v2551_v51  ;;  %v2623_v50 = vld [vmem:[%s3722_s9 + $0x14c] ss:$16 sps:$4 sm:$0xff]   ;;  %v2618_v51 = vld [vmem:[%s3722_s9 + $0x140] ss:$16 sps:$4 sm:$0xff]  }
 0x3f0   : > { %1429 = vmatpush1.bf16.msra.mxu1 %v2546_v52  ;;  %1470 = vmatpush1.bf16.msra.mxu0 %v2549_v53  ;;  %v2621_v52 = vld [vmem:[%s3722_s9 + $0x148] ss:$16 sps:$4 sm:$0xff]   ;;  %v2626_v53 = vld [vmem:[%s3722_s9 + $0x164] ss:$16 sps:$4 sm:$0xff]  }
 0x3f1   : > { %1430 = vmatprep.subr.bf16.mxu1 %v2554_v54  ;;  %1471 = vmatprep.subr.bf16.mxu0 %v2557_v56  ;;  %v2629_v54 = vld [vmem:[%s3722_s9 + $0x16c] ss:$16 sps:$4 sm:$0xff]   ;;  %v2624_v56 = vld [vmem:[%s3722_s9 + $0x160] ss:$16 sps:$4 sm:$0xff]  }
 0x3f4   : > { %1431 = vmatpush1.bf16.msra.mxu1 %v2552_v33  ;;  %1472 = vmatpush1.bf16.msra.mxu0 %v2555_v35  ;;  %v2627_v33 = vld [vmem:[%s3722_s9 + $0x168] ss:$16 sps:$4 sm:$0xff]   ;;  %v2632_v35 = vld [vmem:[%s3722_s9 + $0x184] ss:$16 sps:$4 sm:$0xff]  }
 0x3f5   : > { %1818 = vmatprep.subr.bf16.mxu1 %v2560_v57  ;;  %1859 = vmatprep.subr.bf16.mxu0 %v2563_v58  ;;  %v2635_v57 = vld [vmem:[%s3722_s9 + $0x18c] ss:$16 sps:$4 sm:$0xff]   ;;  %v2630_v58 = vld [vmem:[%s3722_s9 + $0x180] ss:$16 sps:$4 sm:$0xff]  }
 0x3f7   : > { %1449 = vmatmul.mubr.bf16.vlgmr.msra.gmra.mrb[8].mxu1 %v1223_v59  ;;  %1490 = vmatmul.mubr.bf16.vlgmr.msra.gmra.mrb[12].mxu0 %v1223_v59  ;;  %v2633_v59 = vld [vmem:[%s3722_s9 + $0x188] ss:$16 sps:$4 sm:$0xff]  }
 0x3f8   : > { %1819 = vmatpush1.bf16.msra.mxu1 %v2558_v60  ;;  %1850 = vmatprep.mubr.bf16.mxu1 %v1158_v62  ;;  %v2638_v60 = vld [vmem:[%s3722_s9 + $0x1a4] ss:$16 sps:$4 sm:$0xff]  }
 0x3f9   : > { %1860 = vmatpush1.bf16.msra.mxu0 %v2561_v61  ;;  %1891 = vmatprep.mubr.bf16.mxu0 %v1158_v62  ;;  %v2641_v61 = vld [vmem:[%s3722_s9 + $0x1ac] ss:$16 sps:$4 sm:$0xff]   ;;  %v2636_v62 = vld [vmem:[%s3722_s9 + $0x1a0] ss:$16 sps:$4 sm:$0xff]  }
 0x3fa   : > { %1820 = vmatprep.subr.bf16.mxu1 %v2566_v63  ;;  %1861 = vmatprep.subr.bf16.mxu0 %v2569_v16  ;;  %v2639_v63 = vld [vmem:[%s3722_s9 + $0x1a8] ss:$16 sps:$4 sm:$0xff]   ;;  %v2644_v16 = vld [vmem:[%s3722_s9 + $0x1c4] ss:$16 sps:$4 sm:$0xff]  }
 0x3fc   : > { %1821 = vmatpush1.bf16.msra.mxu1 %v2564_v1  ;;  %v2647_v1 = vld [vmem:[%s3722_s9 + $0x1cc] ss:$16 sps:$4 sm:$0xff]  }
 0x3fd   : > { %1862 = vmatpush1.bf16.msra.mxu0 %v2567_v6  ;;  %1822 = vmatprep.subr.bf16.mxu1 %v2572_v17  ;;  %v2642_v6 = vld [vmem:[%s3722_s9 + $0x1c0] ss:$16 sps:$4 sm:$0xff]   ;;  %v2645_v17 = vld [vmem:[%s3722_s9 + $0x1c8] ss:$16 sps:$4 sm:$0xff]  }
 0x3fe   : > { %1863 = vmatprep.subr.bf16.mxu0 %v2575_v20  ;;  %v2650_v20 = vld [vmem:[%s3722_s9 + $0x1e4] ss:$16 sps:$4 sm:$0xff]  }
 0x400   : > { %1823 = vmatpush1.bf16.msra.mxu1 %v2570_v23  ;;  %v2653_v23 = vld [vmem:[%s3722_s9 + $0x1ec] ss:$16 sps:$4 sm:$0xff]  }
 0x401   : > { %1864 = vmatpush1.bf16.msra.mxu0 %v2573_v24  ;;  %1824 = vmatprep.subr.bf16.mxu1 %v2578_v25  ;;  %v2648_v24 = vld [vmem:[%s3722_s9 + $0x1e0] ss:$16 sps:$4 sm:$0xff]   ;;  %v2651_v25 = vld [vmem:[%s3722_s9 + $0x1e8] ss:$16 sps:$4 sm:$0xff]  }
 0x402   : > { %1865 = vmatprep.subr.bf16.mxu0 %v2581_v9  ;;  %v1157_v9 = vpack.c.bf16 %v3347_v18, %v3347_v18 }
 0x404   : > { %1825 = vmatpush1.bf16.msra.mxu1 %v2576_v26 }
 0x405   : > { %1866 = vmatpush1.bf16.msra.mxu0 %v2579_v22  ;;  %1826 = vmatprep.subr.bf16.mxu1 %v2584_v27 }
 0x406   : > { %1867 = vmatprep.subr.bf16.mxu0 %v2587_v28  ;;  %v2068_v28 = vsel %vm623_vm12, 1.0, %v2810_v36 }
 0x408   : > { %1827 = vmatpush1.bf16.msra.mxu1 %v2582_v21 }
 0x409   : > { %1868 = vmatpush1.bf16.msra.mxu0 %v2585_v29  ;;  %1828 = vmatprep.subr.bf16.mxu1 %v2590_v30 }
 0x40a   : > { %1869 = vmatprep.subr.bf16.mxu0 %v2593_v31  ;;  %v643_v31 = vsel %vm630_vm5, %v2068_v28, 0.0 }
 0x40c   : > { %1829 = vmatpush1.bf16.msra.mxu1 %v2588_v32 }
 0x40d   : > { %1870 = vmatpush1.bf16.msra.mxu0 %v2591_v34  ;;  %1830 = vmatprep.subr.bf16.mxu1 %v2596_v37 }
 0x40e   : > { %1871 = vmatprep.subr.bf16.mxu0 %v2599_v10 }
 0x410   : > { %1831 = vmatpush1.bf16.msra.mxu1 %v2594_v38 }
 0x411   : > { %1872 = vmatpush1.bf16.msra.mxu0 %v2597_v39  ;;  %1832 = vmatprep.subr.bf16.mxu1 %v2602_v40 }
 0x412   : > { %1873 = vmatprep.subr.bf16.mxu0 %v2605_v41 }
 0x414   : > { %1833 = vmatpush1.bf16.msra.mxu1 %v2600_v19 }
 0x415   : > { %1874 = vmatpush1.bf16.msra.mxu0 %v2603_v42  ;;  %1834 = vmatprep.subr.bf16.mxu1 %v2608_v43  ;;  %v1900_v43 = vld [vmem:[%s3724_s11] sm:$0xf] }
 0x416   : > { %1875 = vmatprep.subr.bf16.mxu0 %v2611_v44 }
 0x418   : > { %1835 = vmatpush1.bf16.msra.mxu1 %v2606_v12 }
 0x419   : > { %1876 = vmatpush1.bf16.msra.mxu0 %v2609_v45  ;;  %1836 = vmatprep.subr.bf16.mxu1 %v2614_v46  ;;  %v1905_v46 = vrot.slane %v1900_v43, %v2905_v2 }
 0x41a   : > { %1877 = vmatprep.subr.bf16.mxu0 %v2617_v47 }
 0x41c   : > { %1837 = vmatpush1.bf16.msra.mxu1 %v2612_v48  ;;  %v1909_v48 = vrot.slane %v1900_v43, %v2907_v3 }
 0x41d   : > { %1878 = vmatpush1.bf16.msra.mxu0 %v2615_v11  ;;  %1838 = vmatprep.subr.bf16.mxu1 %v2620_v49 }
 0x41e   : > { %1879 = vmatprep.subr.bf16.mxu0 %v2623_v50 }
 0x420   : > { %1839 = vmatpush1.bf16.msra.mxu1 %v2618_v51 }
 0x421   : > { %1880 = vmatpush1.bf16.msra.mxu0 %v2621_v52  ;;  %1840 = vmatprep.subr.bf16.mxu1 %v2626_v53 }
 0x422   : > { %1881 = vmatprep.subr.bf16.mxu0 %v2629_v54 }
 0x424   : > { %1841 = vmatpush1.bf16.msra.mxu1 %v2624_v56 }
 0x425   : > { %1882 = vmatpush1.bf16.msra.mxu0 %v2627_v33  ;;  %1842 = vmatprep.subr.bf16.mxu1 %v2632_v35 }
 0x426   : > { %1883 = vmatprep.subr.bf16.mxu0 %v2635_v57 }
 0x428   : > { %1843 = vmatpush1.bf16.msra.mxu1 %v2630_v58 }
 0x429   : > { %1884 = vmatpush1.bf16.msra.mxu0 %v2633_v59  ;;  %1844 = vmatprep.subr.bf16.mxu1 %v2638_v60 }
 0x42a   : > { %1885 = vmatprep.subr.bf16.mxu0 %v2641_v61 }
 0x42c   : > { %1845 = vmatpush1.bf16.msra.mxu1 %v2636_v62 }
 0x42d   : > { %1886 = vmatpush1.bf16.msra.mxu0 %v2639_v63  ;;  %1846 = vmatprep.subr.bf16.mxu1 %v2644_v16 }
 0x42e   : > { %1887 = vmatprep.subr.bf16.mxu0 %v2647_v1 }
 0x430   : > { %1847 = vmatpush1.bf16.msra.mxu1 %v2642_v6 }
 0x431   : > { %1888 = vmatpush1.bf16.msra.mxu0 %v2645_v17  ;;  %1848 = vmatprep.subr.bf16.mxu1 %v2650_v20  ;;  %v1917_v20 = vrot.slane %v1900_v43, %v2911_v5 }
 0x432   : > { %1889 = vmatprep.subr.bf16.mxu0 %v2653_v23 }
 0x434   : > { %1849 = vmatpush1.bf16.msra.mxu1 %v2648_v24 }
 0x435   : > { %1890 = vmatpush1.bf16.msra.mxu0 %v2651_v25 }
 0x437   : > { %1851 = vmatmul.mubr.bf16.vlgmr.msra.gmra.mrb[12].mxu1 %v1157_v9 }
 0x438   : > { %1892 = vmatmul.mubr.bf16.vlgmr.msra.gmra.mrb[16].mxu0 %v1157_v9 }
 0x468   : > { %v622_v26 = vpop.xlane.xlu0 %621 }
 0x469   : > { %v626_v22 = vadd.f32 1e-14, %v622_v26 }
 0x46b   : > { %2676 = vlog2.f32 %v626_v22 }
 0x475   : > { %v2677_v27 = vpop.eup %2676 }
 0x476   : > { %v628_v21 = vmul.f32 0.6931472, %v2677_v27 }
 0x478   : > { %v629_v29 = vmul.f32 %v2068_v28, %v628_v21  ;;  %v1913_v28 = vrot.slane %v1900_v43, %v2909_v4 }
 0x47a   : > { %v631_v30 = vsel %vm630_vm5, %v629_v29, 0.0 }
 0x47b   : > { %632 = vadd.xlane.f32.xlu0 %v631_v30 }
 0x47f   : > { %644 = vadd.xlane.f32.xlu0 %v643_v31 }
 0x4aa   : > { %v3657_v9 = vpop.f32.mrb[4].mxu1   ;;  %v3659_v11 = vpop.f32.mrb[8].mxu0  }
 0x4ab   : > { %v3661_v10 = vpop.f32.mrb[5].mxu1   ;;  %v3663_v12 = vpop.f32.mrb[9].mxu0  }
 0x4ac   : > { %v1113_v55 = vpop.f32.mrb[6].mxu1  ;;  %v1154_v18 = vpop.f32.mrb[10].mxu0 }
 0x4ad   : > { %v1114_v32 = vpop.f32.mrb[7].mxu1  ;;  %v1155_v36 = vpop.f32.mrb[11].mxu0 }
 0x4ca   : > { %v1450_v34 = vpop.f32.mrb[8].mxu1  ;;  %v1491_v37 = vpop.f32.mrb[12].mxu0 }
 0x4cb   : > { %v1452_v38 = vpop.f32.mrb[9].mxu1  ;;  %v1493_v39 = vpop.f32.mrb[13].mxu0 }
 0x4cc   : > { %v1454_v40 = vpop.f32.mrb[10].mxu1  ;;  %v1495_v41 = vpop.f32.mrb[14].mxu0 }
 0x4cd   : > { %v1455_v19 = vpop.f32.mrb[11].mxu1  ;;  %v1496_v42 = vpop.f32.mrb[15].mxu0 }
 0x508   : > { %v633_v44 = vpop.xlane.xlu0 %632 }
 0x509   : > { %v634_v45 = vrot.slane %v633_v44, 4 }
 0x50a   : > { %v1852_v47 = vpop.f32.mrb[12].mxu1 }
 0x50b   : > { %v635_v49 = vadd.f32 %v634_v45, %v633_v44  ;;  %v1853_v50 = vadd.f32 %v1852_v47, %v1450_v34  ;;  %v1893_v51 = vpop.f32.mrb[16].mxu0  ;;  %v1854_v52 = vpop.f32.mrb[13].mxu1 }
 0x50c   : > { %v1894_v53 = vadd.f32 %v1893_v51, %v1491_v37  ;;  %v1855_v54 = vadd.f32 %v1854_v52, %v1452_v38  ;;  %v1895_v56 = vpop.f32.mrb[17].mxu0  ;;  %v1856_v33 = vpop.f32.mrb[14].mxu1 }
 0x50d   : > { %v636_v35 = vrot.slane %v635_v49, 2  ;;  %v1922_v57 = vadd.f32 %v1905_v46, %v1853_v50  ;;  %v1896_v58 = vadd.f32 %v1895_v56, %v1493_v39  ;;  %v1897_v59 = vpop.f32.mrb[18].mxu0  ;;  %v645_v60 = vpop.xlane.xlu0 %644 }
 0x50e   : > { %v1923_v61 = vadd.f32 %v1909_v48, %v1855_v54  ;;  %v646_v62 = vrot.slane %v645_v60, 4  ;;  %v1857_v63 = vpop.f32.mrb[15].mxu1  ;;  %v1898_v16 = vpop.f32.mrb[19].mxu0  ;;  %v1924_v31 = vadd.f32 %v1913_v28, %v1894_v53 }
 0x50f   : > { %v2239_v1 = vmul.f32 -1.442695, %v1922_v57  ;;  %v637_v6 = vadd.f32 %v636_v35, %v635_v49  ;;  %v1925_v22 = vadd.f32 %v1917_v20, %v1896_v58 }
 0x510   : > { %v2240_v17 = vmul.f32 -1.442695, %v1923_v61  ;;  %v647_v23 = vadd.f32 %v646_v62, %v645_v60 }
 0x511   : > { %2678 = vpow2.f32 %v2239_v1  ;;  %v638_v24 = vrot.slane %v637_v6, 1  ;;  %v2241_v29 = vmul.f32 -1.442695, %v1925_v22 }
 0x512   : > { %2680 = vpow2.f32 %v2240_v17  ;;  %v648_v25 = vrot.slane %v647_v23, 2 }
 0x513   : > { %v639_v26 = vadd.f32 %v638_v24, %v637_v6  ;;  %2682 = vpow2.f32 %v2241_v29 }
 0x514   : > { %v649_v27 = vadd.f32 %v648_v25, %v647_v23  ;;  %2684 = vtanh.f32 %v1924_v31 }
 0x515   : > { %2242 = vpush %v639_v26 }
 0x516   : > { %v650_v21 = vrot.slane %v649_v27, 1 }
 0x518   : > { %v651_v30 = vadd.f32 %v650_v21, %v649_v27 }
 0x51a   : > { %2244 = vpush %v651_v30 }
 0x51b   : > { %v2679_v55 = vpop.eup %2678 }
 0x51c   : > { %v2681_v18 = vpop.eup %2680  ;;  %v1929_v32 = vadd.f32 1.0, %v2679_v55 }
 0x51d   : > { %v1935_v36 = vadd.f32 1.0, %v2681_v18  ;;  %v2683_v34 = vpop.eup %2682 }
 0x51e   : > { %2686 = vrcp.f32 %v1929_v32  ;;  %v2685_v37 = vpop.eup %2684  ;;  %v1942_v41 = vadd.f32 1.0, %v2683_v34 }
 0x51f   : > { %2688 = vrcp.f32 %v1935_v36 }
 0x520   : > { %2690 = vrcp.f32 %v1942_v41 }
 0x528   : > { %v2687_v38 = vpop.eup %2686 }
 0x529   : > { %v2689_v39 = vpop.eup %2688  ;;  %v1946_v40 = vmul.f32 %v2687_v38, %v2685_v37 }
 0x52a   : > { %v1945_v19 = vmul.f32 %v2772_v15, %v2689_v39  ;;  %v2691_v43 = vpop.eup %2690 }
 0x52c   : > { %v1947_v42 = vadd.f32 %v1946_v40, %v1945_v19  }
 0x52e   : > { %2692 = vtanh.f32 %v1947_v42  ;;  %v3731_v15 = vmov %v1947_v42  ;;  %1953 = vst [vmem:[%s3727_s14] sm:$0x3] (%p86_p8), %v1947_v42 }
 0x538   : > { %v2693_v44 = vpop.eup %2692 }
 0x539   : > { %v1949_v45 = vmul.f32 %v2693_v44, %v2691_v43  }
 0x53b   : > { %v3732_v16 = vmov %v1949_v45  ;;  %1952 = vst [vmem:[%s3726_s13] sm:$0x3] (%p86_p8), %v1949_v45 }
 0x546   : > { %s2243_s2 = spop %2242 }
 0x547   : > { %s641_s22 = ssub.f32 0.0, %s2243_s2 }
 0x549   : > { %v642_v46 = vstv %s641_s22  ;;  %88 = sbr.rel (!%p86_p8) target bundleno = 25 (0x19), region = 105 }
 0x54a   : > { %v1950_v47 = vadd.f32 %v2768_v14, %v642_v46  }
 0x54b   : > { %s2245_s23 = spop %2244 }
 0x54c   : > { %v653_v48 = vstv %s2245_s23  ;;  %v3730_v14 = vmov %v1950_v47 }
 0x54d   : > { %v1951_v49 = vadd.f32 %v2764_v13, %v653_v48  }
 0x54f   : > { %v3729_v13 = vmov %v1951_v49  ;;  %v1955_v50 = vsel (%p86_p8), %vm1954_vm13, %v1950_v47, %v1951_v49 }
 0x550   :  { %1957 = vst.msk [vmem:[%s3728_s15] sm:$0x1] %vm1956_vm14, %v1955_v50 }
 0x551   :  { %1974 = vsyncpa [#allocation3], 1 }

</bundles_post_ra>
